<compile_context>
chip_gen: v5e
topology: v5e:2x2
jax: 0.10.0
libtpu: 0.0.40
codegen_flags: <defaults>
</compile_context>

<pallas_src>
import jax
import jax.numpy as jnp
from jax.experimental import pallas as pl
from jax.experimental.pallas import tpu as pltpu


def _round_up(x, m):
    return ((x + m - 1) // m) * m


def _pad_to(a, shape):
    pads = [(0, s - d) for d, s in zip(a.shape, shape)]
    return jnp.pad(a, pads)


def _expand_gates(w, H, P):
    """(rows, 4H) -> (rows, 4P): gate g's H columns land at [g*P, g*P+H), rest 0.

    INVARIANT (do not break): padded gate columns carry zero weight AND zero
    bias, so in the padded hidden lanes gates == 0 for every step, hence
    i = f = o = 0.5, g = 0  =>  c_new = 0.5*c (= 0 from zero init), h_new = 0.
    This is what makes the lane padding exactly neutral.
    """
    rows = w.shape[0]
    out = jnp.zeros((rows, 4 * P), w.dtype)
    for g in range(4):
        out = out.at[:, g * P:g * P + H].set(w[:, g * H:(g + 1) * H])
    return out


def _lstm_kernel(x_tv_ref, x_ti_ref, fcti_w_ref, fcti_b_ref,
                 w_ih0_ref, w_ihr_ref, w_hh_ref, b_lstm_ref,
                 fc1_wa_ref, fc1_wb_ref, fc1_b_ref,
                 fc2_w_ref, fc2_b_ref,
                 logits_ref, emb_ref,
                 seq_ref, gx_ref):
    T, Bp, P = seq_ref.shape            # padded: Bp multiple of 8, P multiple of 128
    L = w_hh_ref.shape[0]
    bf16 = jnp.bfloat16
    f32 = jnp.float32

    def sigm(x):
        # sigmoid(x) == 0.5*(tanh(0.5x)+1): one EUP op instead of exp + reciprocal.
        return 0.5 * jnp.tanh(0.5 * x) + 0.5

    unroll = True if T <= 16 else 8

    h_last = None
    for l in range(L):                  # static layer loop (L known at trace time)
        # ---- hoisted input projection: one big MXU matmul over all T timesteps
        if l == 0:
            lhs = x_tv_ref[...]                                   # (T*Bp, DTV) bf16
            w_in = w_ih0_ref[...]                                 # (DTV, 4P) bf16
        else:
            lhs = seq_ref[...].reshape(T * Bp, P).astype(bf16)    # prev layer h's
            w_in = w_ihr_ref[l - 1]                               # (P, 4P) bf16
        gx = jnp.dot(lhs, w_in, preferred_element_type=f32)       # (T*Bp, 4P) f32
        # fold the (pre-broadcast) bias in here, off the serial critical path
        gx_ref[...] = gx.reshape(T, Bp, 4 * P) + b_lstm_ref[l][None, :, :]

        # ---- serial recurrence: only h @ W_hh + gate math on the critical path
        def step(t, carry, _l=l):
            h, c = carry                                          # f32 (Bp, P)
            gates = gx_ref[t] + jnp.dot(h.astype(bf16), w_hh_ref[_l],
                                        preferred_element_type=f32)
            # PyTorch gate order: i, f, g, o — all slices 128-lane aligned
            i_g = sigm(gates[:, 0 * P:1 * P])
            f_g = sigm(gates[:, 1 * P:2 * P])
            g_g = jnp.tanh(gates[:, 2 * P:3 * P])
            o_g = sigm(gates[:, 3 * P:4 * P])
            c_new = f_g * c + i_g * g_g
            h_new = o_g * jnp.tanh(c_new)
            if _l < L - 1:
                seq_ref[t] = h_new                                # next layer's input
            return h_new, c_new

        init = (jnp.zeros((Bp, P), f32), jnp.zeros((Bp, P), f32))
        h_last, _ = jax.lax.fori_loop(0, T, step, init, unroll=unroll)

    # ---- one-time epilogue: time-invariant branch + head (lane-dense stores)
    out_ti = jnp.maximum(
        jnp.dot(x_ti_ref[...], fcti_w_ref[...], preferred_element_type=f32)
        + fcti_b_ref[...], 0.0)
    emb = jnp.maximum(
        jnp.dot(out_ti.astype(bf16), fc1_wa_ref[...], preferred_element_type=f32)
        + jnp.dot(h_last.astype(bf16), fc1_wb_ref[...], preferred_element_type=f32)
        + fc1_b_ref[...], 0.0)
    emb_ref[...] = emb
    logits_ref[...] = (jnp.dot(emb.astype(bf16), fc2_w_ref[...],
                               preferred_element_type=f32)
                       + fc2_b_ref[...])


def lstm_classifier_forward(params, x_time_inv, x_time_vars):
    """params: dict from init_params. x_time_inv (B,D_ti) f32, x_time_vars (B,T,D_tv) f32."""
    B, T, D_tv = x_time_vars.shape
    D_ti = x_time_inv.shape[1]
    L = params["layer_dim"]
    H = params["hidden_dim_time_vars"]
    H_ti = params["hidden_dim_time_inv"]
    E = params["embedding_dim"]
    O = params["output_dim"]

    # padded dims: batch -> multiple of 8 sublanes, feature dims -> multiple of 128 lanes
    B_pad = _round_up(max(B, 8), 8)
    P = _round_up(H, 128)               # hidden / per-gate width
    DTV = _round_up(D_tv, 128)          # layer-0 input width (decoupled from P)
    TI = _round_up(H_ti, 128)
    DTI = _round_up(D_ti, 128)
    E_pad = _round_up(E, 128)
    O_pad = _round_up(O, 128)

    f32, bf16 = jnp.float32, jnp.bfloat16

    # time-major input, zero-padded, (T, B_pad) merged -> rows of the big matmul
    x_tm = jnp.transpose(x_time_vars, (1, 0, 2)).astype(f32)
    x_tv = _pad_to(x_tm, (T, B_pad, DTV)).reshape(T * B_pad, DTV).astype(bf16)
    x_ti = _pad_to(x_time_inv.astype(f32), (B_pad, DTI)).astype(bf16)

    # time-invariant FC
    fcti_w = _pad_to(params["fcti_w"], (DTI, TI)).astype(bf16)
    fcti_b = jnp.broadcast_to(_pad_to(params["fcti_b"], (1, TI)), (B_pad, TI)).astype(f32)

    # LSTM weights: gate-expanded, padded, bf16; biases pre-broadcast, f32
    w_ih0 = _pad_to(_expand_gates(params["w_ih_0"], H, P), (DTV, 4 * P)).astype(bf16)
    if L > 1:
        w_ihr = jnp.stack([_pad_to(_expand_gates(params[f"w_ih_{l}"], H, P), (P, 4 * P))
                           for l in range(1, L)]).astype(bf16)
    else:
        w_ihr = jnp.zeros((1, P, 4 * P), bf16)   # placeholder, never read when L == 1
    w_hh = jnp.stack([_pad_to(_expand_gates(params[f"w_hh_{l}"], H, P), (P, 4 * P))
                      for l in range(L)]).astype(bf16)
    b_lstm = jnp.stack([jnp.broadcast_to(_expand_gates(params[f"b_{l}"], H, P),
                                         (B_pad, 4 * P)) for l in range(L)]).astype(f32)

    # fc1 split into time-invariant half and LSTM half (no in-kernel concat)
    fc1_w = params["fc1_w"]                       # (H_ti + H, E)
    fc1_wa = _pad_to(fc1_w[:H_ti], (TI, E_pad)).astype(bf16)
    fc1_wb = _pad_to(fc1_w[H_ti:], (P, E_pad)).astype(bf16)
    fc1_b = jnp.broadcast_to(_pad_to(params["fc1_b"], (1, E_pad)), (B_pad, E_pad)).astype(f32)
    fc2_w = _pad_to(params["fc2_w"], (E_pad, O_pad)).astype(bf16)
    fc2_b = jnp.broadcast_to(_pad_to(params["fc2_b"], (1, O_pad)), (B_pad, O_pad)).astype(f32)

    operands = (x_tv, x_ti, fcti_w, fcti_b, w_ih0, w_ihr, w_hh, b_lstm,
                fc1_wa, fc1_wb, fc1_b, fc2_w, fc2_b)

    scratch_shapes = [pltpu.VMEM((T, B_pad, P), f32),       # inter-layer h sequence
                      pltpu.VMEM((T, B_pad, 4 * P), f32)]   # hoisted input projection

    # explicit scoped-VMEM budget (defaults: 16 MiB v5e / 32 MiB v6e,v7x)
    operand_bytes = sum(int(o.size) * o.dtype.itemsize for o in operands)
    scratch_bytes = T * B_pad * P * 4 + T * B_pad * 4 * P * 4
    out_bytes = B_pad * (E_pad + O_pad) * 4
    vmem_limit = int(1.5 * (operand_bytes + scratch_bytes + out_bytes)) + (4 << 20)
    vmem_limit = max(min(vmem_limit, 64 << 20), 32 << 20)

    vmem_spec = pl.BlockSpec(memory_space=pltpu.MemorySpace.VMEM)

    logits_pad, emb_pad = pl.pallas_call(
        _lstm_kernel,
        out_shape=(jax.ShapeDtypeStruct((B_pad, O_pad), f32),
                   jax.ShapeDtypeStruct((B_pad, E_pad), f32)),
        in_specs=[vmem_spec] * len(operands),
        out_specs=(vmem_spec, vmem_spec),
        scratch_shapes=scratch_shapes,
        compiler_params=pltpu.CompilerParams(vmem_limit_bytes=vmem_limit),
    )(*operands)

    return logits_pad[:B, :O], emb_pad[:B, :E]


def init_params(key, input_dim_time_inv, input_dim_time_vars, hidden_dim_time_inv,
                hidden_dim_time_vars, embedding_dim, layer_dim, output_dim):
    """Deterministic PyTorch-style uniform(-1/sqrt(fan_in), 1/sqrt(fan_in)) init.
    All weights stored pre-transposed as (in, out)."""
    def lin(k, fan_in, fan_out):
        k1, k2 = jax.random.split(k)
        bound = 1.0 / jnp.sqrt(fan_in)
        w = jax.random.uniform(k1, (fan_in, fan_out), jnp.float32, -bound, bound)
        b = jax.random.uniform(k2, (1, fan_out), jnp.float32, -bound, bound)
        return w, b

    params = dict(layer_dim=layer_dim,
                  hidden_dim_time_vars=hidden_dim_time_vars,
                  hidden_dim_time_inv=hidden_dim_time_inv,
                  embedding_dim=embedding_dim,
                  output_dim=output_dim)

    keys = jax.random.split(key, 3 + 2 * layer_dim)
    params["fcti_w"], params["fcti_b"] = lin(keys[0], input_dim_time_inv, hidden_dim_time_inv)
    H = hidden_dim_time_vars
    for l in range(layer_dim):
        in_l = input_dim_time_vars if l == 0 else H
        kw, kb = jax.random.split(keys[1 + l])
        bound = 1.0 / jnp.sqrt(H)
        params[f"w_ih_{l}"] = jax.random.uniform(kw, (in_l, 4 * H), jnp.float32, -bound, bound)
        params[f"w_hh_{l}"] = jax.random.uniform(kb, (H, 4 * H), jnp.float32, -bound, bound)
        kb1, kb2 = jax.random.split(keys[1 + layer_dim + l])
        b_ih = jax.random.uniform(kb1, (1, 4 * H), jnp.float32, -bound, bound)
        b_hh = jax.random.uniform(kb2, (1, 4 * H), jnp.float32, -bound, bound)
        params[f"b_{l}"] = b_ih + b_hh            # combined bias (same semantics as PyTorch)
    params["fc1_w"], params["fc1_b"] = lin(keys[1 + 2 * layer_dim],
                                           hidden_dim_time_inv + H, embedding_dim)
    params["fc2_w"], params["fc2_b"] = lin(keys[2 + 2 * layer_dim],
                                           embedding_dim, output_dim)
    return params


def reference_forward(params, x_time_inv, x_time_vars):
    """Pure-JAX f32 reference reproducing the PyTorch forward for verification."""
    B, T, _ = x_time_vars.shape
    L = params["layer_dim"]
    H = params["hidden_dim_time_vars"]
    h = [jnp.zeros((B, H), jnp.float32) for _ in range(L)]
    c = [jnp.zeros((B, H), jnp.float32) for _ in range(L)]
    for t in range(T):
        layer_in = x_time_vars[:, t, :]
        for l in range(L):
            gates = (layer_in @ params[f"w_ih_{l}"] + h[l] @ params[f"w_hh_{l}"]
                     + params[f"b_{l}"])
            i_g = jax.nn.sigmoid(gates[:, 0 * H:1 * H])
            f_g = jax.nn.sigmoid(gates[:, 1 * H:2 * H])
            g_g = jnp.tanh(gates[:, 2 * H:3 * H])
            o_g = jax.nn.sigmoid(gates[:, 3 * H:4 * H])
            c[l] = f_g * c[l] + i_g * g_g
            h[l] = o_g * jnp.tanh(c[l])
            layer_in = h[l]
    out_ti = jnp.maximum(x_time_inv @ params["fcti_w"] + params["fcti_b"], 0.0)
    combined = jnp.concatenate([out_ti, h[-1]], axis=1)
    emb = jnp.maximum(combined @ params["fc1_w"] + params["fc1_b"], 0.0)
    logits = emb @ params["fc2_w"] + params["fc2_b"]
    return logits, emb


if __name__ == "__main__":
    # small config consistent with the module's forward
    B = 2
    input_dim_time_inv = 8
    input_dim_time_vars = 4
    hidden_dim_time_inv = 16
    hidden_dim_time_vars = 32
    embedding_dim = 32
    layer_dim = 2
    output_dim = 3
    seq_len = 8

    key = jax.random.PRNGKey(0)
    kp, kx1, kx2 = jax.random.split(key, 3)
    params = init_params(kp, input_dim_time_inv, input_dim_time_vars,
                         hidden_dim_time_inv, hidden_dim_time_vars,
                         embedding_dim, layer_dim, output_dim)

    x_time_inv = jax.random.normal(kx1, (B, input_dim_time_inv), jnp.float32)
    x_time_vars = jax.random.normal(kx2, (B, seq_len, input_dim_time_vars), jnp.float32)

    logits, emb = lstm_classifier_forward(params, x_time_inv, x_time_vars)
    logits = jax.block_until_ready(logits)
    emb = jax.block_until_ready(emb)

    ref_logits, ref_emb = reference_forward(params, x_time_inv, x_time_vars)
    assert logits.shape == (B, output_dim) and emb.shape == (B, embedding_dim)
    # bf16 MXU operands vs f32 reference: loosened tolerance (expected precision change)
    assert jnp.allclose(logits, ref_logits, atol=3e-2, rtol=3e-2)
    assert jnp.allclose(emb, ref_emb, atol=3e-2, rtol=3e-2)

    print("KERNEL_OK")
</pallas_src>

<mosaic_0001>
module attributes {stable_mosaic.version = 11 : i64} {
  func.func @_lstm_kernel(%arg0: memref<64x128xbf16, #tpu.memory_space<vmem>>, %arg1: memref<8x128xbf16, #tpu.memory_space<vmem>>, %arg2: memref<128x128xbf16, #tpu.memory_space<vmem>>, %arg3: memref<8x128xf32, #tpu.memory_space<vmem>>, %arg4: memref<128x512xbf16, #tpu.memory_space<vmem>>, %arg5: memref<1x128x512xbf16, #tpu.memory_space<vmem>>, %arg6: memref<2x128x512xbf16, #tpu.memory_space<vmem>>, %arg7: memref<2x8x512xf32, #tpu.memory_space<vmem>>, %arg8: memref<128x128xbf16, #tpu.memory_space<vmem>>, %arg9: memref<128x128xbf16, #tpu.memory_space<vmem>>, %arg10: memref<8x128xf32, #tpu.memory_space<vmem>>, %arg11: memref<128x128xbf16, #tpu.memory_space<vmem>>, %arg12: memref<8x128xf32, #tpu.memory_space<vmem>>, %arg13: memref<8x128xf32, #tpu.memory_space<vmem>>, %arg14: memref<8x128xf32, #tpu.memory_space<vmem>>, %arg15: memref<8x8x128xf32, #tpu.memory_space<vmem>>, %arg16: memref<8x8x512xf32, #tpu.memory_space<vmem>>) attributes {dimension_semantics = [], scalar_prefetch = 0 : i64, scratch_operands = 2 : i64, tpu.core_type = #tpu.core_type<tc>} {
    %c0 = arith.constant 0 : index
    %c0_0 = arith.constant 0 : index
    %0 = vector.load %arg0[%c0, %c0_0] : memref<64x128xbf16, #tpu.memory_space<vmem>>, vector<64x128xbf16>
    %c0_1 = arith.constant 0 : index
    %c0_2 = arith.constant 0 : index
    %1 = vector.load %arg4[%c0_1, %c0_2] : memref<128x512xbf16, #tpu.memory_space<vmem>>, vector<128x512xbf16>
    %cst = arith.constant dense<0.000000e+00> : vector<64x512xf32>
    %2 = tpu.matmul %0, %1, %cst {dimension_numbers = #tpu.dot_dimension_numbers<[1], [0], [0], [1], [0, 0, 1, 1], [], []>} : vector<64x128xbf16>, vector<128x512xbf16>, vector<64x512xf32> -> vector<64x512xf32>
    %3 = vector.shape_cast %2 : vector<64x512xf32> to vector<8x8x512xf32>
    %c0_3 = arith.constant 0 : index
    %c0_4 = arith.constant 0 : index
    %c0_5 = arith.constant 0 : index
    %4 = vector.load %arg7[%c0_3, %c0_4, %c0_5] : memref<2x8x512xf32, #tpu.memory_space<vmem>>, vector<1x8x512xf32>
    %5 = vector.shape_cast %4 : vector<1x8x512xf32> to vector<8x512xf32>
    %6 = vector.shape_cast %5 : vector<8x512xf32> to vector<1x8x512xf32>
    %7 = vector.broadcast %6 : vector<1x8x512xf32> to vector<8x8x512xf32>
    %8 = arith.addf %3, %7 : vector<8x8x512xf32>
    %c0_6 = arith.constant 0 : index
    %c0_7 = arith.constant 0 : index
    %c0_8 = arith.constant 0 : index
    %9 = vector.load %arg16[%c0_6, %c0_7, %c0_8] : memref<8x8x512xf32, #tpu.memory_space<vmem>>, vector<8x8x512xf32>
    tpu.vector_store %arg16[%c0_6, %c0_7, %c0_8], %8 {strides = array<i32>} : memref<8x8x512xf32, #tpu.memory_space<vmem>>, vector<8x8x512xf32>,
    %cst_9 = arith.constant 0.000000e+00 : f32
    %10 = vector.broadcast %cst_9 : f32 to vector<8x128xf32>
    %cst_10 = arith.constant 0.000000e+00 : f32
    %11 = vector.broadcast %cst_10 : f32 to vector<8x128xf32>
    %c0_i32 = arith.constant 0 : i32
    %12 = arith.index_cast %c0_i32 : i32 to index
    %c0_11 = arith.constant 0 : index
    %c0_12 = arith.constant 0 : index
    %13 = vector.load %arg16[%12, %c0_11, %c0_12] : memref<8x8x512xf32, #tpu.memory_space<vmem>>, vector<1x8x512xf32>
    %14 = vector.shape_cast %13 : vector<1x8x512xf32> to vector<8x512xf32>
    %15 = arith.truncf %10 : vector<8x128xf32> to vector<8x128xbf16>
    %c0_13 = arith.constant 0 : index
    %c0_14 = arith.constant 0 : index
    %c0_15 = arith.constant 0 : index
    %16 = vector.load %arg6[%c0_13, %c0_14, %c0_15] : memref<2x128x512xbf16, #tpu.memory_space<vmem>>, vector<1x128x512xbf16>
    %17 = vector.shape_cast %16 : vector<1x128x512xbf16> to vector<128x512xbf16>
    %cst_16 = arith.constant dense<0.000000e+00> : vector<8x512xf32>
    %18 = tpu.matmul %15, %17, %cst_16 {dimension_numbers = #tpu.dot_dimension_numbers<[1], [0], [0], [1], [0, 0, 1, 1], [], []>} : vector<8x128xbf16>, vector<128x512xbf16>, vector<8x512xf32> -> vector<8x512xf32>
    %19 = arith.addf %14, %18 : vector<8x512xf32>
    %20 = vector.extract_strided_slice %19 {offsets = [0, 0], sizes = [8, 128], strides = [1, 1]} : vector<8x512xf32> to vector<8x128xf32>
    %cst_17 = arith.constant 5.000000e-01 : f32
    %21 = vector.broadcast %cst_17 : f32 to vector<8x128xf32>
    %22 = arith.mulf %21, %20 : vector<8x128xf32>
    %23 = math.tanh %22 : vector<8x128xf32>
    %cst_18 = arith.constant 5.000000e-01 : f32
    %24 = vector.broadcast %cst_18 : f32 to vector<8x128xf32>
    %25 = arith.mulf %24, %23 : vector<8x128xf32>
    %cst_19 = arith.constant 5.000000e-01 : f32
    %26 = vector.broadcast %cst_19 : f32 to vector<8x128xf32>
    %27 = arith.addf %25, %26 : vector<8x128xf32>
    %28 = vector.extract_strided_slice %19 {offsets = [0, 128], sizes = [8, 128], strides = [1, 1]} : vector<8x512xf32> to vector<8x128xf32>
    %cst_20 = arith.constant 5.000000e-01 : f32
    %29 = vector.broadcast %cst_20 : f32 to vector<8x128xf32>
    %30 = arith.mulf %29, %28 : vector<8x128xf32>
    %31 = math.tanh %30 : vector<8x128xf32>
    %cst_21 = arith.constant 5.000000e-01 : f32
    %32 = vector.broadcast %cst_21 : f32 to vector<8x128xf32>
    %33 = arith.mulf %32, %31 : vector<8x128xf32>
    %cst_22 = arith.constant 5.000000e-01 : f32
    %34 = vector.broadcast %cst_22 : f32 to vector<8x128xf32>
    %35 = arith.addf %33, %34 : vector<8x128xf32>
    %36 = vector.extract_strided_slice %19 {offsets = [0, 256], sizes = [8, 128], strides = [1, 1]} : vector<8x512xf32> to vector<8x128xf32>
    %37 = math.tanh %36 : vector<8x128xf32>
    %38 = vector.extract_strided_slice %19 {offsets = [0, 384], sizes = [8, 128], strides = [1, 1]} : vector<8x512xf32> to vector<8x128xf32>
    %cst_23 = arith.constant 5.000000e-01 : f32
    %39 = vector.broadcast %cst_23 : f32 to vector<8x128xf32>
    %40 = arith.mulf %39, %38 : vector<8x128xf32>
    %41 = math.tanh %40 : vector<8x128xf32>
    %cst_24 = arith.constant 5.000000e-01 : f32
    %42 = vector.broadcast %cst_24 : f32 to vector<8x128xf32>
    %43 = arith.mulf %42, %41 : vector<8x128xf32>
    %cst_25 = arith.constant 5.000000e-01 : f32
    %44 = vector.broadcast %cst_25 : f32 to vector<8x128xf32>
    %45 = arith.addf %43, %44 : vector<8x128xf32>
    %46 = arith.mulf %35, %11 : vector<8x128xf32>
    %47 = arith.mulf %27, %37 : vector<8x128xf32>
    %48 = arith.addf %46, %47 : vector<8x128xf32>
    %49 = math.tanh %48 : vector<8x128xf32>
    %50 = arith.mulf %45, %49 : vector<8x128xf32>
    %51 = arith.index_cast %c0_i32 : i32 to index
    %c0_26 = arith.constant 0 : index
    %c0_27 = arith.constant 0 : index
    %52 = vector.load %arg15[%51, %c0_26, %c0_27] : memref<8x8x128xf32, #tpu.memory_space<vmem>>, vector<1x8x128xf32>
    %53 = vector.shape_cast %52 : vector<1x8x128xf32> to vector<8x128xf32>
    %54 = vector.shape_cast %50 : vector<8x128xf32> to vector<1x8x128xf32>
    tpu.vector_store %arg15[%51, %c0_26, %c0_27], %54 {strides = array<i32>} : memref<8x8x128xf32, #tpu.memory_space<vmem>>, vector<1x8x128xf32>,
    %c1_i32 = arith.constant 1 : i32
    %55 = arith.index_cast %c1_i32 : i32 to index
    %c0_28 = arith.constant 0 : index
    %c0_29 = arith.constant 0 : index
    %56 = vector.load %arg16[%55, %c0_28, %c0_29] : memref<8x8x512xf32, #tpu.memory_space<vmem>>, vector<1x8x512xf32>
    %57 = vector.shape_cast %56 : vector<1x8x512xf32> to vector<8x512xf32>
    %58 = arith.truncf %50 : vector<8x128xf32> to vector<8x128xbf16>
    %c0_30 = arith.constant 0 : index
    %c0_31 = arith.constant 0 : index
    %c0_32 = arith.constant 0 : index
    %59 = vector.load %arg6[%c0_30, %c0_31, %c0_32] : memref<2x128x512xbf16, #tpu.memory_space<vmem>>, vector<1x128x512xbf16>
    %60 = vector.shape_cast %59 : vector<1x128x512xbf16> to vector<128x512xbf16>
    %cst_33 = arith.constant dense<0.000000e+00> : vector<8x512xf32>
    %61 = tpu.matmul %58, %60, %cst_33 {dimension_numbers = #tpu.dot_dimension_numbers<[1], [0], [0], [1], [0, 0, 1, 1], [], []>} : vector<8x128xbf16>, vector<128x512xbf16>, vector<8x512xf32> -> vector<8x512xf32>
    %62 = arith.addf %57, %61 : vector<8x512xf32>
    %63 = vector.extract_strided_slice %62 {offsets = [0, 0], sizes = [8, 128], strides = [1, 1]} : vector<8x512xf32> to vector<8x128xf32>
    %cst_34 = arith.constant 5.000000e-01 : f32
    %64 = vector.broadcast %cst_34 : f32 to vector<8x128xf32>
    %65 = arith.mulf %64, %63 : vector<8x128xf32>
    %66 = math.tanh %65 : vector<8x128xf32>
    %cst_35 = arith.constant 5.000000e-01 : f32
    %67 = vector.broadcast %cst_35 : f32 to vector<8x128xf32>
    %68 = arith.mulf %67, %66 : vector<8x128xf32>
    %cst_36 = arith.constant 5.000000e-01 : f32
    %69 = vector.broadcast %cst_36 : f32 to vector<8x128xf32>
    %70 = arith.addf %68, %69 : vector<8x128xf32>
    %71 = vector.extract_strided_slice %62 {offsets = [0, 128], sizes = [8, 128], strides = [1, 1]} : vector<8x512xf32> to vector<8x128xf32>
    %cst_37 = arith.constant 5.000000e-01 : f32
    %72 = vector.broadcast %cst_37 : f32 to vector<8x128xf32>
    %73 = arith.mulf %72, %71 : vector<8x128xf32>
    %74 = math.tanh %73 : vector<8x128xf32>
    %cst_38 = arith.constant 5.000000e-01 : f32
    %75 = vector.broadcast %cst_38 : f32 to vector<8x128xf32>
    %76 = arith.mulf %75, %74 : vector<8x128xf32>
    %cst_39 = arith.constant 5.000000e-01 : f32
    %77 = vector.broadcast %cst_39 : f32 to vector<8x128xf32>
    %78 = arith.addf %76, %77 : vector<8x128xf32>
    %79 = vector.extract_strided_slice %62 {offsets = [0, 256], sizes = [8, 128], strides = [1, 1]} : vector<8x512xf32> to vector<8x128xf32>
    %80 = math.tanh %79 : vector<8x128xf32>
    %81 = vector.extract_strided_slice %62 {offsets = [0, 384], sizes = [8, 128], strides = [1, 1]} : vector<8x512xf32> to vector<8x128xf32>
    %cst_40 = arith.constant 5.000000e-01 : f32
    %82 = vector.broadcast %cst_40 : f32 to vector<8x128xf32>
    %83 = arith.mulf %82, %81 : vector<8x128xf32>
    %84 = math.tanh %83 : vector<8x128xf32>
    %cst_41 = arith.constant 5.000000e-01 : f32
    %85 = vector.broadcast %cst_41 : f32 to vector<8x128xf32>
    %86 = arith.mulf %85, %84 : vector<8x128xf32>
    %cst_42 = arith.constant 5.000000e-01 : f32
    %87 = vector.broadcast %cst_42 : f32 to vector<8x128xf32>
    %88 = arith.addf %86, %87 : vector<8x128xf32>
    %89 = arith.mulf %78, %48 : vector<8x128xf32>
    %90 = arith.mulf %70, %80 : vector<8x128xf32>
    %91 = arith.addf %89, %90 : vector<8x128xf32>
    %92 = math.tanh %91 : vector<8x128xf32>
    %93 = arith.mulf %88, %92 : vector<8x128xf32>
    %94 = arith.index_cast %c1_i32 : i32 to index
    %c0_43 = arith.constant 0 : index
    %c0_44 = arith.constant 0 : index
    %95 = vector.load %arg15[%94, %c0_43, %c0_44] : memref<8x8x128xf32, #tpu.memory_space<vmem>>, vector<1x8x128xf32>
    %96 = vector.shape_cast %95 : vector<1x8x128xf32> to vector<8x128xf32>
    %97 = vector.shape_cast %93 : vector<8x128xf32> to vector<1x8x128xf32>
    tpu.vector_store %arg15[%94, %c0_43, %c0_44], %97 {strides = array<i32>} : memref<8x8x128xf32, #tpu.memory_space<vmem>>, vector<1x8x128xf32>,
    %c2_i32 = arith.constant 2 : i32
    %98 = arith.index_cast %c2_i32 : i32 to index
    %c0_45 = arith.constant 0 : index
    %c0_46 = arith.constant 0 : index
    %99 = vector.load %arg16[%98, %c0_45, %c0_46] : memref<8x8x512xf32, #tpu.memory_space<vmem>>, vector<1x8x512xf32>
    %100 = vector.shape_cast %99 : vector<1x8x512xf32> to vector<8x512xf32>
    %101 = arith.truncf %93 : vector<8x128xf32> to vector<8x128xbf16>
    %c0_47 = arith.constant 0 : index
    %c0_48 = arith.constant 0 : index
    %c0_49 = arith.constant 0 : index
    %102 = vector.load %arg6[%c0_47, %c0_48, %c0_49] : memref<2x128x512xbf16, #tpu.memory_space<vmem>>, vector<1x128x512xbf16>
    %103 = vector.shape_cast %102 : vector<1x128x512xbf16> to vector<128x512xbf16>
    %cst_50 = arith.constant dense<0.000000e+00> : vector<8x512xf32>
    %104 = tpu.matmul %101, %103, %cst_50 {dimension_numbers = #tpu.dot_dimension_numbers<[1], [0], [0], [1], [0, 0, 1, 1], [], []>} : vector<8x128xbf16>, vector<128x512xbf16>, vector<8x512xf32> -> vector<8x512xf32>
    %105 = arith.addf %100, %104 : vector<8x512xf32>
    %106 = vector.extract_strided_slice %105 {offsets = [0, 0], sizes = [8, 128], strides = [1, 1]} : vector<8x512xf32> to vector<8x128xf32>
    %cst_51 = arith.constant 5.000000e-01 : f32
    %107 = vector.broadcast %cst_51 : f32 to vector<8x128xf32>
    %108 = arith.mulf %107, %106 : vector<8x128xf32>
    %109 = math.tanh %108 : vector<8x128xf32>
    %cst_52 = arith.constant 5.000000e-01 : f32
    %110 = vector.broadcast %cst_52 : f32 to vector<8x128xf32>
    %111 = arith.mulf %110, %109 : vector<8x128xf32>
    %cst_53 = arith.constant 5.000000e-01 : f32
    %112 = vector.broadcast %cst_53 : f32 to vector<8x128xf32>
    %113 = arith.addf %111, %112 : vector<8x128xf32>
    %114 = vector.extract_strided_slice %105 {offsets = [0, 128], sizes = [8, 128], strides = [1, 1]} : vector<8x512xf32> to vector<8x128xf32>
    %cst_54 = arith.constant 5.000000e-01 : f32
    %115 = vector.broadcast %cst_54 : f32 to vector<8x128xf32>
    %116 = arith.mulf %115, %114 : vector<8x128xf32>
    %117 = math.tanh %116 : vector<8x128xf32>
    %cst_55 = arith.constant 5.000000e-01 : f32
    %118 = vector.broadcast %cst_55 : f32 to vector<8x128xf32>
    %119 = arith.mulf %118, %117 : vector<8x128xf32>
    %cst_56 = arith.constant 5.000000e-01 : f32
    %120 = vector.broadcast %cst_56 : f32 to vector<8x128xf32>
    %121 = arith.addf %119, %120 : vector<8x128xf32>
    %122 = vector.extract_strided_slice %105 {offsets = [0, 256], sizes = [8, 128], strides = [1, 1]} : vector<8x512xf32> to vector<8x128xf32>
    %123 = math.tanh %122 : vector<8x128xf32>
    %124 = vector.extract_strided_slice %105 {offsets = [0, 384], sizes = [8, 128], strides = [1, 1]} : vector<8x512xf32> to vector<8x128xf32>
    %cst_57 = arith.constant 5.000000e-01 : f32
    %125 = vector.broadcast %cst_57 : f32 to vector<8x128xf32>
    %126 = arith.mulf %125, %124 : vector<8x128xf32>
    %127 = math.tanh %126 : vector<8x128xf32>
    %cst_58 = arith.constant 5.000000e-01 : f32
    %128 = vector.broadcast %cst_58 : f32 to vector<8x128xf32>
    %129 = arith.mulf %128, %127 : vector<8x128xf32>
    %cst_59 = arith.constant 5.000000e-01 : f32
    %130 = vector.broadcast %cst_59 : f32 to vector<8x128xf32>
    %131 = arith.addf %129, %130 : vector<8x128xf32>
    %132 = arith.mulf %121, %91 : vector<8x128xf32>
    %133 = arith.mulf %113, %123 : vector<8x128xf32>
    %134 = arith.addf %132, %133 : vector<8x128xf32>
    %135 = math.tanh %134 : vector<8x128xf32>
    %136 = arith.mulf %131, %135 : vector<8x128xf32>
    %137 = arith.index_cast %c2_i32 : i32 to index
    %c0_60 = arith.constant 0 : index
    %c0_61 = arith.constant 0 : index
    %138 = vector.load %arg15[%137, %c0_60, %c0_61] : memref<8x8x128xf32, #tpu.memory_space<vmem>>, vector<1x8x128xf32>
    %139 = vector.shape_cast %138 : vector<1x8x128xf32> to vector<8x128xf32>
    %140 = vector.shape_cast %136 : vector<8x128xf32> to vector<1x8x128xf32>
    tpu.vector_store %arg15[%137, %c0_60, %c0_61], %140 {strides = array<i32>} : memref<8x8x128xf32, #tpu.memory_space<vmem>>, vector<1x8x128xf32>,
    %c3_i32 = arith.constant 3 : i32
    %141 = arith.index_cast %c3_i32 : i32 to index
    %c0_62 = arith.constant 0 : index
    %c0_63 = arith.constant 0 : index
    %142 = vector.load %arg16[%141, %c0_62, %c0_63] : memref<8x8x512xf32, #tpu.memory_space<vmem>>, vector<1x8x512xf32>
    %143 = vector.shape_cast %142 : vector<1x8x512xf32> to vector<8x512xf32>
    %144 = arith.truncf %136 : vector<8x128xf32> to vector<8x128xbf16>
    %c0_64 = arith.constant 0 : index
    %c0_65 = arith.constant 0 : index
    %c0_66 = arith.constant 0 : index
    %145 = vector.load %arg6[%c0_64, %c0_65, %c0_66] : memref<2x128x512xbf16, #tpu.memory_space<vmem>>, vector<1x128x512xbf16>
    %146 = vector.shape_cast %145 : vector<1x128x512xbf16> to vector<128x512xbf16>
    %cst_67 = arith.constant dense<0.000000e+00> : vector<8x512xf32>
    %147 = tpu.matmul %144, %146, %cst_67 {dimension_numbers = #tpu.dot_dimension_numbers<[1], [0], [0], [1], [0, 0, 1, 1], [], []>} : vector<8x128xbf16>, vector<128x512xbf16>, vector<8x512xf32> -> vector<8x512xf32>
    %148 = arith.addf %143, %147 : vector<8x512xf32>
    %149 = vector.extract_strided_slice %148 {offsets = [0, 0], sizes = [8, 128], strides = [1, 1]} : vector<8x512xf32> to vector<8x128xf32>
    %cst_68 = arith.constant 5.000000e-01 : f32
    %150 = vector.broadcast %cst_68 : f32 to vector<8x128xf32>
    %151 = arith.mulf %150, %149 : vector<8x128xf32>
    %152 = math.tanh %151 : vector<8x128xf32>
    %cst_69 = arith.constant 5.000000e-01 : f32
    %153 = vector.broadcast %cst_69 : f32 to vector<8x128xf32>
    %154 = arith.mulf %153, %152 : vector<8x128xf32>
    %cst_70 = arith.constant 5.000000e-01 : f32
    %155 = vector.broadcast %cst_70 : f32 to vector<8x128xf32>
    %156 = arith.addf %154, %155 : vector<8x128xf32>
    %157 = vector.extract_strided_slice %148 {offsets = [0, 128], sizes = [8, 128], strides = [1, 1]} : vector<8x512xf32> to vector<8x128xf32>
    %cst_71 = arith.constant 5.000000e-01 : f32
    %158 = vector.broadcast %cst_71 : f32 to vector<8x128xf32>
    %159 = arith.mulf %158, %157 : vector<8x128xf32>
    %160 = math.tanh %159 : vector<8x128xf32>
    %cst_72 = arith.constant 5.000000e-01 : f32
    %161 = vector.broadcast %cst_72 : f32 to vector<8x128xf32>
    %162 = arith.mulf %161, %160 : vector<8x128xf32>
    %cst_73 = arith.constant 5.000000e-01 : f32
    %163 = vector.broadcast %cst_73 : f32 to vector<8x128xf32>
    %164 = arith.addf %162, %163 : vector<8x128xf32>
    %165 = vector.extract_strided_slice %148 {offsets = [0, 256], sizes = [8, 128], strides = [1, 1]} : vector<8x512xf32> to vector<8x128xf32>
    %166 = math.tanh %165 : vector<8x128xf32>
    %167 = vector.extract_strided_slice %148 {offsets = [0, 384], sizes = [8, 128], strides = [1, 1]} : vector<8x512xf32> to vector<8x128xf32>
    %cst_74 = arith.constant 5.000000e-01 : f32
    %168 = vector.broadcast %cst_74 : f32 to vector<8x128xf32>
    %169 = arith.mulf %168, %167 : vector<8x128xf32>
    %170 = math.tanh %169 : vector<8x128xf32>
    %cst_75 = arith.constant 5.000000e-01 : f32
    %171 = vector.broadcast %cst_75 : f32 to vector<8x128xf32>
    %172 = arith.mulf %171, %170 : vector<8x128xf32>
    %cst_76 = arith.constant 5.000000e-01 : f32
    %173 = vector.broadcast %cst_76 : f32 to vector<8x128xf32>
    %174 = arith.addf %172, %173 : vector<8x128xf32>
    %175 = arith.mulf %164, %134 : vector<8x128xf32>
    %176 = arith.mulf %156, %166 : vector<8x128xf32>
    %177 = arith.addf %175, %176 : vector<8x128xf32>
    %178 = math.tanh %177 : vector<8x128xf32>
    %179 = arith.mulf %174, %178 : vector<8x128xf32>
    %180 = arith.index_cast %c3_i32 : i32 to index
    %c0_77 = arith.constant 0 : index
    %c0_78 = arith.constant 0 : index
    %181 = vector.load %arg15[%180, %c0_77, %c0_78] : memref<8x8x128xf32, #tpu.memory_space<vmem>>, vector<1x8x128xf32>
    %182 = vector.shape_cast %181 : vector<1x8x128xf32> to vector<8x128xf32>
    %183 = vector.shape_cast %179 : vector<8x128xf32> to vector<1x8x128xf32>
    tpu.vector_store %arg15[%180, %c0_77, %c0_78], %183 {strides = array<i32>} : memref<8x8x128xf32, #tpu.memory_space<vmem>>, vector<1x8x128xf32>,
    %c4_i32 = arith.constant 4 : i32
    %184 = arith.index_cast %c4_i32 : i32 to index
    %c0_79 = arith.constant 0 : index
    %c0_80 = arith.constant 0 : index
    %185 = vector.load %arg16[%184, %c0_79, %c0_80] : memref<8x8x512xf32, #tpu.memory_space<vmem>>, vector<1x8x512xf32>
    %186 = vector.shape_cast %185 : vector<1x8x512xf32> to vector<8x512xf32>
    %187 = arith.truncf %179 : vector<8x128xf32> to vector<8x128xbf16>
    %c0_81 = arith.constant 0 : index
    %c0_82 = arith.constant 0 : index
    %c0_83 = arith.constant 0 : index
    %188 = vector.load %arg6[%c0_81, %c0_82, %c0_83] : memref<2x128x512xbf16, #tpu.memory_space<vmem>>, vector<1x128x512xbf16>
    %189 = vector.shape_cast %188 : vector<1x128x512xbf16> to vector<128x512xbf16>
    %cst_84 = arith.constant dense<0.000000e+00> : vector<8x512xf32>
    %190 = tpu.matmul %187, %189, %cst_84 {dimension_numbers = #tpu.dot_dimension_numbers<[1], [0], [0], [1], [0, 0, 1, 1], [], []>} : vector<8x128xbf16>, vector<128x512xbf16>, vector<8x512xf32> -> vector<8x512xf32>
    %191 = arith.addf %186, %190 : vector<8x512xf32>
    %192 = vector.extract_strided_slice %191 {offsets = [0, 0], sizes = [8, 128], strides = [1, 1]} : vector<8x512xf32> to vector<8x128xf32>
    %cst_85 = arith.constant 5.000000e-01 : f32
    %193 = vector.broadcast %cst_85 : f32 to vector<8x128xf32>
    %194 = arith.mulf %193, %192 : vector<8x128xf32>
    %195 = math.tanh %194 : vector<8x128xf32>
    %cst_86 = arith.constant 5.000000e-01 : f32
    %196 = vector.broadcast %cst_86 : f32 to vector<8x128xf32>
    %197 = arith.mulf %196, %195 : vector<8x128xf32>
    %cst_87 = arith.constant 5.000000e-01 : f32
    %198 = vector.broadcast %cst_87 : f32 to vector<8x128xf32>
    %199 = arith.addf %197, %198 : vector<8x128xf32>
    %200 = vector.extract_strided_slice %191 {offsets = [0, 128], sizes = [8, 128], strides = [1, 1]} : vector<8x512xf32> to vector<8x128xf32>
    %cst_88 = arith.constant 5.000000e-01 : f32
    %201 = vector.broadcast %cst_88 : f32 to vector<8x128xf32>
    %202 = arith.mulf %201, %200 : vector<8x128xf32>
    %203 = math.tanh %202 : vector<8x128xf32>
    %cst_89 = arith.constant 5.000000e-01 : f32
    %204 = vector.broadcast %cst_89 : f32 to vector<8x128xf32>
    %205 = arith.mulf %204, %203 : vector<8x128xf32>
    %cst_90 = arith.constant 5.000000e-01 : f32
    %206 = vector.broadcast %cst_90 : f32 to vector<8x128xf32>
    %207 = arith.addf %205, %206 : vector<8x128xf32>
    %208 = vector.extract_strided_slice %191 {offsets = [0, 256], sizes = [8, 128], strides = [1, 1]} : vector<8x512xf32> to vector<8x128xf32>
    %209 = math.tanh %208 : vector<8x128xf32>
    %210 = vector.extract_strided_slice %191 {offsets = [0, 384], sizes = [8, 128], strides = [1, 1]} : vector<8x512xf32> to vector<8x128xf32>
    %cst_91 = arith.constant 5.000000e-01 : f32
    %211 = vector.broadcast %cst_91 : f32 to vector<8x128xf32>
    %212 = arith.mulf %211, %210 : vector<8x128xf32>
    %213 = math.tanh %212 : vector<8x128xf32>
    %cst_92 = arith.constant 5.000000e-01 : f32
    %214 = vector.broadcast %cst_92 : f32 to vector<8x128xf32>
    %215 = arith.mulf %214, %213 : vector<8x128xf32>
    %cst_93 = arith.constant 5.000000e-01 : f32
    %216 = vector.broadcast %cst_93 : f32 to vector<8x128xf32>
    %217 = arith.addf %215, %216 : vector<8x128xf32>
    %218 = arith.mulf %207, %177 : vector<8x128xf32>
    %219 = arith.mulf %199, %209 : vector<8x128xf32>
    %220 = arith.addf %218, %219 : vector<8x128xf32>
    %221 = math.tanh %220 : vector<8x128xf32>
    %222 = arith.mulf %217, %221 : vector<8x128xf32>
    %223 = arith.index_cast %c4_i32 : i32 to index
    %c0_94 = arith.constant 0 : index
    %c0_95 = arith.constant 0 : index
    %224 = vector.load %arg15[%223, %c0_94, %c0_95] : memref<8x8x128xf32, #tpu.memory_space<vmem>>, vector<1x8x128xf32>
    %225 = vector.shape_cast %224 : vector<1x8x128xf32> to vector<8x128xf32>
    %226 = vector.shape_cast %222 : vector<8x128xf32> to vector<1x8x128xf32>
    tpu.vector_store %arg15[%223, %c0_94, %c0_95], %226 {strides = array<i32>} : memref<8x8x128xf32, #tpu.memory_space<vmem>>, vector<1x8x128xf32>,
    %c5_i32 = arith.constant 5 : i32
    %227 = arith.index_cast %c5_i32 : i32 to index
    %c0_96 = arith.constant 0 : index
    %c0_97 = arith.constant 0 : index
    %228 = vector.load %arg16[%227, %c0_96, %c0_97] : memref<8x8x512xf32, #tpu.memory_space<vmem>>, vector<1x8x512xf32>
    %229 = vector.shape_cast %228 : vector<1x8x512xf32> to vector<8x512xf32>
    %230 = arith.truncf %222 : vector<8x128xf32> to vector<8x128xbf16>
    %c0_98 = arith.constant 0 : index
    %c0_99 = arith.constant 0 : index
    %c0_100 = arith.constant 0 : index
    %231 = vector.load %arg6[%c0_98, %c0_99, %c0_100] : memref<2x128x512xbf16, #tpu.memory_space<vmem>>, vector<1x128x512xbf16>
    %232 = vector.shape_cast %231 : vector<1x128x512xbf16> to vector<128x512xbf16>
    %cst_101 = arith.constant dense<0.000000e+00> : vector<8x512xf32>
    %233 = tpu.matmul %230, %232, %cst_101 {dimension_numbers = #tpu.dot_dimension_numbers<[1], [0], [0], [1], [0, 0, 1, 1], [], []>} : vector<8x128xbf16>, vector<128x512xbf16>, vector<8x512xf32> -> vector<8x512xf32>
    %234 = arith.addf %229, %233 : vector<8x512xf32>
    %235 = vector.extract_strided_slice %234 {offsets = [0, 0], sizes = [8, 128], strides = [1, 1]} : vector<8x512xf32> to vector<8x128xf32>
    %cst_102 = arith.constant 5.000000e-01 : f32
    %236 = vector.broadcast %cst_102 : f32 to vector<8x128xf32>
    %237 = arith.mulf %236, %235 : vector<8x128xf32>
    %238 = math.tanh %237 : vector<8x128xf32>
    %cst_103 = arith.constant 5.000000e-01 : f32
    %239 = vector.broadcast %cst_103 : f32 to vector<8x128xf32>
    %240 = arith.mulf %239, %238 : vector<8x128xf32>
    %cst_104 = arith.constant 5.000000e-01 : f32
    %241 = vector.broadcast %cst_104 : f32 to vector<8x128xf32>
    %242 = arith.addf %240, %241 : vector<8x128xf32>
    %243 = vector.extract_strided_slice %234 {offsets = [0, 128], sizes = [8, 128], strides = [1, 1]} : vector<8x512xf32> to vector<8x128xf32>
    %cst_105 = arith.constant 5.000000e-01 : f32
    %244 = vector.broadcast %cst_105 : f32 to vector<8x128xf32>
    %245 = arith.mulf %244, %243 : vector<8x128xf32>
    %246 = math.tanh %245 : vector<8x128xf32>
    %cst_106 = arith.constant 5.000000e-01 : f32
    %247 = vector.broadcast %cst_106 : f32 to vector<8x128xf32>
    %248 = arith.mulf %247, %246 : vector<8x128xf32>
    %cst_107 = arith.constant 5.000000e-01 : f32
    %249 = vector.broadcast %cst_107 : f32 to vector<8x128xf32>
    %250 = arith.addf %248, %249 : vector<8x128xf32>
    %251 = vector.extract_strided_slice %234 {offsets = [0, 256], sizes = [8, 128], strides = [1, 1]} : vector<8x512xf32> to vector<8x128xf32>
    %252 = math.tanh %251 : vector<8x128xf32>
    %253 = vector.extract_strided_slice %234 {offsets = [0, 384], sizes = [8, 128], strides = [1, 1]} : vector<8x512xf32> to vector<8x128xf32>
    %cst_108 = arith.constant 5.000000e-01 : f32
    %254 = vector.broadcast %cst_108 : f32 to vector<8x128xf32>
    %255 = arith.mulf %254, %253 : vector<8x128xf32>
    %256 = math.tanh %255 : vector<8x128xf32>
    %cst_109 = arith.constant 5.000000e-01 : f32
    %257 = vector.broadcast %cst_109 : f32 to vector<8x128xf32>
    %258 = arith.mulf %257, %256 : vector<8x128xf32>
    %cst_110 = arith.constant 5.000000e-01 : f32
    %259 = vector.broadcast %cst_110 : f32 to vector<8x128xf32>
    %260 = arith.addf %258, %259 : vector<8x128xf32>
    %261 = arith.mulf %250, %220 : vector<8x128xf32>
    %262 = arith.mulf %242, %252 : vector<8x128xf32>
    %263 = arith.addf %261, %262 : vector<8x128xf32>
    %264 = math.tanh %263 : vector<8x128xf32>
    %265 = arith.mulf %260, %264 : vector<8x128xf32>
    %266 = arith.index_cast %c5_i32 : i32 to index
    %c0_111 = arith.constant 0 : index
    %c0_112 = arith.constant 0 : index
    %267 = vector.load %arg15[%266, %c0_111, %c0_112] : memref<8x8x128xf32, #tpu.memory_space<vmem>>, vector<1x8x128xf32>
    %268 = vector.shape_cast %267 : vector<1x8x128xf32> to vector<8x128xf32>
    %269 = vector.shape_cast %265 : vector<8x128xf32> to vector<1x8x128xf32>
    tpu.vector_store %arg15[%266, %c0_111, %c0_112], %269 {strides = array<i32>} : memref<8x8x128xf32, #tpu.memory_space<vmem>>, vector<1x8x128xf32>,
    %c6_i32 = arith.constant 6 : i32
    %270 = arith.index_cast %c6_i32 : i32 to index
    %c0_113 = arith.constant 0 : index
    %c0_114 = arith.constant 0 : index
    %271 = vector.load %arg16[%270, %c0_113, %c0_114] : memref<8x8x512xf32, #tpu.memory_space<vmem>>, vector<1x8x512xf32>
    %272 = vector.shape_cast %271 : vector<1x8x512xf32> to vector<8x512xf32>
    %273 = arith.truncf %265 : vector<8x128xf32> to vector<8x128xbf16>
    %c0_115 = arith.constant 0 : index
    %c0_116 = arith.constant 0 : index
    %c0_117 = arith.constant 0 : index
    %274 = vector.load %arg6[%c0_115, %c0_116, %c0_117] : memref<2x128x512xbf16, #tpu.memory_space<vmem>>, vector<1x128x512xbf16>
    %275 = vector.shape_cast %274 : vector<1x128x512xbf16> to vector<128x512xbf16>
    %cst_118 = arith.constant dense<0.000000e+00> : vector<8x512xf32>
    %276 = tpu.matmul %273, %275, %cst_118 {dimension_numbers = #tpu.dot_dimension_numbers<[1], [0], [0], [1], [0, 0, 1, 1], [], []>} : vector<8x128xbf16>, vector<128x512xbf16>, vector<8x512xf32> -> vector<8x512xf32>
    %277 = arith.addf %272, %276 : vector<8x512xf32>
    %278 = vector.extract_strided_slice %277 {offsets = [0, 0], sizes = [8, 128], strides = [1, 1]} : vector<8x512xf32> to vector<8x128xf32>
    %cst_119 = arith.constant 5.000000e-01 : f32
    %279 = vector.broadcast %cst_119 : f32 to vector<8x128xf32>
    %280 = arith.mulf %279, %278 : vector<8x128xf32>
    %281 = math.tanh %280 : vector<8x128xf32>
    %cst_120 = arith.constant 5.000000e-01 : f32
    %282 = vector.broadcast %cst_120 : f32 to vector<8x128xf32>
    %283 = arith.mulf %282, %281 : vector<8x128xf32>
    %cst_121 = arith.constant 5.000000e-01 : f32
    %284 = vector.broadcast %cst_121 : f32 to vector<8x128xf32>
    %285 = arith.addf %283, %284 : vector<8x128xf32>
    %286 = vector.extract_strided_slice %277 {offsets = [0, 128], sizes = [8, 128], strides = [1, 1]} : vector<8x512xf32> to vector<8x128xf32>
    %cst_122 = arith.constant 5.000000e-01 : f32
    %287 = vector.broadcast %cst_122 : f32 to vector<8x128xf32>
    %288 = arith.mulf %287, %286 : vector<8x128xf32>
    %289 = math.tanh %288 : vector<8x128xf32>
    %cst_123 = arith.constant 5.000000e-01 : f32
    %290 = vector.broadcast %cst_123 : f32 to vector<8x128xf32>
    %291 = arith.mulf %290, %289 : vector<8x128xf32>
    %cst_124 = arith.constant 5.000000e-01 : f32
    %292 = vector.broadcast %cst_124 : f32 to vector<8x128xf32>
    %293 = arith.addf %291, %292 : vector<8x128xf32>
    %294 = vector.extract_strided_slice %277 {offsets = [0, 256], sizes = [8, 128], strides = [1, 1]} : vector<8x512xf32> to vector<8x128xf32>
    %295 = math.tanh %294 : vector<8x128xf32>
    %296 = vector.extract_strided_slice %277 {offsets = [0, 384], sizes = [8, 128], strides = [1, 1]} : vector<8x512xf32> to vector<8x128xf32>
    %cst_125 = arith.constant 5.000000e-01 : f32
    %297 = vector.broadcast %cst_125 : f32 to vector<8x128xf32>
    %298 = arith.mulf %297, %296 : vector<8x128xf32>
    %299 = math.tanh %298 : vector<8x128xf32>
    %cst_126 = arith.constant 5.000000e-01 : f32
    %300 = vector.broadcast %cst_126 : f32 to vector<8x128xf32>
    %301 = arith.mulf %300, %299 : vector<8x128xf32>
    %cst_127 = arith.constant 5.000000e-01 : f32
    %302 = vector.broadcast %cst_127 : f32 to vector<8x128xf32>
    %303 = arith.addf %301, %302 : vector<8x128xf32>
    %304 = arith.mulf %293, %263 : vector<8x128xf32>
    %305 = arith.mulf %285, %295 : vector<8x128xf32>
    %306 = arith.addf %304, %305 : vector<8x128xf32>
    %307 = math.tanh %306 : vector<8x128xf32>
    %308 = arith.mulf %303, %307 : vector<8x128xf32>
    %309 = arith.index_cast %c6_i32 : i32 to index
    %c0_128 = arith.constant 0 : index
    %c0_129 = arith.constant 0 : index
    %310 = vector.load %arg15[%309, %c0_128, %c0_129] : memref<8x8x128xf32, #tpu.memory_space<vmem>>, vector<1x8x128xf32>
    %311 = vector.shape_cast %310 : vector<1x8x128xf32> to vector<8x128xf32>
    %312 = vector.shape_cast %308 : vector<8x128xf32> to vector<1x8x128xf32>
    tpu.vector_store %arg15[%309, %c0_128, %c0_129], %312 {strides = array<i32>} : memref<8x8x128xf32, #tpu.memory_space<vmem>>, vector<1x8x128xf32>,
    %c7_i32 = arith.constant 7 : i32
    %313 = arith.index_cast %c7_i32 : i32 to index
    %c0_130 = arith.constant 0 : index
    %c0_131 = arith.constant 0 : index
    %314 = vector.load %arg16[%313, %c0_130, %c0_131] : memref<8x8x512xf32, #tpu.memory_space<vmem>>, vector<1x8x512xf32>
    %315 = vector.shape_cast %314 : vector<1x8x512xf32> to vector<8x512xf32>
    %316 = arith.truncf %308 : vector<8x128xf32> to vector<8x128xbf16>
    %c0_132 = arith.constant 0 : index
    %c0_133 = arith.constant 0 : index
    %c0_134 = arith.constant 0 : index
    %317 = vector.load %arg6[%c0_132, %c0_133, %c0_134] : memref<2x128x512xbf16, #tpu.memory_space<vmem>>, vector<1x128x512xbf16>
    %318 = vector.shape_cast %317 : vector<1x128x512xbf16> to vector<128x512xbf16>
    %cst_135 = arith.constant dense<0.000000e+00> : vector<8x512xf32>
    %319 = tpu.matmul %316, %318, %cst_135 {dimension_numbers = #tpu.dot_dimension_numbers<[1], [0], [0], [1], [0, 0, 1, 1], [], []>} : vector<8x128xbf16>, vector<128x512xbf16>, vector<8x512xf32> -> vector<8x512xf32>
    %320 = arith.addf %315, %319 : vector<8x512xf32>
    %321 = vector.extract_strided_slice %320 {offsets = [0, 0], sizes = [8, 128], strides = [1, 1]} : vector<8x512xf32> to vector<8x128xf32>
    %cst_136 = arith.constant 5.000000e-01 : f32
    %322 = vector.broadcast %cst_136 : f32 to vector<8x128xf32>
    %323 = arith.mulf %322, %321 : vector<8x128xf32>
    %324 = math.tanh %323 : vector<8x128xf32>
    %cst_137 = arith.constant 5.000000e-01 : f32
    %325 = vector.broadcast %cst_137 : f32 to vector<8x128xf32>
    %326 = arith.mulf %325, %324 : vector<8x128xf32>
    %cst_138 = arith.constant 5.000000e-01 : f32
    %327 = vector.broadcast %cst_138 : f32 to vector<8x128xf32>
    %328 = arith.addf %326, %327 : vector<8x128xf32>
    %329 = vector.extract_strided_slice %320 {offsets = [0, 128], sizes = [8, 128], strides = [1, 1]} : vector<8x512xf32> to vector<8x128xf32>
    %cst_139 = arith.constant 5.000000e-01 : f32
    %330 = vector.broadcast %cst_139 : f32 to vector<8x128xf32>
    %331 = arith.mulf %330, %329 : vector<8x128xf32>
    %332 = math.tanh %331 : vector<8x128xf32>
    %cst_140 = arith.constant 5.000000e-01 : f32
    %333 = vector.broadcast %cst_140 : f32 to vector<8x128xf32>
    %334 = arith.mulf %333, %332 : vector<8x128xf32>
    %cst_141 = arith.constant 5.000000e-01 : f32
    %335 = vector.broadcast %cst_141 : f32 to vector<8x128xf32>
    %336 = arith.addf %334, %335 : vector<8x128xf32>
    %337 = vector.extract_strided_slice %320 {offsets = [0, 256], sizes = [8, 128], strides = [1, 1]} : vector<8x512xf32> to vector<8x128xf32>
    %338 = math.tanh %337 : vector<8x128xf32>
    %339 = vector.extract_strided_slice %320 {offsets = [0, 384], sizes = [8, 128], strides = [1, 1]} : vector<8x512xf32> to vector<8x128xf32>
    %cst_142 = arith.constant 5.000000e-01 : f32
    %340 = vector.broadcast %cst_142 : f32 to vector<8x128xf32>
    %341 = arith.mulf %340, %339 : vector<8x128xf32>
    %342 = math.tanh %341 : vector<8x128xf32>
    %cst_143 = arith.constant 5.000000e-01 : f32
    %343 = vector.broadcast %cst_143 : f32 to vector<8x128xf32>
    %344 = arith.mulf %343, %342 : vector<8x128xf32>
    %cst_144 = arith.constant 5.000000e-01 : f32
    %345 = vector.broadcast %cst_144 : f32 to vector<8x128xf32>
    %346 = arith.addf %344, %345 : vector<8x128xf32>
    %347 = arith.mulf %336, %306 : vector<8x128xf32>
    %348 = arith.mulf %328, %338 : vector<8x128xf32>
    %349 = arith.addf %347, %348 : vector<8x128xf32>
    %350 = math.tanh %349 : vector<8x128xf32>
    %351 = arith.mulf %346, %350 : vector<8x128xf32>
    %352 = arith.index_cast %c7_i32 : i32 to index
    %c0_145 = arith.constant 0 : index
    %c0_146 = arith.constant 0 : index
    %353 = vector.load %arg15[%352, %c0_145, %c0_146] : memref<8x8x128xf32, #tpu.memory_space<vmem>>, vector<1x8x128xf32>
    %354 = vector.shape_cast %353 : vector<1x8x128xf32> to vector<8x128xf32>
    %355 = vector.shape_cast %351 : vector<8x128xf32> to vector<1x8x128xf32>
    tpu.vector_store %arg15[%352, %c0_145, %c0_146], %355 {strides = array<i32>} : memref<8x8x128xf32, #tpu.memory_space<vmem>>, vector<1x8x128xf32>,
    %c8_i32 = arith.constant 8 : i32
    %c0_147 = arith.constant 0 : index
    %c0_148 = arith.constant 0 : index
    %c0_149 = arith.constant 0 : index
    %356 = vector.load %arg15[%c0_147, %c0_148, %c0_149] : memref<8x8x128xf32, #tpu.memory_space<vmem>>, vector<8x8x128xf32>
    %357 = vector.shape_cast %356 : vector<8x8x128xf32> to vector<64x128xf32>
    %358 = arith.truncf %357 : vector<64x128xf32> to vector<64x128xbf16>
    %c0_150 = arith.constant 0 : index
    %c0_151 = arith.constant 0 : index
    %c0_152 = arith.constant 0 : index
    %359 = vector.load %arg5[%c0_150, %c0_151, %c0_152] : memref<1x128x512xbf16, #tpu.memory_space<vmem>>, vector<1x128x512xbf16>
    %360 = vector.shape_cast %359 : vector<1x128x512xbf16> to vector<128x512xbf16>
    %cst_153 = arith.constant dense<0.000000e+00> : vector<64x512xf32>
    %361 = tpu.matmul %358, %360, %cst_153 {dimension_numbers = #tpu.dot_dimension_numbers<[1], [0], [0], [1], [0, 0, 1, 1], [], []>} : vector<64x128xbf16>, vector<128x512xbf16>, vector<64x512xf32> -> vector<64x512xf32>
    %362 = vector.shape_cast %361 : vector<64x512xf32> to vector<8x8x512xf32>
    %c1 = arith.constant 1 : index
    %c0_154 = arith.constant 0 : index
    %c0_155 = arith.constant 0 : index
    %363 = vector.load %arg7[%c1, %c0_154, %c0_155] : memref<2x8x512xf32, #tpu.memory_space<vmem>>, vector<1x8x512xf32>
    %364 = vector.shape_cast %363 : vector<1x8x512xf32> to vector<8x512xf32>
    %365 = vector.shape_cast %364 : vector<8x512xf32> to vector<1x8x512xf32>
    %366 = vector.broadcast %365 : vector<1x8x512xf32> to vector<8x8x512xf32>
    %367 = arith.addf %362, %366 : vector<8x8x512xf32>
    %c0_156 = arith.constant 0 : index
    %c0_157 = arith.constant 0 : index
    %c0_158 = arith.constant 0 : index
    %368 = vector.load %arg16[%c0_156, %c0_157, %c0_158] : memref<8x8x512xf32, #tpu.memory_space<vmem>>, vector<8x8x512xf32>
    tpu.vector_store %arg16[%c0_156, %c0_157, %c0_158], %367 {strides = array<i32>} : memref<8x8x512xf32, #tpu.memory_space<vmem>>, vector<8x8x512xf32>,
    %cst_159 = arith.constant 0.000000e+00 : f32
    %369 = vector.broadcast %cst_159 : f32 to vector<8x128xf32>
    %cst_160 = arith.constant 0.000000e+00 : f32
    %370 = vector.broadcast %cst_160 : f32 to vector<8x128xf32>
    %c0_i32_161 = arith.constant 0 : i32
    %371 = arith.index_cast %c0_i32_161 : i32 to index
    %c0_162 = arith.constant 0 : index
    %c0_163 = arith.constant 0 : index
    %372 = vector.load %arg16[%371, %c0_162, %c0_163] : memref<8x8x512xf32, #tpu.memory_space<vmem>>, vector<1x8x512xf32>
    %373 = vector.shape_cast %372 : vector<1x8x512xf32> to vector<8x512xf32>
    %374 = arith.truncf %369 : vector<8x128xf32> to vector<8x128xbf16>
    %c1_164 = arith.constant 1 : index
    %c0_165 = arith.constant 0 : index
    %c0_166 = arith.constant 0 : index
    %375 = vector.load %arg6[%c1_164, %c0_165, %c0_166] : memref<2x128x512xbf16, #tpu.memory_space<vmem>>, vector<1x128x512xbf16>
    %376 = vector.shape_cast %375 : vector<1x128x512xbf16> to vector<128x512xbf16>
    %cst_167 = arith.constant dense<0.000000e+00> : vector<8x512xf32>
    %377 = tpu.matmul %374, %376, %cst_167 {dimension_numbers = #tpu.dot_dimension_numbers<[1], [0], [0], [1], [0, 0, 1, 1], [], []>} : vector<8x128xbf16>, vector<128x512xbf16>, vector<8x512xf32> -> vector<8x512xf32>
    %378 = arith.addf %373, %377 : vector<8x512xf32>
    %379 = vector.extract_strided_slice %378 {offsets = [0, 0], sizes = [8, 128], strides = [1, 1]} : vector<8x512xf32> to vector<8x128xf32>
    %cst_168 = arith.constant 5.000000e-01 : f32
    %380 = vector.broadcast %cst_168 : f32 to vector<8x128xf32>
    %381 = arith.mulf %380, %379 : vector<8x128xf32>
    %382 = math.tanh %381 : vector<8x128xf32>
    %cst_169 = arith.constant 5.000000e-01 : f32
    %383 = vector.broadcast %cst_169 : f32 to vector<8x128xf32>
    %384 = arith.mulf %383, %382 : vector<8x128xf32>
    %cst_170 = arith.constant 5.000000e-01 : f32
    %385 = vector.broadcast %cst_170 : f32 to vector<8x128xf32>
    %386 = arith.addf %384, %385 : vector<8x128xf32>
    %387 = vector.extract_strided_slice %378 {offsets = [0, 128], sizes = [8, 128], strides = [1, 1]} : vector<8x512xf32> to vector<8x128xf32>
    %cst_171 = arith.constant 5.000000e-01 : f32
    %388 = vector.broadcast %cst_171 : f32 to vector<8x128xf32>
    %389 = arith.mulf %388, %387 : vector<8x128xf32>
    %390 = math.tanh %389 : vector<8x128xf32>
    %cst_172 = arith.constant 5.000000e-01 : f32
    %391 = vector.broadcast %cst_172 : f32 to vector<8x128xf32>
    %392 = arith.mulf %391, %390 : vector<8x128xf32>
    %cst_173 = arith.constant 5.000000e-01 : f32
    %393 = vector.broadcast %cst_173 : f32 to vector<8x128xf32>
    %394 = arith.addf %392, %393 : vector<8x128xf32>
    %395 = vector.extract_strided_slice %378 {offsets = [0, 256], sizes = [8, 128], strides = [1, 1]} : vector<8x512xf32> to vector<8x128xf32>
    %396 = math.tanh %395 : vector<8x128xf32>
    %397 = vector.extract_strided_slice %378 {offsets = [0, 384], sizes = [8, 128], strides = [1, 1]} : vector<8x512xf32> to vector<8x128xf32>
    %cst_174 = arith.constant 5.000000e-01 : f32
    %398 = vector.broadcast %cst_174 : f32 to vector<8x128xf32>
    %399 = arith.mulf %398, %397 : vector<8x128xf32>
    %400 = math.tanh %399 : vector<8x128xf32>
    %cst_175 = arith.constant 5.000000e-01 : f32
    %401 = vector.broadcast %cst_175 : f32 to vector<8x128xf32>
    %402 = arith.mulf %401, %400 : vector<8x128xf32>
    %cst_176 = arith.constant 5.000000e-01 : f32
    %403 = vector.broadcast %cst_176 : f32 to vector<8x128xf32>
    %404 = arith.addf %402, %403 : vector<8x128xf32>
    %405 = arith.mulf %394, %370 : vector<8x128xf32>
    %406 = arith.mulf %386, %396 : vector<8x128xf32>
    %407 = arith.addf %405, %406 : vector<8x128xf32>
    %408 = math.tanh %407 : vector<8x128xf32>
    %409 = arith.mulf %404, %408 : vector<8x128xf32>
    %c1_i32_177 = arith.constant 1 : i32
    %410 = arith.index_cast %c1_i32_177 : i32 to index
    %c0_178 = arith.constant 0 : index
    %c0_179 = arith.constant 0 : index
    %411 = vector.load %arg16[%410, %c0_178, %c0_179] : memref<8x8x512xf32, #tpu.memory_space<vmem>>, vector<1x8x512xf32>
    %412 = vector.shape_cast %411 : vector<1x8x512xf32> to vector<8x512xf32>
    %413 = arith.truncf %409 : vector<8x128xf32> to vector<8x128xbf16>
    %c1_180 = arith.constant 1 : index
    %c0_181 = arith.constant 0 : index
    %c0_182 = arith.constant 0 : index
    %414 = vector.load %arg6[%c1_180, %c0_181, %c0_182] : memref<2x128x512xbf16, #tpu.memory_space<vmem>>, vector<1x128x512xbf16>
    %415 = vector.shape_cast %414 : vector<1x128x512xbf16> to vector<128x512xbf16>
    %cst_183 = arith.constant dense<0.000000e+00> : vector<8x512xf32>
    %416 = tpu.matmul %413, %415, %cst_183 {dimension_numbers = #tpu.dot_dimension_numbers<[1], [0], [0], [1], [0, 0, 1, 1], [], []>} : vector<8x128xbf16>, vector<128x512xbf16>, vector<8x512xf32> -> vector<8x512xf32>
    %417 = arith.addf %412, %416 : vector<8x512xf32>
    %418 = vector.extract_strided_slice %417 {offsets = [0, 0], sizes = [8, 128], strides = [1, 1]} : vector<8x512xf32> to vector<8x128xf32>
    %cst_184 = arith.constant 5.000000e-01 : f32
    %419 = vector.broadcast %cst_184 : f32 to vector<8x128xf32>
    %420 = arith.mulf %419, %418 : vector<8x128xf32>
    %421 = math.tanh %420 : vector<8x128xf32>
    %cst_185 = arith.constant 5.000000e-01 : f32
    %422 = vector.broadcast %cst_185 : f32 to vector<8x128xf32>
    %423 = arith.mulf %422, %421 : vector<8x128xf32>
    %cst_186 = arith.constant 5.000000e-01 : f32
    %424 = vector.broadcast %cst_186 : f32 to vector<8x128xf32>
    %425 = arith.addf %423, %424 : vector<8x128xf32>
    %426 = vector.extract_strided_slice %417 {offsets = [0, 128], sizes = [8, 128], strides = [1, 1]} : vector<8x512xf32> to vector<8x128xf32>
    %cst_187 = arith.constant 5.000000e-01 : f32
    %427 = vector.broadcast %cst_187 : f32 to vector<8x128xf32>
    %428 = arith.mulf %427, %426 : vector<8x128xf32>
    %429 = math.tanh %428 : vector<8x128xf32>
    %cst_188 = arith.constant 5.000000e-01 : f32
    %430 = vector.broadcast %cst_188 : f32 to vector<8x128xf32>
    %431 = arith.mulf %430, %429 : vector<8x128xf32>
    %cst_189 = arith.constant 5.000000e-01 : f32
    %432 = vector.broadcast %cst_189 : f32 to vector<8x128xf32>
    %433 = arith.addf %431, %432 : vector<8x128xf32>
    %434 = vector.extract_strided_slice %417 {offsets = [0, 256], sizes = [8, 128], strides = [1, 1]} : vector<8x512xf32> to vector<8x128xf32>
    %435 = math.tanh %434 : vector<8x128xf32>
    %436 = vector.extract_strided_slice %417 {offsets = [0, 384], sizes = [8, 128], strides = [1, 1]} : vector<8x512xf32> to vector<8x128xf32>
    %cst_190 = arith.constant 5.000000e-01 : f32
    %437 = vector.broadcast %cst_190 : f32 to vector<8x128xf32>
    %438 = arith.mulf %437, %436 : vector<8x128xf32>
    %439 = math.tanh %438 : vector<8x128xf32>
    %cst_191 = arith.constant 5.000000e-01 : f32
    %440 = vector.broadcast %cst_191 : f32 to vector<8x128xf32>
    %441 = arith.mulf %440, %439 : vector<8x128xf32>
    %cst_192 = arith.constant 5.000000e-01 : f32
    %442 = vector.broadcast %cst_192 : f32 to vector<8x128xf32>
    %443 = arith.addf %441, %442 : vector<8x128xf32>
    %444 = arith.mulf %433, %407 : vector<8x128xf32>
    %445 = arith.mulf %425, %435 : vector<8x128xf32>
    %446 = arith.addf %444, %445 : vector<8x128xf32>
    %447 = math.tanh %446 : vector<8x128xf32>
    %448 = arith.mulf %443, %447 : vector<8x128xf32>
    %c2_i32_193 = arith.constant 2 : i32
    %449 = arith.index_cast %c2_i32_193 : i32 to index
    %c0_194 = arith.constant 0 : index
    %c0_195 = arith.constant 0 : index
    %450 = vector.load %arg16[%449, %c0_194, %c0_195] : memref<8x8x512xf32, #tpu.memory_space<vmem>>, vector<1x8x512xf32>
    %451 = vector.shape_cast %450 : vector<1x8x512xf32> to vector<8x512xf32>
    %452 = arith.truncf %448 : vector<8x128xf32> to vector<8x128xbf16>
    %c1_196 = arith.constant 1 : index
    %c0_197 = arith.constant 0 : index
    %c0_198 = arith.constant 0 : index
    %453 = vector.load %arg6[%c1_196, %c0_197, %c0_198] : memref<2x128x512xbf16, #tpu.memory_space<vmem>>, vector<1x128x512xbf16>
    %454 = vector.shape_cast %453 : vector<1x128x512xbf16> to vector<128x512xbf16>
    %cst_199 = arith.constant dense<0.000000e+00> : vector<8x512xf32>
    %455 = tpu.matmul %452, %454, %cst_199 {dimension_numbers = #tpu.dot_dimension_numbers<[1], [0], [0], [1], [0, 0, 1, 1], [], []>} : vector<8x128xbf16>, vector<128x512xbf16>, vector<8x512xf32> -> vector<8x512xf32>
    %456 = arith.addf %451, %455 : vector<8x512xf32>
    %457 = vector.extract_strided_slice %456 {offsets = [0, 0], sizes = [8, 128], strides = [1, 1]} : vector<8x512xf32> to vector<8x128xf32>
    %cst_200 = arith.constant 5.000000e-01 : f32
    %458 = vector.broadcast %cst_200 : f32 to vector<8x128xf32>
    %459 = arith.mulf %458, %457 : vector<8x128xf32>
    %460 = math.tanh %459 : vector<8x128xf32>
    %cst_201 = arith.constant 5.000000e-01 : f32
    %461 = vector.broadcast %cst_201 : f32 to vector<8x128xf32>
    %462 = arith.mulf %461, %460 : vector<8x128xf32>
    %cst_202 = arith.constant 5.000000e-01 : f32
    %463 = vector.broadcast %cst_202 : f32 to vector<8x128xf32>
    %464 = arith.addf %462, %463 : vector<8x128xf32>
    %465 = vector.extract_strided_slice %456 {offsets = [0, 128], sizes = [8, 128], strides = [1, 1]} : vector<8x512xf32> to vector<8x128xf32>
    %cst_203 = arith.constant 5.000000e-01 : f32
    %466 = vector.broadcast %cst_203 : f32 to vector<8x128xf32>
    %467 = arith.mulf %466, %465 : vector<8x128xf32>
    %468 = math.tanh %467 : vector<8x128xf32>
    %cst_204 = arith.constant 5.000000e-01 : f32
    %469 = vector.broadcast %cst_204 : f32 to vector<8x128xf32>
    %470 = arith.mulf %469, %468 : vector<8x128xf32>
    %cst_205 = arith.constant 5.000000e-01 : f32
    %471 = vector.broadcast %cst_205 : f32 to vector<8x128xf32>
    %472 = arith.addf %470, %471 : vector<8x128xf32>
    %473 = vector.extract_strided_slice %456 {offsets = [0, 256], sizes = [8, 128], strides = [1, 1]} : vector<8x512xf32> to vector<8x128xf32>
    %474 = math.tanh %473 : vector<8x128xf32>
    %475 = vector.extract_strided_slice %456 {offsets = [0, 384], sizes = [8, 128], strides = [1, 1]} : vector<8x512xf32> to vector<8x128xf32>
    %cst_206 = arith.constant 5.000000e-01 : f32
    %476 = vector.broadcast %cst_206 : f32 to vector<8x128xf32>
    %477 = arith.mulf %476, %475 : vector<8x128xf32>
    %478 = math.tanh %477 : vector<8x128xf32>
    %cst_207 = arith.constant 5.000000e-01 : f32
    %479 = vector.broadcast %cst_207 : f32 to vector<8x128xf32>
    %480 = arith.mulf %479, %478 : vector<8x128xf32>
    %cst_208 = arith.constant 5.000000e-01 : f32
    %481 = vector.broadcast %cst_208 : f32 to vector<8x128xf32>
    %482 = arith.addf %480, %481 : vector<8x128xf32>
    %483 = arith.mulf %472, %446 : vector<8x128xf32>
    %484 = arith.mulf %464, %474 : vector<8x128xf32>
    %485 = arith.addf %483, %484 : vector<8x128xf32>
    %486 = math.tanh %485 : vector<8x128xf32>
    %487 = arith.mulf %482, %486 : vector<8x128xf32>
    %c3_i32_209 = arith.constant 3 : i32
    %488 = arith.index_cast %c3_i32_209 : i32 to index
    %c0_210 = arith.constant 0 : index
    %c0_211 = arith.constant 0 : index
    %489 = vector.load %arg16[%488, %c0_210, %c0_211] : memref<8x8x512xf32, #tpu.memory_space<vmem>>, vector<1x8x512xf32>
    %490 = vector.shape_cast %489 : vector<1x8x512xf32> to vector<8x512xf32>
    %491 = arith.truncf %487 : vector<8x128xf32> to vector<8x128xbf16>
    %c1_212 = arith.constant 1 : index
    %c0_213 = arith.constant 0 : index
    %c0_214 = arith.constant 0 : index
    %492 = vector.load %arg6[%c1_212, %c0_213, %c0_214] : memref<2x128x512xbf16, #tpu.memory_space<vmem>>, vector<1x128x512xbf16>
    %493 = vector.shape_cast %492 : vector<1x128x512xbf16> to vector<128x512xbf16>
    %cst_215 = arith.constant dense<0.000000e+00> : vector<8x512xf32>
    %494 = tpu.matmul %491, %493, %cst_215 {dimension_numbers = #tpu.dot_dimension_numbers<[1], [0], [0], [1], [0, 0, 1, 1], [], []>} : vector<8x128xbf16>, vector<128x512xbf16>, vector<8x512xf32> -> vector<8x512xf32>
    %495 = arith.addf %490, %494 : vector<8x512xf32>
    %496 = vector.extract_strided_slice %495 {offsets = [0, 0], sizes = [8, 128], strides = [1, 1]} : vector<8x512xf32> to vector<8x128xf32>
    %cst_216 = arith.constant 5.000000e-01 : f32
    %497 = vector.broadcast %cst_216 : f32 to vector<8x128xf32>
    %498 = arith.mulf %497, %496 : vector<8x128xf32>
    %499 = math.tanh %498 : vector<8x128xf32>
    %cst_217 = arith.constant 5.000000e-01 : f32
    %500 = vector.broadcast %cst_217 : f32 to vector<8x128xf32>
    %501 = arith.mulf %500, %499 : vector<8x128xf32>
    %cst_218 = arith.constant 5.000000e-01 : f32
    %502 = vector.broadcast %cst_218 : f32 to vector<8x128xf32>
    %503 = arith.addf %501, %502 : vector<8x128xf32>
    %504 = vector.extract_strided_slice %495 {offsets = [0, 128], sizes = [8, 128], strides = [1, 1]} : vector<8x512xf32> to vector<8x128xf32>
    %cst_219 = arith.constant 5.000000e-01 : f32
    %505 = vector.broadcast %cst_219 : f32 to vector<8x128xf32>
    %506 = arith.mulf %505, %504 : vector<8x128xf32>
    %507 = math.tanh %506 : vector<8x128xf32>
    %cst_220 = arith.constant 5.000000e-01 : f32
    %508 = vector.broadcast %cst_220 : f32 to vector<8x128xf32>
    %509 = arith.mulf %508, %507 : vector<8x128xf32>
    %cst_221 = arith.constant 5.000000e-01 : f32
    %510 = vector.broadcast %cst_221 : f32 to vector<8x128xf32>
    %511 = arith.addf %509, %510 : vector<8x128xf32>
    %512 = vector.extract_strided_slice %495 {offsets = [0, 256], sizes = [8, 128], strides = [1, 1]} : vector<8x512xf32> to vector<8x128xf32>
    %513 = math.tanh %512 : vector<8x128xf32>
    %514 = vector.extract_strided_slice %495 {offsets = [0, 384], sizes = [8, 128], strides = [1, 1]} : vector<8x512xf32> to vector<8x128xf32>
    %cst_222 = arith.constant 5.000000e-01 : f32
    %515 = vector.broadcast %cst_222 : f32 to vector<8x128xf32>
    %516 = arith.mulf %515, %514 : vector<8x128xf32>
    %517 = math.tanh %516 : vector<8x128xf32>
    %cst_223 = arith.constant 5.000000e-01 : f32
    %518 = vector.broadcast %cst_223 : f32 to vector<8x128xf32>
    %519 = arith.mulf %518, %517 : vector<8x128xf32>
    %cst_224 = arith.constant 5.000000e-01 : f32
    %520 = vector.broadcast %cst_224 : f32 to vector<8x128xf32>
    %521 = arith.addf %519, %520 : vector<8x128xf32>
    %522 = arith.mulf %511, %485 : vector<8x128xf32>
    %523 = arith.mulf %503, %513 : vector<8x128xf32>
    %524 = arith.addf %522, %523 : vector<8x128xf32>
    %525 = math.tanh %524 : vector<8x128xf32>
    %526 = arith.mulf %521, %525 : vector<8x128xf32>
    %c4_i32_225 = arith.constant 4 : i32
    %527 = arith.index_cast %c4_i32_225 : i32 to index
    %c0_226 = arith.constant 0 : index
    %c0_227 = arith.constant 0 : index
    %528 = vector.load %arg16[%527, %c0_226, %c0_227] : memref<8x8x512xf32, #tpu.memory_space<vmem>>, vector<1x8x512xf32>
    %529 = vector.shape_cast %528 : vector<1x8x512xf32> to vector<8x512xf32>
    %530 = arith.truncf %526 : vector<8x128xf32> to vector<8x128xbf16>
    %c1_228 = arith.constant 1 : index
    %c0_229 = arith.constant 0 : index
    %c0_230 = arith.constant 0 : index
    %531 = vector.load %arg6[%c1_228, %c0_229, %c0_230] : memref<2x128x512xbf16, #tpu.memory_space<vmem>>, vector<1x128x512xbf16>
    %532 = vector.shape_cast %531 : vector<1x128x512xbf16> to vector<128x512xbf16>
    %cst_231 = arith.constant dense<0.000000e+00> : vector<8x512xf32>
    %533 = tpu.matmul %530, %532, %cst_231 {dimension_numbers = #tpu.dot_dimension_numbers<[1], [0], [0], [1], [0, 0, 1, 1], [], []>} : vector<8x128xbf16>, vector<128x512xbf16>, vector<8x512xf32> -> vector<8x512xf32>
    %534 = arith.addf %529, %533 : vector<8x512xf32>
    %535 = vector.extract_strided_slice %534 {offsets = [0, 0], sizes = [8, 128], strides = [1, 1]} : vector<8x512xf32> to vector<8x128xf32>
    %cst_232 = arith.constant 5.000000e-01 : f32
    %536 = vector.broadcast %cst_232 : f32 to vector<8x128xf32>
    %537 = arith.mulf %536, %535 : vector<8x128xf32>
    %538 = math.tanh %537 : vector<8x128xf32>
    %cst_233 = arith.constant 5.000000e-01 : f32
    %539 = vector.broadcast %cst_233 : f32 to vector<8x128xf32>
    %540 = arith.mulf %539, %538 : vector<8x128xf32>
    %cst_234 = arith.constant 5.000000e-01 : f32
    %541 = vector.broadcast %cst_234 : f32 to vector<8x128xf32>
    %542 = arith.addf %540, %541 : vector<8x128xf32>
    %543 = vector.extract_strided_slice %534 {offsets = [0, 128], sizes = [8, 128], strides = [1, 1]} : vector<8x512xf32> to vector<8x128xf32>
    %cst_235 = arith.constant 5.000000e-01 : f32
    %544 = vector.broadcast %cst_235 : f32 to vector<8x128xf32>
    %545 = arith.mulf %544, %543 : vector<8x128xf32>
    %546 = math.tanh %545 : vector<8x128xf32>
    %cst_236 = arith.constant 5.000000e-01 : f32
    %547 = vector.broadcast %cst_236 : f32 to vector<8x128xf32>
    %548 = arith.mulf %547, %546 : vector<8x128xf32>
    %cst_237 = arith.constant 5.000000e-01 : f32
    %549 = vector.broadcast %cst_237 : f32 to vector<8x128xf32>
    %550 = arith.addf %548, %549 : vector<8x128xf32>
    %551 = vector.extract_strided_slice %534 {offsets = [0, 256], sizes = [8, 128], strides = [1, 1]} : vector<8x512xf32> to vector<8x128xf32>
    %552 = math.tanh %551 : vector<8x128xf32>
    %553 = vector.extract_strided_slice %534 {offsets = [0, 384], sizes = [8, 128], strides = [1, 1]} : vector<8x512xf32> to vector<8x128xf32>
    %cst_238 = arith.constant 5.000000e-01 : f32
    %554 = vector.broadcast %cst_238 : f32 to vector<8x128xf32>
    %555 = arith.mulf %554, %553 : vector<8x128xf32>
    %556 = math.tanh %555 : vector<8x128xf32>
    %cst_239 = arith.constant 5.000000e-01 : f32
    %557 = vector.broadcast %cst_239 : f32 to vector<8x128xf32>
    %558 = arith.mulf %557, %556 : vector<8x128xf32>
    %cst_240 = arith.constant 5.000000e-01 : f32
    %559 = vector.broadcast %cst_240 : f32 to vector<8x128xf32>
    %560 = arith.addf %558, %559 : vector<8x128xf32>
    %561 = arith.mulf %550, %524 : vector<8x128xf32>
    %562 = arith.mulf %542, %552 : vector<8x128xf32>
    %563 = arith.addf %561, %562 : vector<8x128xf32>
    %564 = math.tanh %563 : vector<8x128xf32>
    %565 = arith.mulf %560, %564 : vector<8x128xf32>
    %c5_i32_241 = arith.constant 5 : i32
    %566 = arith.index_cast %c5_i32_241 : i32 to index
    %c0_242 = arith.constant 0 : index
    %c0_243 = arith.constant 0 : index
    %567 = vector.load %arg16[%566, %c0_242, %c0_243] : memref<8x8x512xf32, #tpu.memory_space<vmem>>, vector<1x8x512xf32>
    %568 = vector.shape_cast %567 : vector<1x8x512xf32> to vector<8x512xf32>
    %569 = arith.truncf %565 : vector<8x128xf32> to vector<8x128xbf16>
    %c1_244 = arith.constant 1 : index
    %c0_245 = arith.constant 0 : index
    %c0_246 = arith.constant 0 : index
    %570 = vector.load %arg6[%c1_244, %c0_245, %c0_246] : memref<2x128x512xbf16, #tpu.memory_space<vmem>>, vector<1x128x512xbf16>
    %571 = vector.shape_cast %570 : vector<1x128x512xbf16> to vector<128x512xbf16>
    %cst_247 = arith.constant dense<0.000000e+00> : vector<8x512xf32>
    %572 = tpu.matmul %569, %571, %cst_247 {dimension_numbers = #tpu.dot_dimension_numbers<[1], [0], [0], [1], [0, 0, 1, 1], [], []>} : vector<8x128xbf16>, vector<128x512xbf16>, vector<8x512xf32> -> vector<8x512xf32>
    %573 = arith.addf %568, %572 : vector<8x512xf32>
    %574 = vector.extract_strided_slice %573 {offsets = [0, 0], sizes = [8, 128], strides = [1, 1]} : vector<8x512xf32> to vector<8x128xf32>
    %cst_248 = arith.constant 5.000000e-01 : f32
    %575 = vector.broadcast %cst_248 : f32 to vector<8x128xf32>
    %576 = arith.mulf %575, %574 : vector<8x128xf32>
    %577 = math.tanh %576 : vector<8x128xf32>
    %cst_249 = arith.constant 5.000000e-01 : f32
    %578 = vector.broadcast %cst_249 : f32 to vector<8x128xf32>
    %579 = arith.mulf %578, %577 : vector<8x128xf32>
    %cst_250 = arith.constant 5.000000e-01 : f32
    %580 = vector.broadcast %cst_250 : f32 to vector<8x128xf32>
    %581 = arith.addf %579, %580 : vector<8x128xf32>
    %582 = vector.extract_strided_slice %573 {offsets = [0, 128], sizes = [8, 128], strides = [1, 1]} : vector<8x512xf32> to vector<8x128xf32>
    %cst_251 = arith.constant 5.000000e-01 : f32
    %583 = vector.broadcast %cst_251 : f32 to vector<8x128xf32>
    %584 = arith.mulf %583, %582 : vector<8x128xf32>
    %585 = math.tanh %584 : vector<8x128xf32>
    %cst_252 = arith.constant 5.000000e-01 : f32
    %586 = vector.broadcast %cst_252 : f32 to vector<8x128xf32>
    %587 = arith.mulf %586, %585 : vector<8x128xf32>
    %cst_253 = arith.constant 5.000000e-01 : f32
    %588 = vector.broadcast %cst_253 : f32 to vector<8x128xf32>
    %589 = arith.addf %587, %588 : vector<8x128xf32>
    %590 = vector.extract_strided_slice %573 {offsets = [0, 256], sizes = [8, 128], strides = [1, 1]} : vector<8x512xf32> to vector<8x128xf32>
    %591 = math.tanh %590 : vector<8x128xf32>
    %592 = vector.extract_strided_slice %573 {offsets = [0, 384], sizes = [8, 128], strides = [1, 1]} : vector<8x512xf32> to vector<8x128xf32>
    %cst_254 = arith.constant 5.000000e-01 : f32
    %593 = vector.broadcast %cst_254 : f32 to vector<8x128xf32>
    %594 = arith.mulf %593, %592 : vector<8x128xf32>
    %595 = math.tanh %594 : vector<8x128xf32>
    %cst_255 = arith.constant 5.000000e-01 : f32
    %596 = vector.broadcast %cst_255 : f32 to vector<8x128xf32>
    %597 = arith.mulf %596, %595 : vector<8x128xf32>
    %cst_256 = arith.constant 5.000000e-01 : f32
    %598 = vector.broadcast %cst_256 : f32 to vector<8x128xf32>
    %599 = arith.addf %597, %598 : vector<8x128xf32>
    %600 = arith.mulf %589, %563 : vector<8x128xf32>
    %601 = arith.mulf %581, %591 : vector<8x128xf32>
    %602 = arith.addf %600, %601 : vector<8x128xf32>
    %603 = math.tanh %602 : vector<8x128xf32>
    %604 = arith.mulf %599, %603 : vector<8x128xf32>
    %c6_i32_257 = arith.constant 6 : i32
    %605 = arith.index_cast %c6_i32_257 : i32 to index
    %c0_258 = arith.constant 0 : index
    %c0_259 = arith.constant 0 : index
    %606 = vector.load %arg16[%605, %c0_258, %c0_259] : memref<8x8x512xf32, #tpu.memory_space<vmem>>, vector<1x8x512xf32>
    %607 = vector.shape_cast %606 : vector<1x8x512xf32> to vector<8x512xf32>
    %608 = arith.truncf %604 : vector<8x128xf32> to vector<8x128xbf16>
    %c1_260 = arith.constant 1 : index
    %c0_261 = arith.constant 0 : index
    %c0_262 = arith.constant 0 : index
    %609 = vector.load %arg6[%c1_260, %c0_261, %c0_262] : memref<2x128x512xbf16, #tpu.memory_space<vmem>>, vector<1x128x512xbf16>
    %610 = vector.shape_cast %609 : vector<1x128x512xbf16> to vector<128x512xbf16>
    %cst_263 = arith.constant dense<0.000000e+00> : vector<8x512xf32>
    %611 = tpu.matmul %608, %610, %cst_263 {dimension_numbers = #tpu.dot_dimension_numbers<[1], [0], [0], [1], [0, 0, 1, 1], [], []>} : vector<8x128xbf16>, vector<128x512xbf16>, vector<8x512xf32> -> vector<8x512xf32>
    %612 = arith.addf %607, %611 : vector<8x512xf32>
    %613 = vector.extract_strided_slice %612 {offsets = [0, 0], sizes = [8, 128], strides = [1, 1]} : vector<8x512xf32> to vector<8x128xf32>
    %cst_264 = arith.constant 5.000000e-01 : f32
    %614 = vector.broadcast %cst_264 : f32 to vector<8x128xf32>
    %615 = arith.mulf %614, %613 : vector<8x128xf32>
    %616 = math.tanh %615 : vector<8x128xf32>
    %cst_265 = arith.constant 5.000000e-01 : f32
    %617 = vector.broadcast %cst_265 : f32 to vector<8x128xf32>
    %618 = arith.mulf %617, %616 : vector<8x128xf32>
    %cst_266 = arith.constant 5.000000e-01 : f32
    %619 = vector.broadcast %cst_266 : f32 to vector<8x128xf32>
    %620 = arith.addf %618, %619 : vector<8x128xf32>
    %621 = vector.extract_strided_slice %612 {offsets = [0, 128], sizes = [8, 128], strides = [1, 1]} : vector<8x512xf32> to vector<8x128xf32>
    %cst_267 = arith.constant 5.000000e-01 : f32
    %622 = vector.broadcast %cst_267 : f32 to vector<8x128xf32>
    %623 = arith.mulf %622, %621 : vector<8x128xf32>
    %624 = math.tanh %623 : vector<8x128xf32>
    %cst_268 = arith.constant 5.000000e-01 : f32
    %625 = vector.broadcast %cst_268 : f32 to vector<8x128xf32>
    %626 = arith.mulf %625, %624 : vector<8x128xf32>
    %cst_269 = arith.constant 5.000000e-01 : f32
    %627 = vector.broadcast %cst_269 : f32 to vector<8x128xf32>
    %628 = arith.addf %626, %627 : vector<8x128xf32>
    %629 = vector.extract_strided_slice %612 {offsets = [0, 256], sizes = [8, 128], strides = [1, 1]} : vector<8x512xf32> to vector<8x128xf32>
    %630 = math.tanh %629 : vector<8x128xf32>
    %631 = vector.extract_strided_slice %612 {offsets = [0, 384], sizes = [8, 128], strides = [1, 1]} : vector<8x512xf32> to vector<8x128xf32>
    %cst_270 = arith.constant 5.000000e-01 : f32
    %632 = vector.broadcast %cst_270 : f32 to vector<8x128xf32>
    %633 = arith.mulf %632, %631 : vector<8x128xf32>
    %634 = math.tanh %633 : vector<8x128xf32>
    %cst_271 = arith.constant 5.000000e-01 : f32
    %635 = vector.broadcast %cst_271 : f32 to vector<8x128xf32>
    %636 = arith.mulf %635, %634 : vector<8x128xf32>
    %cst_272 = arith.constant 5.000000e-01 : f32
    %637 = vector.broadcast %cst_272 : f32 to vector<8x128xf32>
    %638 = arith.addf %636, %637 : vector<8x128xf32>
    %639 = arith.mulf %628, %602 : vector<8x128xf32>
    %640 = arith.mulf %620, %630 : vector<8x128xf32>
    %641 = arith.addf %639, %640 : vector<8x128xf32>
    %642 = math.tanh %641 : vector<8x128xf32>
    %643 = arith.mulf %638, %642 : vector<8x128xf32>
    %c7_i32_273 = arith.constant 7 : i32
    %644 = arith.index_cast %c7_i32_273 : i32 to index
    %c0_274 = arith.constant 0 : index
    %c0_275 = arith.constant 0 : index
    %645 = vector.load %arg16[%644, %c0_274, %c0_275] : memref<8x8x512xf32, #tpu.memory_space<vmem>>, vector<1x8x512xf32>
    %646 = vector.shape_cast %645 : vector<1x8x512xf32> to vector<8x512xf32>
    %647 = arith.truncf %643 : vector<8x128xf32> to vector<8x128xbf16>
    %c1_276 = arith.constant 1 : index
    %c0_277 = arith.constant 0 : index
    %c0_278 = arith.constant 0 : index
    %648 = vector.load %arg6[%c1_276, %c0_277, %c0_278] : memref<2x128x512xbf16, #tpu.memory_space<vmem>>, vector<1x128x512xbf16>
    %649 = vector.shape_cast %648 : vector<1x128x512xbf16> to vector<128x512xbf16>
    %cst_279 = arith.constant dense<0.000000e+00> : vector<8x512xf32>
    %650 = tpu.matmul %647, %649, %cst_279 {dimension_numbers = #tpu.dot_dimension_numbers<[1], [0], [0], [1], [0, 0, 1, 1], [], []>} : vector<8x128xbf16>, vector<128x512xbf16>, vector<8x512xf32> -> vector<8x512xf32>
    %651 = arith.addf %646, %650 : vector<8x512xf32>
    %652 = vector.extract_strided_slice %651 {offsets = [0, 0], sizes = [8, 128], strides = [1, 1]} : vector<8x512xf32> to vector<8x128xf32>
    %cst_280 = arith.constant 5.000000e-01 : f32
    %653 = vector.broadcast %cst_280 : f32 to vector<8x128xf32>
    %654 = arith.mulf %653, %652 : vector<8x128xf32>
    %655 = math.tanh %654 : vector<8x128xf32>
    %cst_281 = arith.constant 5.000000e-01 : f32
    %656 = vector.broadcast %cst_281 : f32 to vector<8x128xf32>
    %657 = arith.mulf %656, %655 : vector<8x128xf32>
    %cst_282 = arith.constant 5.000000e-01 : f32
    %658 = vector.broadcast %cst_282 : f32 to vector<8x128xf32>
    %659 = arith.addf %657, %658 : vector<8x128xf32>
    %660 = vector.extract_strided_slice %651 {offsets = [0, 128], sizes = [8, 128], strides = [1, 1]} : vector<8x512xf32> to vector<8x128xf32>
    %cst_283 = arith.constant 5.000000e-01 : f32
    %661 = vector.broadcast %cst_283 : f32 to vector<8x128xf32>
    %662 = arith.mulf %661, %660 : vector<8x128xf32>
    %663 = math.tanh %662 : vector<8x128xf32>
    %cst_284 = arith.constant 5.000000e-01 : f32
    %664 = vector.broadcast %cst_284 : f32 to vector<8x128xf32>
    %665 = arith.mulf %664, %663 : vector<8x128xf32>
    %cst_285 = arith.constant 5.000000e-01 : f32
    %666 = vector.broadcast %cst_285 : f32 to vector<8x128xf32>
    %667 = arith.addf %665, %666 : vector<8x128xf32>
    %668 = vector.extract_strided_slice %651 {offsets = [0, 256], sizes = [8, 128], strides = [1, 1]} : vector<8x512xf32> to vector<8x128xf32>
    %669 = math.tanh %668 : vector<8x128xf32>
    %670 = vector.extract_strided_slice %651 {offsets = [0, 384], sizes = [8, 128], strides = [1, 1]} : vector<8x512xf32> to vector<8x128xf32>
    %cst_286 = arith.constant 5.000000e-01 : f32
    %671 = vector.broadcast %cst_286 : f32 to vector<8x128xf32>
    %672 = arith.mulf %671, %670 : vector<8x128xf32>
    %673 = math.tanh %672 : vector<8x128xf32>
    %cst_287 = arith.constant 5.000000e-01 : f32
    %674 = vector.broadcast %cst_287 : f32 to vector<8x128xf32>
    %675 = arith.mulf %674, %673 : vector<8x128xf32>
    %cst_288 = arith.constant 5.000000e-01 : f32
    %676 = vector.broadcast %cst_288 : f32 to vector<8x128xf32>
    %677 = arith.addf %675, %676 : vector<8x128xf32>
    %678 = arith.mulf %667, %641 : vector<8x128xf32>
    %679 = arith.mulf %659, %669 : vector<8x128xf32>
    %680 = arith.addf %678, %679 : vector<8x128xf32>
    %681 = math.tanh %680 : vector<8x128xf32>
    %682 = arith.mulf %677, %681 : vector<8x128xf32>
    %c8_i32_289 = arith.constant 8 : i32
    %c0_290 = arith.constant 0 : index
    %c0_291 = arith.constant 0 : index
    %683 = vector.load %arg1[%c0_290, %c0_291] : memref<8x128xbf16, #tpu.memory_space<vmem>>, vector<8x128xbf16>
    %c0_292 = arith.constant 0 : index
    %c0_293 = arith.constant 0 : index
    %684 = vector.load %arg2[%c0_292, %c0_293] : memref<128x128xbf16, #tpu.memory_space<vmem>>, vector<128x128xbf16>
    %cst_294 = arith.constant dense<0.000000e+00> : vector<8x128xf32>
    %685 = tpu.matmul %683, %684, %cst_294 {dimension_numbers = #tpu.dot_dimension_numbers<[1], [0], [0], [1], [0, 0, 1, 1], [], []>} : vector<8x128xbf16>, vector<128x128xbf16>, vector<8x128xf32> -> vector<8x128xf32>
    %c0_295 = arith.constant 0 : index
    %c0_296 = arith.constant 0 : index
    %686 = vector.load %arg3[%c0_295, %c0_296] : memref<8x128xf32, #tpu.memory_space<vmem>>, vector<8x128xf32>
    %687 = arith.addf %685, %686 : vector<8x128xf32>
    %cst_297 = arith.constant 0.000000e+00 : f32
    %688 = vector.broadcast %cst_297 : f32 to vector<8x128xf32>
    %689 = arith.maximumf %687, %688 : vector<8x128xf32>
    %690 = arith.truncf %689 : vector<8x128xf32> to vector<8x128xbf16>
    %c0_298 = arith.constant 0 : index
    %c0_299 = arith.constant 0 : index
    %691 = vector.load %arg8[%c0_298, %c0_299] : memref<128x128xbf16, #tpu.memory_space<vmem>>, vector<128x128xbf16>
    %cst_300 = arith.constant dense<0.000000e+00> : vector<8x128xf32>
    %692 = tpu.matmul %690, %691, %cst_300 {dimension_numbers = #tpu.dot_dimension_numbers<[1], [0], [0], [1], [0, 0, 1, 1], [], []>} : vector<8x128xbf16>, vector<128x128xbf16>, vector<8x128xf32> -> vector<8x128xf32>
    %693 = arith.truncf %682 : vector<8x128xf32> to vector<8x128xbf16>
    %c0_301 = arith.constant 0 : index
    %c0_302 = arith.constant 0 : index
    %694 = vector.load %arg9[%c0_301, %c0_302] : memref<128x128xbf16, #tpu.memory_space<vmem>>, vector<128x128xbf16>
    %cst_303 = arith.constant dense<0.000000e+00> : vector<8x128xf32>
    %695 = tpu.matmul %693, %694, %cst_303 {dimension_numbers = #tpu.dot_dimension_numbers<[1], [0], [0], [1], [0, 0, 1, 1], [], []>} : vector<8x128xbf16>, vector<128x128xbf16>, vector<8x128xf32> -> vector<8x128xf32>
    %696 = arith.addf %692, %695 : vector<8x128xf32>
    %c0_304 = arith.constant 0 : index
    %c0_305 = arith.constant 0 : index
    %697 = vector.load %arg10[%c0_304, %c0_305] : memref<8x128xf32, #tpu.memory_space<vmem>>, vector<8x128xf32>
    %698 = arith.addf %696, %697 : vector<8x128xf32>
    %cst_306 = arith.constant 0.000000e+00 : f32
    %699 = vector.broadcast %cst_306 : f32 to vector<8x128xf32>
    %700 = arith.maximumf %698, %699 : vector<8x128xf32>
    %c0_307 = arith.constant 0 : index
    %c0_308 = arith.constant 0 : index
    %701 = vector.load %arg14[%c0_307, %c0_308] : memref<8x128xf32, #tpu.memory_space<vmem>>, vector<8x128xf32>
    tpu.vector_store %arg14[%c0_307, %c0_308], %700 {strides = array<i32>} : memref<8x128xf32, #tpu.memory_space<vmem>>, vector<8x128xf32>,
    %702 = arith.truncf %700 : vector<8x128xf32> to vector<8x128xbf16>
    %c0_309 = arith.constant 0 : index
    %c0_310 = arith.constant 0 : index
    %703 = vector.load %arg11[%c0_309, %c0_310] : memref<128x128xbf16, #tpu.memory_space<vmem>>, vector<128x128xbf16>
    %cst_311 = arith.constant dense<0.000000e+00> : vector<8x128xf32>
    %704 = tpu.matmul %702, %703, %cst_311 {dimension_numbers = #tpu.dot_dimension_numbers<[1], [0], [0], [1], [0, 0, 1, 1], [], []>} : vector<8x128xbf16>, vector<128x128xbf16>, vector<8x128xf32> -> vector<8x128xf32>
    %c0_312 = arith.constant 0 : index
    %c0_313 = arith.constant 0 : index
    %705 = vector.load %arg12[%c0_312, %c0_313] : memref<8x128xf32, #tpu.memory_space<vmem>>, vector<8x128xf32>
    %706 = arith.addf %704, %705 : vector<8x128xf32>
    %c0_314 = arith.constant 0 : index
    %c0_315 = arith.constant 0 : index
    %707 = vector.load %arg13[%c0_314, %c0_315] : memref<8x128xf32, #tpu.memory_space<vmem>>, vector<8x128xf32>
    tpu.vector_store %arg13[%c0_314, %c0_315], %706 {strides = array<i32>} : memref<8x128xf32, #tpu.memory_space<vmem>>, vector<8x128xf32>,
    return
  }
}

</mosaic_0001>

<bundles_post_ra>
// kernel: tpu_custom_call.1
= control target key start
LH: loop header
LB: loop body
LE: loop exit
PB: predicated region body
PF: predicated region fallthrough
CT: control target
= control target key end

     0   :  { %20 = vsyncpa [#allocation5], 0  ;;  %s7726_s0 = inlined_call_operand.hbm [shape: bf16[64,128], index: 0, kind: input, shape index: {}]   ;;  %s7727_s1 = inlined_call_operand.hbm [shape: bf16[8,128], index: 1, kind: input, shape index: {}]   ;;  %s7728_s2 = inlined_call_operand.hbm [shape: bf16[128,128], index: 2, kind: input, shape index: {}]   ;;  %s7729_s3 = inlined_call_operand.hbm [shape: f32[8,128], index: 3, kind: input, shape index: {}]   ;;  %s7730_s4 = inlined_call_operand.hbm [shape: bf16[128,512], index: 4, kind: input, shape index: {}]   ;;  %s7731_s5 = inlined_call_operand.hbm [shape: bf16[1,128,512], index: 5, kind: input, shape index: {}]   ;;  %s7732_s6 = inlined_call_operand.hbm [shape: bf16[2,128,512], index: 6, kind: input, shape index: {}]   ;;  %s7733_s7 = inlined_call_operand.hbm [shape: f32[2,8,512], index: 7, kind: input, shape index: {}]   ;;  %s7734_s8 = inlined_call_operand.hbm [shape: bf16[128,128], index: 8, kind: input, shape index: {}]   ;;  %s7735_s9 = inlined_call_operand.hbm [shape: bf16[128,128], index: 9, kind: input, shape index: {}]   ;;  %s7736_s10 = inlined_call_operand.vmem [shape: f32[8,128], index: 10, kind: input, shape index: {}]   ;;  %s7737_s11 = inlined_call_operand.hbm [shape: bf16[128,128], index: 11, kind: input, shape index: {}]   ;;  %s7738_s12 = inlined_call_operand.hbm [shape: f32[8,128], index: 12, kind: input, shape index: {}]   ;;  %s7739_s13 = inlined_call_operand.hbm [shape: f32[8,128], index: 13, kind: output, shape index: {0}]   ;;  %s7740_s14 = inlined_call_operand.hbm [shape: f32[8,128], index: 14, kind: output, shape index: {1}]  }
   0x1   :  { %21 = vsyncpa [#allocation8], 0 }
   0x2   :  { %22 = vsyncpa [#allocation11], 0 }
   0x3   :  { %23 = vsyncpa [#allocation14], 0 }
   0x4   :  { %24 = vsyncpa [#allocation17], 0 }
   0x5   :  { %25 = vsyncpa [#allocation20], 0 }
   0x6   :  { %26 = vsyncpa [#allocation23], 0 }
   0x7   :  { %27 = vsyncpa [#allocation6], 0  ;;  %s47_s15 = sshll.u32 %s7727_s1, 4  ;;  %s48_s15 = int_to_ptr.hbm [resolvable:$true] %s47_s15 }
   0x8   :  { %28 = vsyncpa [#allocation26], 0  ;;  %s6886_s16 = smov [#allocation7]   ;;  %s71_s20 = sshll.u32 %s7729_s3, 4  ;;  %s72_s20 = int_to_ptr.hbm [resolvable:$true] %s71_s20 }
   0x9   :  { %s49_s17 = sshll.u32 %s6886_s16, 4  ;;  %s6887_s21 = smov [#allocation10]   ;;  %s50_s17 = int_to_ptr.vmem [resolvable:$true] %s49_s17 }
   0xa   :  { %52 = dma.hbm_to_vmem [thread:$0]  %s48_s15, 64, %s50_s17, [#allocation8]  }
   0xb   :  { %s73_s22 = sshll.u32 %s6887_s21, 4  ;;  %s94_s25 = sshll.u32 %s7731_s5, 4  ;;  %s74_s22 = int_to_ptr.vmem [resolvable:$true] %s73_s22  ;;  %s95_s25 = int_to_ptr.hbm [resolvable:$true] %s94_s25 }
   0xc   :  { %76 = dma.hbm_to_vmem [thread:$0]  %s72_s20, 128, %s74_s22, [#allocation11]  }
   0xd   :  { %s6888_s1 = smov [#allocation13]   ;;  %s120_s29 = sshll.u32 %s7733_s7, 4  ;;  %s121_s29 = int_to_ptr.hbm [resolvable:$true] %s120_s29 }
   0xe   :  { %s96_s26 = sshll.u32 %s6888_s1, 4  ;;  %s6889_s30 = smov 256   ;;  %s97_s26 = int_to_ptr.vmem [resolvable:$true] %s96_s26 }
   0xf   :  { %s6890_s3 = smov 16   ;;  %s6891_s15 = smov [#allocation16]  }
  0x10   :  { %102 = dma.hbm_to_vmem [thread:$0]  %s95_s25, 4096, %s97_s26, [#allocation14], %s6889_s30, %s6889_s30, %s6890_s3  }
  0x11   :  { %s122_s16 = sshll.u32 %s6891_s15, 4  ;;  %s6892_s17 = smov 512   ;;  %s123_s16 = int_to_ptr.vmem [resolvable:$true] %s122_s16 }
  0x12   :  { %s6893_s5 = smov 32   ;;  %s146_s20 = sshll.u32 %s7735_s9, 4  ;;  %s147_s20 = int_to_ptr.hbm [resolvable:$true] %s146_s20 }
  0x13   :  { %128 = dma.hbm_to_vmem [thread:$0]  %s121_s29, 1024, %s123_s16, [#allocation17], %s6892_s17, %s6892_s17, %s6893_s5  }
  0x14   :  { %s6894_s21 = smov [#allocation19]   ;;  %s33_s24 = sshll.u32 %s7726_s0, 4  ;;  %s34_s24 = int_to_ptr.hbm [resolvable:$true] %s33_s24 }
  0x15   :  { %s148_s7 = sshll.u32 %s6894_s21, 4  ;;  %s6895_s25 = smov 64   ;;  %s149_s7 = int_to_ptr.vmem [resolvable:$true] %s148_s7 }
  0x16   :  { %s6896_s1 = smov 4   ;;  %s6897_s26 = smov [#allocation4]  }
  0x17   :  { %154 = dma.hbm_to_vmem [thread:$0]  %s147_s20, 1024, %s149_s7, [#allocation20], %s6895_s25, %s6895_s25, %s6896_s1  }
  0x18   :  { %s35_s27 = sshll.u32 %s6897_s26, 4  ;;  %s57_s9 = sshll.u32 %s7728_s2, 4  ;;  %s36_s27 = int_to_ptr.vmem [resolvable:$true] %s35_s27  ;;  %s58_s9 = int_to_ptr.hbm [resolvable:$true] %s57_s9 }
  0x19   :  { %41 = dma.hbm_to_vmem [thread:$0]  %s34_s24, 512, %s36_s27, [#allocation5], %s6895_s25, %s6895_s25, %s6896_s1  }
  0x1a   :  { %s81_s16 = sshll.u32 %s7730_s4, 4  ;;  %s6898_s17 = smov [#allocation9]   ;;  %s82_s16 = int_to_ptr.hbm [resolvable:$true] %s81_s16 }
  0x1b   :  { %s59_s5 = sshll.u32 %s6898_s17, 4  ;;  %s6899_s18 = smov [#allocation12]   ;;  %s60_s5 = int_to_ptr.vmem [resolvable:$true] %s59_s5 }
  0x1c   :  { %65 = dma.hbm_to_vmem [thread:$0]  %s58_s9, 1024, %s60_s5, [#allocation8], %s6895_s25, %s6895_s25, %s6896_s1  }
  0x1d   :  { %s83_s2 = sshll.u32 %s6899_s18, 4  ;;  %s107_s21 = sshll.u32 %s7732_s6, 4  ;;  %s84_s2 = int_to_ptr.vmem [resolvable:$true] %s83_s2  ;;  %s108_s21 = int_to_ptr.hbm [resolvable:$true] %s107_s21 }
  0x1e   :  { %89 = dma.hbm_to_vmem [thread:$0]  %s82_s16, 4096, %s84_s2, [#allocation11], %s6889_s30, %s6889_s30, %s6890_s3  }
  0x1f   :  { %s133_s22 = sshll.u32 %s7734_s8, 4  ;;  %s6900_s23 = smov [#allocation15]   ;;  %s134_s22 = int_to_ptr.hbm [resolvable:$true] %s133_s22 }
  0x20   :  { %s109_s24 = sshll.u32 %s6900_s23, 4  ;;  %s6901_s26 = smov [#allocation18]   ;;  %s110_s24 = int_to_ptr.vmem [resolvable:$true] %s109_s24 }
  0x21   :  { %115 = dma.hbm_to_vmem [thread:$0]  %s108_s21, 8192, %s110_s24, [#allocation14], %s6889_s30, %s6889_s30, %s6890_s3  }
  0x22   :  { %s135_s6 = sshll.u32 %s6901_s26, 4  ;;  %s161_s29 = sshll.u32 %s7737_s11, 4  ;;  %s136_s6 = int_to_ptr.vmem [resolvable:$true] %s135_s6  ;;  %s162_s29 = int_to_ptr.hbm [resolvable:$true] %s161_s29 }
  0x23   :  { %141 = dma.hbm_to_vmem [thread:$0]  %s134_s22, 1024, %s136_s6, [#allocation17], %s6895_s25, %s6895_s25, %s6896_s1  }
  0x24   :  { %s175_s0 = sshll.u32 %s7738_s12, 4  ;;  %s6902_s15 = smov [#allocation21]   ;;  %s176_s0 = int_to_ptr.hbm [resolvable:$true] %s175_s0 }
  0x25   :  { %s163_s16 = sshll.u32 %s6902_s15, 4  ;;  %s6903_s30 = smov [#allocation22]   ;;  %s164_s16 = int_to_ptr.vmem [resolvable:$true] %s163_s16 }
  0x26   :  { %169 = dma.hbm_to_vmem [thread:$0]  %s162_s29, 1024, %s164_s16, [#allocation20], %s6895_s25, %s6895_s25, %s6896_s1  }
  0x27   :  { %s177_s11 = sshll.u32 %s6903_s30, 4  ;;  %s178_s11 = int_to_ptr.vmem [resolvable:$true] %s177_s11 }
  0x28   :  { %180 = dma.hbm_to_vmem [thread:$0]  %s176_s0, 128, %s178_s11, [#allocation23]  }
  0x29   :  { %6868 = dma.done.wait [#allocation5], 512  }
  0x2a   :  { %6869 = vsyncadd [#allocation5], 4294966784 }
  0x2b   :  { %6870 = dma.done.wait [#allocation8], 1088  }
  0x2c   :  { %6871 = vsyncadd [#allocation8], 4294966208 }
  0x2d   :  { %6872 = dma.done.wait [#allocation11], 4224  }
  0x2e   :  { %6873 = vsyncadd [#allocation11], 4294963072 }
  0x2f   :  { %6874 = dma.done.wait [#allocation14], 12288  }
  0x30   :  { %6875 = vsyncadd [#allocation14], 4294955008 }
  0x31   :  { %6876 = dma.done.wait [#allocation17], 2048  }
  0x32   :  { %6877 = vsyncadd [#allocation17], 4294965248 }
  0x33   :  { %6878 = dma.done.wait [#allocation20], 2048  }
  0x34   :  { %6879 = vsyncadd [#allocation20], 4294965248 }
  0x35   :  { %6880 = dma.done.wait [#allocation23], 128  }
  0x36   :  { %6881 = vsyncadd [#allocation23], 4294967168  ;;  %v4529_v0 = vld [vmem:[#allocation12 + $0xe0] sm:$0xf]  ;;  %v5985_v1 = vld [vmem:[#allocation12 + $0xec] sm:$0xf0] }
  0x37   :  { %v5983_v2 = vld [vmem:[#allocation12 + $0xe4] sm:$0xf]  ;;  %v4530_v3 = vor.u32 %v5985_v1, %v4529_v0  ;;  %v4531_v4 = vld [vmem:[#allocation12 + $0xf0] sm:$0xf0]  ;;  %v4537_v5 = vld [vmem:[#allocation12 + $0xe8] sm:$0xf] }
  0x38   :  { %v5986_v6 = vld [vmem:[#allocation12 + $0xf4] sm:$0xf0]  ;;  %v4534_v7 = vor.u32 %v5983_v2, %v4531_v4  ;;  %v5984_v9 = vld [vmem:[#allocation12 + $0xec] sm:$0xf]  ;;  %v4539_v10 = vld [vmem:[#allocation12 + $0xf8] sm:$0xf0] }
  0x39   :  { %v4538_v8 = vor.u32 %v5986_v6, %v4537_v5  ;;  %v4513_v11 = vld [vmem:[#allocation12 + $0xc0] sm:$0xf]  ;;  %454 = vmatpush.bf16.msra.mxu0 %v4530_v3  ;;  %v4542_v12 = vor.u32 %v5984_v9, %v4539_v10  ;;  %v5981_v13 = vld [vmem:[#allocation12 + $0xcc] sm:$0xf0]  ;;  %v5979_v14 = vld [vmem:[#allocation12 + $0xc4] sm:$0xf] }
  0x3a   :  { %v4515_v15 = vld [vmem:[#allocation12 + $0xd0] sm:$0xf0]  ;;  %483 = vmatpush.bf16.msra.mxu1 %v4534_v7  ;;  %v4514_v16 = vor.u32 %v5981_v13, %v4513_v11  ;;  %v4521_v18 = vld [vmem:[#allocation12 + $0xc8] sm:$0xf]  ;;  %v5982_v19 = vld [vmem:[#allocation12 + $0xd4] sm:$0xf0] }
  0x3b   :  { %512 = vmatpush.bf16.msra.mxu2 %v4538_v8  ;;  %v4518_v17 = vor.u32 %v5979_v14, %v4515_v15  ;;  %v5980_v20 = vld [vmem:[#allocation12 + $0xcc] sm:$0xf]  ;;  %541 = vmatpush.bf16.msra.mxu3 %v4542_v12  ;;  %v4522_v21 = vor.u32 %v5982_v19, %v4521_v18  ;;  %v4523_v22 = vld [vmem:[#allocation12 + $0xd8] sm:$0xf0]  ;;  %v4497_v23 = vld [vmem:[#allocation12 + $0xa0] sm:$0xf] }
  0x3c   :  { %v5977_v24 = vld [vmem:[#allocation12 + $0xac] sm:$0xf0]  ;;  %v4526_v25 = vor.u32 %v5980_v20, %v4523_v22  ;;  %v5975_v26 = vld [vmem:[#allocation12 + $0xa4] sm:$0xf]  ;;  %v4499_v27 = vld [vmem:[#allocation12 + $0xb0] sm:$0xf0] }
  0x3d   :  { %v4505_v28 = vld [vmem:[#allocation12 + $0xa8] sm:$0xf]  ;;  %455 = vmatpush.bf16.msra.mxu0 %v4514_v16  ;;  %v4498_v29 = vor.u32 %v5977_v24, %v4497_v23  ;;  %v5978_v30 = vld [vmem:[#allocation12 + $0xb4] sm:$0xf0]  ;;  %v5976_v31 = vld [vmem:[#allocation12 + $0xac] sm:$0xf]  ;;  %v4502_v33 = vor.u32 %v5975_v26, %v4499_v27 }
  0x3e   :  { %v4507_v32 = vld [vmem:[#allocation12 + $0xb8] sm:$0xf0]  ;;  %484 = vmatpush.bf16.msra.mxu1 %v4518_v17  ;;  %v4506_v34 = vor.u32 %v5978_v30, %v4505_v28  ;;  %v4481_v35 = vld [vmem:[#allocation12 + $0x80] sm:$0xf]  ;;  %v5973_v36 = vld [vmem:[#allocation12 + $0x8c] sm:$0xf0] }
  0x3f   :  { %513 = vmatpush.bf16.msra.mxu2 %v4522_v21  ;;  %v5971_v37 = vld [vmem:[#allocation12 + $0x84] sm:$0xf]  ;;  %542 = vmatpush.bf16.msra.mxu3 %v4526_v25  ;;  %v4510_v38 = vor.u32 %v5976_v31, %v4507_v32  ;;  %v4483_v39 = vld [vmem:[#allocation12 + $0x90] sm:$0xf0]  ;;  %v4489_v40 = vld [vmem:[#allocation12 + $0x88] sm:$0xf]  ;;  %v4482_v44 = vor.u32 %v5973_v36, %v4481_v35 }
  0x40   :  { %v5974_v41 = vld [vmem:[#allocation12 + $0x94] sm:$0xf0]  ;;  %v5972_v42 = vld [vmem:[#allocation12 + $0x8c] sm:$0xf]  ;;  %v4491_v43 = vld [vmem:[#allocation12 + $0x98] sm:$0xf0]  ;;  %v4486_v45 = vor.u32 %v5971_v37, %v4483_v39 }
  0x41   :  { %456 = vmatpush.bf16.msra.mxu0 %v4498_v29  ;;  %v4490_v46 = vor.u32 %v5974_v41, %v4489_v40  ;;  %v4465_v47 = vld [vmem:[#allocation12 + $0x60] sm:$0xf]  ;;  %v5969_v48 = vld [vmem:[#allocation12 + $0x6c] sm:$0xf0]  ;;  %v5967_v49 = vld [vmem:[#allocation12 + $0x64] sm:$0xf]  ;;  %v4494_v50 = vor.u32 %v5972_v42, %v4491_v43 }
  0x42   :  { %485 = vmatpush.bf16.msra.mxu1 %v4502_v33  ;;  %v4467_v51 = vld [vmem:[#allocation12 + $0x70] sm:$0xf0]  ;;  %v4473_v52 = vld [vmem:[#allocation12 + $0x68] sm:$0xf]  ;;  %v5970_v53 = vld [vmem:[#allocation12 + $0x74] sm:$0xf0]  ;;  %v4466_v56 = vor.u32 %v5969_v48, %v4465_v47 }
  0x43   :  { %514 = vmatpush.bf16.msra.mxu2 %v4506_v34  ;;  %543 = vmatpush.bf16.msra.mxu3 %v4510_v38  ;;  %v5968_v54 = vld [vmem:[#allocation12 + $0x6c] sm:$0xf]  ;;  %v4475_v55 = vld [vmem:[#allocation12 + $0x78] sm:$0xf0]  ;;  %v4470_v57 = vor.u32 %v5967_v49, %v4467_v51  ;;  %v4474_v58 = vor.u32 %v5970_v53, %v4473_v52  ;;  %v4449_v59 = vld [vmem:[#allocation12 + $0x40] sm:$0xf] }
  0x44   :  { %v5965_v60 = vld [vmem:[#allocation12 + $0x4c] sm:$0xf0]  ;;  %v5963_v61 = vld [vmem:[#allocation12 + $0x44] sm:$0xf]  ;;  %v4478_v62 = vor.u32 %v5968_v54, %v4475_v55  ;;  %v4451_v63 = vld [vmem:[#allocation12 + $0x50] sm:$0xf0] }
  0x45   :  { %457 = vmatpush.bf16.msra.mxu0 %v4482_v44  ;;  %v4457_v0 = vld [vmem:[#allocation12 + $0x48] sm:$0xf]  ;;  %v5966_v1 = vld [vmem:[#allocation12 + $0x54] sm:$0xf0]  ;;  %v5964_v2 = vld [vmem:[#allocation12 + $0x4c] sm:$0xf]  ;;  %v4450_v4 = vor.u32 %v5965_v60, %v4449_v59  ;;  %v4454_v5 = vor.u32 %v5963_v61, %v4451_v63 }
  0x46   :  { %486 = vmatpush.bf16.msra.mxu1 %v4486_v45  ;;  %v4459_v3 = vld [vmem:[#allocation12 + $0x58] sm:$0xf0]  ;;  %v4458_v6 = vor.u32 %v5966_v1, %v4457_v0  ;;  %v4433_v7 = vld [vmem:[#allocation12 + $0x20] sm:$0xf]  ;;  %v5961_v8 = vld [vmem:[#allocation12 + $0x2c] sm:$0xf0] }
  0x47   :  { %515 = vmatpush.bf16.msra.mxu2 %v4490_v46  ;;  %544 = vmatpush.bf16.msra.mxu3 %v4494_v50  ;;  %v5959_v9 = vld [vmem:[#allocation12 + $0x24] sm:$0xf]  ;;  %v4462_v10 = vor.u32 %v5964_v2, %v4459_v3  ;;  %v4435_v11 = vld [vmem:[#allocation12 + $0x30] sm:$0xf0]  ;;  %v4441_v12 = vld [vmem:[#allocation12 + $0x28] sm:$0xf]  ;;  %v4434_v16 = vor.u32 %v5961_v8, %v4433_v7 }
  0x48   :  { %v5962_v13 = vld [vmem:[#allocation12 + $0x34] sm:$0xf0]  ;;  %v5960_v14 = vld [vmem:[#allocation12 + $0x2c] sm:$0xf]  ;;  %v4443_v15 = vld [vmem:[#allocation12 + $0x38] sm:$0xf0]  ;;  %v4438_v18 = vor.u32 %v5959_v9, %v4435_v11 }
  0x49   :  { %458 = vmatpush.bf16.msra.mxu0 %v4466_v56  ;;  %v4417_v17 = vld [vmem:[#allocation12] sm:$0xf]  ;;  %v4442_v19 = vor.u32 %v5962_v13, %v4441_v12  ;;  %v5957_v20 = vld [vmem:[#allocation12 + $0xc] sm:$0xf0]  ;;  %v5955_v21 = vld [vmem:[#allocation12 + $0x4] sm:$0xf]  ;;  %v4446_v23 = vor.u32 %v5960_v14, %v4443_v15 }
  0x4a   :  { %487 = vmatpush.bf16.msra.mxu1 %v4470_v57  ;;  %v4419_v22 = vld [vmem:[#allocation12 + $0x10] sm:$0xf0]  ;;  %v4425_v24 = vld [vmem:[#allocation12 + $0x8] sm:$0xf]  ;;  %v5958_v25 = vld [vmem:[#allocation12 + $0x14] sm:$0xf0]  ;;  %v4418_v30 = vor.u32 %v5957_v20, %v4417_v17 }
  0x4b   :  { %516 = vmatpush.bf16.msra.mxu2 %v4474_v58  ;;  %545 = vmatpush.bf16.msra.mxu3 %v4478_v62  ;;  %v5956_v26 = vld [vmem:[#allocation12 + $0xc] sm:$0xf]  ;;  %v4427_v27 = vld [vmem:[#allocation12 + $0x18] sm:$0xf0]  ;;  %v4657_v28 = vld [vmem:[#allocation15 + $0xe0] sm:$0xf]  ;;  %v4422_v33 = vor.u32 %v5955_v21, %v4419_v22  ;;  %v4426_v34 = vor.u32 %v5958_v25, %v4425_v24 }
  0x4c   :  { %v6017_v29 = vld [vmem:[#allocation15 + $0xec] sm:$0xf0]  ;;  %v6015_v31 = vld [vmem:[#allocation15 + $0xe4] sm:$0xf]  ;;  %v4659_v32 = vld [vmem:[#allocation15 + $0xf0] sm:$0xf0]  ;;  %v4430_v36 = vor.u32 %v5956_v26, %v4427_v27 }
  0x4d   :  { %459 = vmatpush.bf16.msra.mxu0 %v4450_v4  ;;  %v5951_v35 = vld [vmem:[#allocation4] sm:$0xff]  ;;  %v4658_v37 = vor.u32 %v6017_v29, %v4657_v28  ;;  %v4665_v38 = vld [vmem:[#allocation15 + $0xe8] sm:$0xf]  ;;  %v6016_v40 = vld [vmem:[#allocation15 + $0xec] sm:$0xf]  ;;  %v4662_v41 = vor.u32 %v6015_v31, %v4659_v32  ;;  %s6905_s25 = smov [#allocation25]  }
  0x4e   :  { %488 = vmatpush.bf16.msra.mxu1 %v4454_v5  ;;  %v6018_v39 = vld [vmem:[#allocation15 + $0xf4] sm:$0xf0]  ;;  %v4667_v42 = vld [vmem:[#allocation15 + $0xf8] sm:$0xf0]  ;;  %v4641_v43 = vld [vmem:[#allocation15 + $0xc0] sm:$0xf] }
  0x4f   :  { %517 = vmatpush.bf16.msra.mxu2 %v4458_v6  ;;  %546 = vmatpush.bf16.msra.mxu3 %v4462_v10  ;;  %v6013_v44 = vld [vmem:[#allocation15 + $0xcc] sm:$0xf0]  ;;  %v6011_v45 = vld [vmem:[#allocation15 + $0xc4] sm:$0xf]  ;;  %v4643_v46 = vld [vmem:[#allocation15 + $0xd0] sm:$0xf0]  ;;  %v4666_v47 = vor.u32 %v6018_v39, %v4665_v38  ;;  %v4670_v48 = vor.u32 %v6016_v40, %v4667_v42 }
  0x50   :  { %v4642_v49 = vor.u32 %v6013_v44, %v4641_v43  ;;  %v4649_v50 = vld [vmem:[#allocation15 + $0xc8] sm:$0xf]  ;;  %v6014_v51 = vld [vmem:[#allocation15 + $0xd4] sm:$0xf0]  ;;  %v6012_v52 = vld [vmem:[#allocation15 + $0xcc] sm:$0xf]  ;;  %v4646_v53 = vor.u32 %v6011_v45, %v4643_v46 }
  0x51   :  { %460 = vmatpush.bf16.msra.mxu0 %v4434_v16  ;;  %v4651_v54 = vld [vmem:[#allocation15 + $0xd8] sm:$0xf0]  ;;  %v4625_v55 = vld [vmem:[#allocation15 + $0xa0] sm:$0xf]  ;;  %v6009_v56 = vld [vmem:[#allocation15 + $0xac] sm:$0xf0]  ;;  %v4650_v59 = vor.u32 %v6014_v51, %v4649_v50 }
  0x52   :  { %489 = vmatpush.bf16.msra.mxu1 %v4438_v18  ;;  %v6007_v57 = vld [vmem:[#allocation15 + $0xa4] sm:$0xf]  ;;  %v4627_v58 = vld [vmem:[#allocation15 + $0xb0] sm:$0xf0]  ;;  %v4654_v60 = vor.u32 %v6012_v52, %v4651_v54  ;;  %v4626_v61 = vor.u32 %v6009_v56, %v4625_v55  ;;  %v4633_v62 = vld [vmem:[#allocation15 + $0xa8] sm:$0xf] }
  0x53   :  { %518 = vmatpush.bf16.msra.mxu2 %v4442_v19  ;;  %547 = vmatpush.bf16.msra.mxu3 %v4446_v23  ;;  %v6010_v63 = vld [vmem:[#allocation15 + $0xb4] sm:$0xf0]  ;;  %v6008_v0 = vld [vmem:[#allocation15 + $0xac] sm:$0xf]  ;;  %v4630_v1 = vor.u32 %v6007_v57, %v4627_v58  ;;  %v4635_v2 = vld [vmem:[#allocation15 + $0xb8] sm:$0xf0] }
  0x54   :  { %v4609_v3 = vld [vmem:[#allocation15 + $0x80] sm:$0xf]  ;;  %v6005_v4 = vld [vmem:[#allocation15 + $0x8c] sm:$0xf0]  ;;  %v6003_v5 = vld [vmem:[#allocation15 + $0x84] sm:$0xf]  ;;  %v4634_v7 = vor.u32 %v6010_v63, %v4633_v62  ;;  %v4638_v8 = vor.u32 %v6008_v0, %v4635_v2 }
  0x55   :  { %461 = vmatpush.bf16.msra.mxu0 %v4418_v30  ;;  %v4611_v6 = vld [vmem:[#allocation15 + $0x90] sm:$0xf0]  ;;  %v4610_v9 = vor.u32 %v6005_v4, %v4609_v3  ;;  %v4617_v10 = vld [vmem:[#allocation15 + $0x88] sm:$0xf]  ;;  %v6006_v11 = vld [vmem:[#allocation15 + $0x94] sm:$0xf0] }
  0x56   :  { %490 = vmatpush.bf16.msra.mxu1 %v4422_v33  ;;  %v6004_v12 = vld [vmem:[#allocation15 + $0x8c] sm:$0xf]  ;;  %v4614_v13 = vor.u32 %v6003_v5, %v4611_v6  ;;  %v4619_v14 = vld [vmem:[#allocation15 + $0x98] sm:$0xf0]  ;;  %v4593_v15 = vld [vmem:[#allocation15 + $0x60] sm:$0xf]  ;;  %v4618_v20 = vor.u32 %v6006_v11, %v4617_v10 }
  0x57   :  { %519 = vmatpush.bf16.msra.mxu2 %v4426_v34  ;;  %548 = vmatpush.bf16.msra.mxu3 %v4430_v36  ;;  %v6001_v16 = vld [vmem:[#allocation15 + $0x6c] sm:$0xf0]  ;;  %v5999_v17 = vld [vmem:[#allocation15 + $0x64] sm:$0xf]  ;;  %v4595_v18 = vld [vmem:[#allocation15 + $0x70] sm:$0xf0]  ;;  %v4622_v21 = vor.u32 %v6004_v12, %v4619_v14 }
  0x58   :  { %462 = vmatmul.bf16.vlgmr.msra.gmra.mxu0 %v5951_v35  ;;  %v5952_v19 = vld [vmem:[#allocation4 + $0x8] sm:$0xff]  ;;  %v4594_v22 = vor.u32 %v6001_v16, %v4593_v15  ;;  %v4601_v23 = vld [vmem:[#allocation15 + $0x68] sm:$0xf]  ;;  %v6002_v24 = vld [vmem:[#allocation15 + $0x74] sm:$0xf0]  ;;  %v4598_v26 = vor.u32 %v5999_v17, %v4595_v18  ;;  %v6904_v4 = vmov 0  }
  0x59   :  { %834 = vmatpush.bf16.msrb.mxu0 %v4658_v37  ;;  %491 = vmatmul.bf16.vlgmr.msra.gmra.mxu1 %v5951_v35  ;;  %v6000_v25 = vld [vmem:[#allocation15 + $0x6c] sm:$0xf]  ;;  %v4603_v27 = vld [vmem:[#allocation15 + $0x78] sm:$0xf0]  ;;  %v4577_v28 = vld [vmem:[#allocation15 + $0x40] sm:$0xf]  ;;  %v4602_v32 = vor.u32 %v6002_v24, %v4601_v23 }
  0x5a   :  { %847 = vmatpush.bf16.msrb.mxu1 %v4662_v41  ;;  %520 = vmatmul.bf16.vlgmr.msra.gmra.mxu2 %v5951_v35  ;;  %v5997_v29 = vld [vmem:[#allocation15 + $0x4c] sm:$0xf0]  ;;  %v5995_v30 = vld [vmem:[#allocation15 + $0x44] sm:$0xf]  ;;  %v4579_v31 = vld [vmem:[#allocation15 + $0x50] sm:$0xf0]  ;;  %v4606_v33 = vor.u32 %v6000_v25, %v4603_v27 }
  0x5b   :  { %549 = vmatmul.bf16.vlgmr.msra.gmra.mxu3 %v5951_v35  ;;  %860 = vmatpush.bf16.msrb.mxu2 %v4666_v47  ;;  %v4578_v34 = vor.u32 %v5997_v29, %v4577_v28  ;;  %v4585_v35 = vld [vmem:[#allocation15 + $0x48] sm:$0xf]  ;;  %v5998_v36 = vld [vmem:[#allocation15 + $0x54] sm:$0xf0]  ;;  %v4582_v37 = vor.u32 %v5995_v30, %v4579_v31  ;;  %v5996_v38 = vld [vmem:[#allocation15 + $0x4c] sm:$0xf] }
  0x5c   :  { %873 = vmatpush.bf16.msrb.mxu3 %v4670_v48  ;;  %v4587_v39 = vld [vmem:[#allocation15 + $0x58] sm:$0xf0]  ;;  %v4586_v40 = vor.u32 %v5998_v36, %v4585_v35  ;;  %v4561_v41 = vld [vmem:[#allocation15 + $0x20] sm:$0xf]  ;;  %v5993_v42 = vld [vmem:[#allocation15 + $0x2c] sm:$0xf0] }
  0x5d   :  { %835 = vmatpush.bf16.msrb.mxu0 %v4642_v49  ;;  %v5991_v43 = vld [vmem:[#allocation15 + $0x24] sm:$0xf]  ;;  %v4590_v44 = vor.u32 %v5996_v38, %v4587_v39  ;;  %v4562_v45 = vor.u32 %v5993_v42, %v4561_v41  ;;  %v4563_v46 = vld [vmem:[#allocation15 + $0x30] sm:$0xf0]  ;;  %v4569_v47 = vld [vmem:[#allocation15 + $0x28] sm:$0xf] }
  0x5e   :  { %848 = vmatpush.bf16.msrb.mxu1 %v4646_v53  ;;  %v5994_v48 = vld [vmem:[#allocation15 + $0x34] sm:$0xf0]  ;;  %v4566_v49 = vor.u32 %v5991_v43, %v4563_v46  ;;  %v5992_v50 = vld [vmem:[#allocation15 + $0x2c] sm:$0xf]  ;;  %v4571_v51 = vld [vmem:[#allocation15 + $0x38] sm:$0xf0] }
  0x5f   :  { %861 = vmatpush.bf16.msrb.mxu2 %v4650_v59  ;;  %v4545_v52 = vld [vmem:[#allocation15] sm:$0xf]  ;;  %v5989_v53 = vld [vmem:[#allocation15 + $0xc] sm:$0xf0]  ;;  %v5987_v54 = vld [vmem:[#allocation15 + $0x4] sm:$0xf]  ;;  %v4570_v56 = vor.u32 %v5994_v48, %v4569_v47  ;;  %v4574_v57 = vor.u32 %v5992_v50, %v4571_v51 }
  0x60   :  { %874 = vmatpush.bf16.msrb.mxu3 %v4654_v60  ;;  %v4547_v55 = vld [vmem:[#allocation15 + $0x10] sm:$0xf0]  ;;  %v4546_v58 = vor.u32 %v5989_v53, %v4545_v52  ;;  %v4553_v59 = vld [vmem:[#allocation15 + $0x8] sm:$0xf]  ;;  %v5990_v60 = vld [vmem:[#allocation15 + $0x14] sm:$0xf0] }
  0x61   :  { %836 = vmatpush.bf16.msrb.mxu0 %v4626_v61  ;;  %v4550_v61 = vor.u32 %v5987_v54, %v4547_v55  ;;  %v5988_v62 = vld [vmem:[#allocation15 + $0xc] sm:$0xf]  ;;  %v4555_v63 = vld [vmem:[#allocation15 + $0x18] sm:$0xf0]  ;;  %v4554_v0 = vor.u32 %v5990_v60, %v4553_v59  ;;  %v5953_v2 = vld [vmem:[#allocation4 + $0x10] sm:$0xff]  ;;  %s4376_s1 = sshll.u32 %s6905_s25, 4  ;;  %s4377_s1 = int_to_ptr.vmem [resolvable:$true] %s4376_s1 }
  0x62   :  { %849 = vmatpush.bf16.msrb.mxu1 %v4630_v1  ;;  %v4558_v1 = vor.u32 %v5988_v62, %v4555_v63  ;;  %v5954_v3 = vld [vmem:[#allocation4 + $0x18] sm:$0xff]  ;;  %v7060_v12 = vld [vmem:[#allocation16] sm:$0xff]  ;;  %v4793_v35 = vld [vmem:[#allocation15 + $0xe8] sm:$0xf]  ;;  %s4378_s18 = sshll.u32 %s7740_s14, 4  ;;  %s6906_s2 = smov [#allocation24]   ;;  %s4379_s18 = int_to_ptr.hbm [resolvable:$true] %s4378_s18 }
  0x63   :  { %862 = vmatpush.bf16.msrb.mxu2 %v4634_v7  ;;  %v7064_v15 = vld [vmem:[#allocation16 + $0x8] sm:$0xff]  ;;  %v4785_v28 = vld [vmem:[#allocation15 + $0xe0] sm:$0xf]  ;;  %v6049_v29 = vld [vmem:[#allocation15 + $0xec] sm:$0xf0]  ;;  %s4367_s21 = sshll.u32 %s7739_s13, 4  ;;  %s4368_s21 = int_to_ptr.hbm [resolvable:$true] %s4367_s21 }
  0x64   :  { %875 = vmatpush.bf16.msrb.mxu3 %v4638_v8  ;;  %v6047_v30 = vld [vmem:[#allocation15 + $0xe4] sm:$0xf]  ;;  %v6050_v36 = vld [vmem:[#allocation15 + $0xf4] sm:$0xf0]  ;;  %v6048_v41 = vld [vmem:[#allocation15 + $0xec] sm:$0xf] }
  0x65   :  { %837 = vmatpush.bf16.msrb.mxu0 %v4610_v9  ;;  %v4795_v42 = vld [vmem:[#allocation15 + $0xf8] sm:$0xf0]  ;;  %v6045_v46 = vld [vmem:[#allocation15 + $0xcc] sm:$0xf0]  ;;  %v6043_v47 = vld [vmem:[#allocation15 + $0xc4] sm:$0xf] }
  0x66   :  { %850 = vmatpush.bf16.msrb.mxu1 %v4614_v13  ;;  %v4777_v50 = vld [vmem:[#allocation15 + $0xc8] sm:$0xf]  ;;  %v6046_v51 = vld [vmem:[#allocation15 + $0xd4] sm:$0xf0]  ;;  %v6044_v54 = vld [vmem:[#allocation15 + $0xcc] sm:$0xf] }
  0x67   :  { %863 = vmatpush.bf16.msrb.mxu2 %v4618_v20  ;;  %v4778_v53 = vor.u32 %v6046_v51, %v4777_v50  ;;  %v4779_v55 = vld [vmem:[#allocation15 + $0xd8] sm:$0xf0]  ;;  %v6041_v59 = vld [vmem:[#allocation15 + $0xac] sm:$0xf0]  ;;  %v6039_v60 = vld [vmem:[#allocation15 + $0xa4] sm:$0xf] }
  0x68   :  { %876 = vmatpush.bf16.msrb.mxu3 %v4622_v21  ;;  %467 = vmatmul.bf16.gmra.mxu0 %v5952_v19  ;;  %v7074_v21 = vld [vmem:[#allocation16 + $0x18] sm:$0xff] }
  0x69   :  { %838 = vmatpush.bf16.msrb.mxu0 %v4594_v22  ;;  %496 = vmatmul.bf16.gmra.mxu1 %v5952_v19 }
  0x6a   :  { %851 = vmatpush.bf16.msrb.mxu1 %v4598_v26  ;;  %525 = vmatmul.bf16.gmra.mxu2 %v5952_v19 }
  0x6b   :  { %554 = vmatmul.bf16.gmra.mxu3 %v5952_v19  ;;  %864 = vmatpush.bf16.msrb.mxu2 %v4602_v32  ;;  %v7072_v19 = vld [vmem:[#allocation16 + $0x10] sm:$0xff] }
  0x6c   :  { %877 = vmatpush.bf16.msrb.mxu3 %v4606_v33  ;;  %v4786_v33 = vor.u32 %v6049_v29, %v4785_v28  ;;  %v6040_v28 = vld [vmem:[#allocation15 + $0xac] sm:$0xf]  ;;  %v4763_v29 = vld [vmem:[#allocation15 + $0xb8] sm:$0xf0] }
  0x6d   :  { %839 = vmatpush.bf16.msrb.mxu0 %v4578_v34  ;;  %v4787_v34 = vld [vmem:[#allocation15 + $0xf0] sm:$0xf0] }
  0x6e   :  { %852 = vmatpush.bf16.msrb.mxu1 %v4582_v37  ;;  %v4790_v39 = vor.u32 %v6047_v30, %v4787_v34  ;;  %v4766_v30 = vor.u32 %v6040_v28, %v4763_v29  ;;  %v6035_v34 = vld [vmem:[#allocation15 + $0x84] sm:$0xf]  ;;  %v4707_v28 = vld [vmem:[#allocation15 + $0x50] sm:$0xf0]  ;;  %v4713_v29 = vld [vmem:[#allocation15 + $0x48] sm:$0xf] }
  0x6f   :  { %865 = vmatpush.bf16.msrb.mxu2 %v4586_v40  ;;  %v4794_v40 = vor.u32 %v6050_v36, %v4793_v35  ;;  %v4739_v36 = vld [vmem:[#allocation15 + $0x90] sm:$0xf0] }
  0x70   :  { %878 = vmatpush.bf16.msrb.mxu3 %v4590_v44  ;;  %v4798_v44 = vor.u32 %v6048_v41, %v4795_v42  ;;  %v6036_v42 = vld [vmem:[#allocation15 + $0x8c] sm:$0xf] }
  0x71   :  { %840 = vmatpush.bf16.msrb.mxu0 %v4562_v45  ;;  %v4769_v45 = vld [vmem:[#allocation15 + $0xc0] sm:$0xf] }
  0x72   :  { %853 = vmatpush.bf16.msrb.mxu1 %v4566_v49  ;;  %v4770_v48 = vor.u32 %v6045_v46, %v4769_v45  ;;  %v4771_v49 = vld [vmem:[#allocation15 + $0xd0] sm:$0xf0] }
  0x73   :  { %866 = vmatpush.bf16.msrb.mxu2 %v4570_v56  ;;  %v4774_v52 = vor.u32 %v6043_v47, %v4771_v49  ;;  %v4782_v56 = vor.u32 %v6044_v54, %v4779_v55  ;;  %v4721_v47 = vld [vmem:[#allocation15 + $0x60] sm:$0xf]  ;;  %v6031_v49 = vld [vmem:[#allocation15 + $0x64] sm:$0xf]  ;;  %v4729_v54 = vld [vmem:[#allocation15 + $0x68] sm:$0xf] }
  0x74   :  { %879 = vmatpush.bf16.msrb.mxu3 %v4574_v57  ;;  %v6034_v55 = vld [vmem:[#allocation15 + $0x74] sm:$0xf0] }
  0x75   :  { %841 = vmatpush.bf16.msrb.mxu0 %v4546_v58  ;;  %v4753_v58 = vld [vmem:[#allocation15 + $0xa0] sm:$0xf] }
  0x76   :  { %854 = vmatpush.bf16.msrb.mxu1 %v4550_v61 }
  0x77   :  { %867 = vmatpush.bf16.msrb.mxu2 %v4554_v0  ;;  %v4754_v0 = vor.u32 %v6041_v59, %v4753_v58  ;;  %v4730_v59 = vor.u32 %v6034_v55, %v4729_v54 }
  0x78   :  { %880 = vmatpush.bf16.msrb.mxu3 %v4558_v1  ;;  %472 = vmatmul.bf16.gmra.mxu0 %v5953_v2  ;;  %v4755_v1 = vld [vmem:[#allocation15 + $0xb0] sm:$0xf0] }
  0x79   :  { %501 = vmatmul.bf16.gmra.mxu1 %v5953_v2  ;;  %1107 = vmatpush.bf16.msra.mxu0 %v4786_v33  ;;  %v6037_v33 = vld [vmem:[#allocation15 + $0x8c] sm:$0xf0] }
  0x7a   :  { %530 = vmatmul.bf16.gmra.mxu2 %v5953_v2  ;;  %1120 = vmatpush.bf16.msra.mxu1 %v4790_v39  ;;  %v6038_v39 = vld [vmem:[#allocation15 + $0x94] sm:$0xf0] }
  0x7b   :  { %559 = vmatmul.bf16.gmra.mxu3 %v5953_v2  ;;  %1133 = vmatpush.bf16.msra.mxu2 %v4794_v40  ;;  %v4761_v2 = vld [vmem:[#allocation15 + $0xa8] sm:$0xf]  ;;  %v4742_v40 = vor.u32 %v6035_v34, %v4739_v36  ;;  %v6028_v34 = vld [vmem:[#allocation15 + $0x4c] sm:$0xf] }
  0x7c   :  { %1146 = vmatpush.bf16.msra.mxu3 %v4798_v44  ;;  %v4747_v44 = vld [vmem:[#allocation15 + $0x98] sm:$0xf0] }
  0x7d   :  { %1108 = vmatpush.bf16.msra.mxu0 %v4770_v48  ;;  %v4750_v45 = vor.u32 %v6036_v42, %v4747_v44  ;;  %v6033_v48 = vld [vmem:[#allocation15 + $0x6c] sm:$0xf0] }
  0x7e   :  { %1121 = vmatpush.bf16.msra.mxu1 %v4774_v52  ;;  %v4722_v52 = vor.u32 %v6033_v48, %v4721_v47  ;;  %v4691_v48 = vld [vmem:[#allocation15 + $0x30] sm:$0xf0] }
  0x7f   :  { %1134 = vmatpush.bf16.msra.mxu2 %v4778_v53  ;;  %v4723_v53 = vld [vmem:[#allocation15 + $0x70] sm:$0xf0] }
  0x80   :  { %1147 = vmatpush.bf16.msra.mxu3 %v4782_v56  ;;  %v4726_v58 = vor.u32 %v6031_v49, %v4723_v53  ;;  %v4697_v49 = vld [vmem:[#allocation15 + $0x28] sm:$0xf] }
  0x81   :  { %1109 = vmatpush.bf16.msra.mxu0 %v4754_v0 }
  0x84   :  { %1148 = vmatpush.bf16.msra.mxu3 %v4766_v30  ;;  %v6030_v30 = vld [vmem:[#allocation15 + $0x54] sm:$0xf0] }
  0x88   :  { %477 = vmatmul.bf16.gmra.mxu0 %v5954_v3  ;;  %1149 = vmatpush.bf16.msra.mxu3 %v4750_v45 }
  0x89   :  { %506 = vmatmul.bf16.gmra.mxu1 %v5954_v3 }
  0x8a   :  { %535 = vmatmul.bf16.gmra.mxu2 %v5954_v3 }
  0x8b   :  { %564 = vmatmul.bf16.gmra.mxu3 %v5954_v3  ;;  %v6042_v3 = vld [vmem:[#allocation15 + $0xb4] sm:$0xf0] }
  0x98   :  { %842 = vmatmul.bf16.vlgmr.msrb.gmra.mxu0 %v6904_v4 }
  0x99   :  { %855 = vmatmul.bf16.vlgmr.msrb.gmra.mxu1 %v6904_v4 }
  0x9a   :  { %868 = vmatmul.bf16.vlgmr.msrb.gmra.mxu2 %v6904_v4 }
  0x9b   :  { %881 = vmatmul.bf16.vlgmr.msrb.gmra.mxu3 %v6904_v4 }
  0xd5   :  { %v7046_v5 = vpop.f32.mrf.mxu0 }
  0xd6   :  { %v7048_v6 = vpop.f32.mrf.mxu1 }
  0xdd   :  { %v7050_v7 = vpop.f32.mrf.mxu2  ;;  %v7054_v9 = vpop.f32.mrf.mxu0 }
  0xde   :  { %v7052_v8 = vpop.f32.mrf.mxu3  ;;  %v7056_v10 = vpop.f32.mrf.mxu1 }
  0xe5   :  { %v7058_v11 = vpop.f32.mrf.mxu2  ;;  %v468_v14 = vpop.f32.mrf.mxu0 }
  0xe6   :  { %v7062_v13 = vpop.f32.mrf.mxu3  ;;  %v7067_v16 = vadd.f32 %v7060_v12, %v468_v14  ;;  %v497_v17 = vpop.f32.mrf.mxu1 }
  0xe7   :  { %v7070_v18 = vadd.f32 %v7064_v15, %v497_v17 }
  0xed   :  { %v526_v20 = vpop.f32.mrf.mxu2  ;;  %v7079_v24 = vpop.f32.mrf.mxu0 }
  0xee   :  { %v7077_v22 = vadd.f32 %v7072_v19, %v526_v20  ;;  %v555_v23 = vpop.f32.mrf.mxu3  ;;  %v7084_v26 = vpop.f32.mrf.mxu1  ;;  %v4758_v20 = vor.u32 %v6039_v60, %v4755_v1  ;;  %v6032_v60 = vld [vmem:[#allocation15 + $0x6c] sm:$0xf] }
  0xef   :  { %v7082_v25 = vadd.f32 %v7074_v21, %v555_v23  ;;  %v4762_v23 = vor.u32 %v6042_v3, %v4761_v2  ;;  %v4705_v2 = vld [vmem:[#allocation15 + $0x40] sm:$0xf]  ;;  %v6029_v3 = vld [vmem:[#allocation15 + $0x4c] sm:$0xf0] }
  0xf0   :  { %1122 = vmatpush.bf16.msra.mxu1 %v4758_v20  ;;  %v6027_v20 = vld [vmem:[#allocation15 + $0x44] sm:$0xf] }
  0xf1   :  { %1135 = vmatpush.bf16.msra.mxu2 %v4762_v23  ;;  %v4706_v23 = vor.u32 %v6029_v3, %v4705_v2  ;;  %v4675_v3 = vld [vmem:[#allocation15 + $0x10] sm:$0xf0] }
  0xf4   :  { %1123 = vmatpush.bf16.msra.mxu1 %v4742_v40  ;;  %v6025_v40 = vld [vmem:[#allocation15 + $0x2c] sm:$0xf0] }
  0xf5   :  { %v7086_v27 = vpop.f32.mrf.mxu2  ;;  %v473_v32 = vpop.f32.mrf.mxu0 }
  0xf6   :  { %v7088_v31 = vpop.f32.mrf.mxu3  ;;  %v7091_v37 = vadd.f32 %v7060_v12, %v473_v32  ;;  %v502_v38 = vpop.f32.mrf.mxu1  ;;  %v4737_v32 = vld [vmem:[#allocation15 + $0x80] sm:$0xf] }
  0xf7   :  { %v7094_v43 = vadd.f32 %v7064_v15, %v502_v38  ;;  %v4738_v35 = vor.u32 %v6037_v33, %v4737_v32  ;;  %v4745_v38 = vld [vmem:[#allocation15 + $0x88] sm:$0xf]  ;;  %v4710_v32 = vor.u32 %v6027_v20, %v4707_v28  ;;  %v4714_v33 = vor.u32 %v6030_v30, %v4713_v29  ;;  %v6020_v30 = vld [vmem:[#allocation15 + $0xc] sm:$0xf] }
  0xf8   :  { %v4746_v41 = vor.u32 %v6038_v39, %v4745_v38  ;;  %1124 = vmatpush.bf16.msra.mxu1 %v4726_v58  ;;  %v4689_v39 = vld [vmem:[#allocation15 + $0x20] sm:$0xf]  ;;  %v4699_v58 = vld [vmem:[#allocation15 + $0x38] sm:$0xf0]  ;;  %v4681_v20 = vld [vmem:[#allocation15 + $0x8] sm:$0xf] }
  0xf9   :  { %1110 = vmatpush.bf16.msra.mxu0 %v4738_v35  ;;  %v4715_v35 = vld [vmem:[#allocation15 + $0x58] sm:$0xf0]  ;;  %v4690_v47 = vor.u32 %v6025_v40, %v4689_v39 }
  0xfa   :  { %1136 = vmatpush.bf16.msra.mxu2 %v4746_v41  ;;  %v4718_v36 = vor.u32 %v6028_v34, %v4715_v35  ;;  %v6023_v41 = vld [vmem:[#allocation15 + $0x24] sm:$0xf]  ;;  %v574_v34 = vadd.f32 %v7060_v12, %v7046_v5  ;;  %v576_v5 = vadd.f32 %v7072_v19, %v7050_v7 }
  0xfb   :  { %v4694_v54 = vor.u32 %v6023_v41, %v4691_v48 }
  0xfc   :  { %1125 = vmatpush.bf16.msra.mxu1 %v4710_v32  ;;  %v4683_v32 = vld [vmem:[#allocation15 + $0x18] sm:$0xf0] }
  0xfd   :  { %v531_v57 = vpop.f32.mrf.mxu2  ;;  %v7099_v63 = vpop.f32.mrf.mxu0  ;;  %1111 = vmatpush.bf16.msra.mxu0 %v4722_v52 }
  0xfe   :  { %v7097_v61 = vadd.f32 %v7072_v19, %v531_v57  ;;  %v560_v62 = vpop.f32.mrf.mxu3  ;;  %v7104_v17 = vpop.f32.mrf.mxu1  ;;  %1137 = vmatpush.bf16.msra.mxu2 %v4730_v59 }
  0xff   :  { %v7102_v14 = vadd.f32 %v7074_v21, %v560_v62  ;;  %v4731_v62 = vld [vmem:[#allocation15 + $0x78] sm:$0xf0] }
 0x100   :  { %v4734_v1 = vor.u32 %v6032_v60, %v4731_v62  ;;  %1126 = vmatpush.bf16.msra.mxu1 %v4694_v54  ;;  %v4673_v60 = vld [vmem:[#allocation15] sm:$0xf]  ;;  %v6021_v62 = vld [vmem:[#allocation15 + $0xc] sm:$0xf0] }
 0x101   :  { %1112 = vmatpush.bf16.msra.mxu0 %v4706_v23  ;;  %v4674_v2 = vor.u32 %v6021_v62, %v4673_v60  ;;  %v6022_v23 = vld [vmem:[#allocation15 + $0x14] sm:$0xf0] }
 0x102   :  { %1150 = vmatpush.bf16.msra.mxu3 %v4734_v1  ;;  %1138 = vmatpush.bf16.msra.mxu2 %v4714_v33  ;;  %v6019_v1 = vld [vmem:[#allocation15 + $0x4] sm:$0xf]  ;;  %v4682_v29 = vor.u32 %v6022_v23, %v4681_v20  ;;  %v4686_v33 = vor.u32 %v6020_v30, %v4683_v32 }
 0x103   :  { %v4678_v28 = vor.u32 %v6019_v1, %v4675_v3 }
 0x105   :  { %v7106_v46 = vpop.f32.mrf.mxu2  ;;  %v478_v51 = vpop.f32.mrf.mxu0  ;;  %1113 = vmatpush.bf16.msra.mxu0 %v4690_v47  ;;  %1127 = vmatpush.bf16.msra.mxu1 %v4678_v28 }
 0x106   :  { %v7108_v50 = vpop.f32.mrf.mxu3  ;;  %v7111_v56 = vadd.f32 %v7060_v12, %v478_v51  ;;  %v507_v57 = vpop.f32.mrf.mxu1  ;;  %1151 = vmatpush.bf16.msra.mxu3 %v4718_v36  ;;  %v6026_v51 = vld [vmem:[#allocation15 + $0x34] sm:$0xf0]  ;;  %v575_v36 = vadd.f32 %v7064_v15, %v7048_v6 }
 0x107   :  { %v7114_v0 = vadd.f32 %v7064_v15, %v507_v57  ;;  %v4698_v55 = vor.u32 %v6026_v51, %v4697_v49  ;;  %v6024_v57 = vld [vmem:[#allocation15 + $0x2c] sm:$0xf]  ;;  %v577_v49 = vadd.f32 %v7074_v21, %v7052_v8 }
 0x108   :  { %v4702_v59 = vor.u32 %v6024_v57, %v4699_v58 }
 0x109   :  { %1139 = vmatpush.bf16.msra.mxu2 %v4698_v55  ;;  %1114 = vmatpush.bf16.msra.mxu0 %v4674_v2 }
 0x10a   :  { %1152 = vmatpush.bf16.msra.mxu3 %v4702_v59 }
 0x10d   :  { %v536_v38 = vpop.f32.mrf.mxu2  ;;  %v7119_v45 = vpop.f32.mrf.mxu0  ;;  %1140 = vmatpush.bf16.msra.mxu2 %v4682_v29 }
 0x10e   :  { %v7117_v42 = vadd.f32 %v7072_v19, %v536_v38  ;;  %v565_v44 = vpop.f32.mrf.mxu3  ;;  %v7124_v53 = vpop.f32.mrf.mxu1  ;;  %1153 = vmatpush.bf16.msra.mxu3 %v4686_v33 }
 0x10f   :  { %v7122_v52 = vadd.f32 %v7074_v21, %v565_v44 }
 0x115   :  { %v7128_v35 = vpop.f32.mrf.mxu2  ;;  %v843_v39 = vpop.f32.mrf.mxu0 }
 0x116   :  { %v7132_v38 = vpop.f32.mrf.mxu3  ;;  %v886_v40 = vadd.f32 %v843_v39, %v574_v34  ;;  %v856_v41 = vpop.f32.mrf.mxu1 }
 0x117   :  { %v887_v44 = vadd.f32 %v856_v41, %v575_v36  ;;  %v4913_v41 = vld [vmem:[#allocation15 + $0xe0] sm:$0xf] }
 0x118   :  { %v890_v47 = vmul.f32 0.5, %v886_v40 }
 0x119   :  { %v894_v48 = vmul.f32 0.5, %v887_v44  ;;  %v6081_v44 = vld [vmem:[#allocation15 + $0xec] sm:$0xf0] }
 0x11a   :  { %6360 = vtanh.f32 %v890_v47  ;;  %v6079_v47 = vld [vmem:[#allocation15 + $0xe4] sm:$0xf] }
 0x11b   :  { %6362 = vtanh.f32 %v894_v48  ;;  %v4914_v48 = vor.u32 %v6081_v44, %v4913_v41  ;;  %v4889_v41 = vld [vmem:[#allocation15 + $0xa8] sm:$0xf]  ;;  %v6074_v44 = vld [vmem:[#allocation15 + $0xb4] sm:$0xf0] }
 0x11d   :  { %v869_v51 = vpop.f32.mrf.mxu2  ;;  %v845_v55 = vpop.f32.mrf.mxu0  ;;  %1381 = vmatpush.bf16.msrb.mxu0 %v4914_v48  ;;  %v4890_v48 = vor.u32 %v6074_v44, %v4889_v41  ;;  %v4859_v41 = vld [vmem:[#allocation15 + $0x78] sm:$0xf0] }
 0x11e   :  { %v888_v54 = vadd.f32 %v869_v51, %v576_v5  ;;  %v882_v6 = vpop.f32.mrf.mxu3  ;;  %v858_v58 = vpop.f32.mrf.mxu1  ;;  %v4915_v5 = vld [vmem:[#allocation15 + $0xf0] sm:$0xf0]  ;;  %v6082_v51 = vld [vmem:[#allocation15 + $0xf4] sm:$0xf0]  ;;  %v6080_v55 = vld [vmem:[#allocation15 + $0xec] sm:$0xf] }
 0x11f   :  { %v889_v57 = vadd.f32 %v882_v6, %v577_v49  ;;  %v4921_v49 = vld [vmem:[#allocation15 + $0xe8] sm:$0xf] }
 0x120   :  { %6364 = vtanh.f32 %v888_v54  ;;  %v6361_v59 = vpop.eup %6360  ;;  %v4918_v54 = vor.u32 %v6079_v47, %v4915_v5  ;;  %v4922_v6 = vor.u32 %v6082_v51, %v4921_v49  ;;  %v6072_v5 = vld [vmem:[#allocation15 + $0xac] sm:$0xf]  ;;  %v4891_v49 = vld [vmem:[#allocation15 + $0xb8] sm:$0xf0] }
 0x121   :  { %v899_v60 = vmul.f32 0.5, %v889_v57  ;;  %v6363_v62 = vpop.eup %6362  ;;  %v892_v1 = vmul.f32 0.5, %v6361_v59  ;;  %v4923_v57 = vld [vmem:[#allocation15 + $0xf8] sm:$0xf0]  ;;  %v4897_v59 = vld [vmem:[#allocation15 + $0xc0] sm:$0xf]  ;;  %v4894_v51 = vor.u32 %v6072_v5, %v4891_v49 }
 0x122   :  { %v896_v2 = vmul.f32 0.5, %v6363_v62  ;;  %v4926_v58 = vor.u32 %v6080_v55, %v4923_v57  ;;  %1394 = vmatpush.bf16.msrb.mxu1 %v4918_v54  ;;  %1407 = vmatpush.bf16.msrb.mxu2 %v4922_v6  ;;  %v6075_v62 = vld [vmem:[#allocation15 + $0xc4] sm:$0xf]  ;;  %v4865_v54 = vld [vmem:[#allocation15 + $0x80] sm:$0xf] }
 0x123   :  { %6366 = vtanh.f32 %v899_v60  ;;  %v893_v3 = vadd.f32 0.5, %v892_v1  ;;  %v6077_v60 = vld [vmem:[#allocation15 + $0xcc] sm:$0xf0]  ;;  %v6067_v55 = vld [vmem:[#allocation15 + $0x84] sm:$0xf] }
 0x124   :  { %v897_v20 = vadd.f32 0.5, %v896_v2  ;;  %1420 = vmatpush.bf16.msrb.mxu3 %v4926_v58  ;;  %v4898_v1 = vor.u32 %v6077_v60, %v4897_v59  ;;  %v4899_v2 = vld [vmem:[#allocation15 + $0xd0] sm:$0xf0]  ;;  %v6069_v6 = vld [vmem:[#allocation15 + $0x8c] sm:$0xf0] }
 0x125   :  { %v871_v7 = vpop.f32.mrf.mxu2  ;;  %v4866_v57 = vor.u32 %v6069_v6, %v4865_v54  ;;  %v4867_v58 = vld [vmem:[#allocation15 + $0x90] sm:$0xf0]  ;;  %v4873_v59 = vld [vmem:[#allocation15 + $0x88] sm:$0xf]  ;;  %v6070_v60 = vld [vmem:[#allocation15 + $0x94] sm:$0xf0] }
 0x126   :  { %v6365_v23 = vpop.eup %6364  ;;  %v884_v28 = vpop.f32.mrf.mxu3  ;;  %v903_v29 = vmul.f32 0.0, %v897_v20  ;;  %v6078_v20 = vld [vmem:[#allocation15 + $0xd4] sm:$0xf0]  ;;  %v4902_v7 = vor.u32 %v6075_v62, %v4899_v2  ;;  %1382 = vmatpush.bf16.msrb.mxu0 %v4898_v1  ;;  %v4870_v62 = vor.u32 %v6067_v55, %v4867_v58  ;;  %v4874_v1 = vor.u32 %v6070_v60, %v4873_v59  ;;  %v6068_v2 = vld [vmem:[#allocation15 + $0x8c] sm:$0xf] }
 0x127   :  { %v904_v8 = vmul.f32 %v6365_v23, %v893_v3  ;;  %v4905_v3 = vld [vmem:[#allocation15 + $0xc8] sm:$0xf]  ;;  %v6076_v28 = vld [vmem:[#allocation15 + $0xcc] sm:$0xf]  ;;  %v6059_v5 = vld [vmem:[#allocation15 + $0x44] sm:$0xf] }
 0x128   :  { %v4906_v23 = vor.u32 %v6078_v20, %v4905_v3  ;;  %1395 = vmatpush.bf16.msrb.mxu1 %v4902_v7  ;;  %v4875_v3 = vld [vmem:[#allocation15 + $0x98] sm:$0xf0]  ;;  %v4849_v7 = vld [vmem:[#allocation15 + $0x60] sm:$0xf]  ;;  %v4841_v54 = vld [vmem:[#allocation15 + $0x48] sm:$0xf] }
 0x129   :  { %v6367_v30 = vpop.eup %6366  ;;  %v7138_v32 = vadd.f32 %v904_v8, %v903_v29  ;;  %v4907_v29 = vld [vmem:[#allocation15 + $0xd8] sm:$0xf0]  ;;  %v4878_v20 = vor.u32 %v6068_v2, %v4875_v3  ;;  %v6062_v6 = vld [vmem:[#allocation15 + $0x54] sm:$0xf0]  ;;  %v6060_v58 = vld [vmem:[#allocation15 + $0x4c] sm:$0xf] }
 0x12a   :  { %v901_v33 = vmul.f32 0.5, %v6367_v30  ;;  %v4910_v8 = vor.u32 %v6076_v28, %v4907_v29  ;;  %1408 = vmatpush.bf16.msrb.mxu2 %v4906_v23  ;;  %v4881_v30 = vld [vmem:[#allocation15 + $0xa0] sm:$0xf]  ;;  %v6065_v23 = vld [vmem:[#allocation15 + $0x6c] sm:$0xf0] }
 0x12b   :  { %6368 = vtanh.f32 %v7138_v32  ;;  %v6063_v28 = vld [vmem:[#allocation15 + $0x64] sm:$0xf]  ;;  %v4850_v29 = vor.u32 %v6065_v23, %v4849_v7  ;;  %v4843_v59 = vld [vmem:[#allocation15 + $0x58] sm:$0xf0]  ;;  %v4825_v7 = vld [vmem:[#allocation15 + $0x28] sm:$0xf] }
 0x12c   :  { %v902_v34 = vadd.f32 0.5, %v901_v33  ;;  %v6073_v33 = vld [vmem:[#allocation15 + $0xac] sm:$0xf0]  ;;  %1421 = vmatpush.bf16.msrb.mxu3 %v4910_v8  ;;  %v4851_v8 = vld [vmem:[#allocation15 + $0x70] sm:$0xf0]  ;;  %v4846_v60 = vor.u32 %v6060_v58, %v4843_v59 }
 0x12d   :  { %v6055_v2 = vld [vmem:[#allocation15 + $0x24] sm:$0xf]  ;;  %v6058_v23 = vld [vmem:[#allocation15 + $0x34] sm:$0xf0] }
 0x12e   :  { %1409 = vmatpush.bf16.msrb.mxu2 %v4890_v48  ;;  %v6061_v48 = vld [vmem:[#allocation15 + $0x4c] sm:$0xf0] }
 0x130   :  { %1422 = vmatpush.bf16.msrb.mxu3 %v4894_v51  ;;  %v4835_v51 = vld [vmem:[#allocation15 + $0x50] sm:$0xf0] }
 0x131   :  { %v6369_v36 = vpop.eup %6368  ;;  %v4838_v55 = vor.u32 %v6059_v5, %v4835_v51  ;;  %v6052_v51 = vld [vmem:[#allocation15 + $0xc] sm:$0xf] }
 0x132   :  { %v7141_v39 = vmul.f32 %v6369_v36, %v902_v34  ;;  %v6071_v34 = vld [vmem:[#allocation15 + $0xa4] sm:$0xf]  ;;  %v4882_v36 = vor.u32 %v6073_v33, %v4881_v30  ;;  %1410 = vmatpush.bf16.msrb.mxu2 %v4874_v1  ;;  %v4857_v30 = vld [vmem:[#allocation15 + $0x68] sm:$0xf]  ;;  %v6066_v33 = vld [vmem:[#allocation15 + $0x74] sm:$0xf0] }
 0x133   :  { %v6057_v1 = vld [vmem:[#allocation15 + $0x2c] sm:$0xf0] }
 0x134   :  { %v914_v40 = vpack.c.bf16 %v7141_v39, %v7141_v39  ;;  %1383 = vmatpush.bf16.msrb.mxu0 %v4882_v36  ;;  %1423 = vmatpush.bf16.msrb.mxu3 %v4878_v20  ;;  %v4858_v36 = vor.u32 %v6066_v33, %v4857_v30  ;;  %v4819_v20 = vld [vmem:[#allocation15 + $0x30] sm:$0xf0]  ;;  %v4827_v30 = vld [vmem:[#allocation15 + $0x38] sm:$0xf0] }
 0x136   :  { %1115 = vmatmul.bf16.vlgmr.msra.gmra.mxu0 %v914_v40  ;;  %1128 = vmatmul.bf16.vlgmr.msra.gmra.mxu1 %v914_v40 }
 0x137   :  { %1141 = vmatmul.bf16.vlgmr.msra.gmra.mxu2 %v914_v40  ;;  %1154 = vmatmul.bf16.vlgmr.msra.gmra.mxu3 %v914_v40  ;;  %v4883_v40 = vld [vmem:[#allocation15 + $0xb0] sm:$0xf0] }
 0x138   :  { %v4886_v47 = vor.u32 %v6071_v34, %v4883_v40  ;;  %1384 = vmatpush.bf16.msrb.mxu0 %v4866_v57  ;;  %v4854_v34 = vor.u32 %v6063_v28, %v4851_v8  ;;  %v6064_v40 = vld [vmem:[#allocation15 + $0x6c] sm:$0xf]  ;;  %1411 = vmatpush.bf16.msrb.mxu2 %v4858_v36  ;;  %v4842_v57 = vor.u32 %v6062_v6, %v4841_v54  ;;  %v6053_v36 = vld [vmem:[#allocation15 + $0xc] sm:$0xf0]  ;;  %v4811_v54 = vld [vmem:[#allocation15 + $0x18] sm:$0xf0] }
 0x139   :  { %v4862_v44 = vor.u32 %v6064_v40, %v4859_v41  ;;  %v4822_v28 = vor.u32 %v6055_v2, %v4819_v20  ;;  %v6056_v8 = vld [vmem:[#allocation15 + $0x2c] sm:$0xf]  ;;  %v6051_v40 = vld [vmem:[#allocation15 + $0x4] sm:$0xf]  ;;  %v4814_v6 = vor.u32 %v6052_v51, %v4811_v54  ;;  %v581_v20 = vadd.f32 %v7074_v21, %v7062_v13  ;;  %v5041_v54 = vld [vmem:[#allocation15 + $0xe0] sm:$0xf] }
 0x13a   :  { %1396 = vmatpush.bf16.msrb.mxu1 %v4886_v47  ;;  %v4833_v47 = vld [vmem:[#allocation15 + $0x40] sm:$0xf]  ;;  %v4830_v33 = vor.u32 %v6056_v8, %v4827_v30 }
 0x13b   :  { %1424 = vmatpush.bf16.msrb.mxu3 %v4862_v44  ;;  %v4834_v49 = vor.u32 %v6061_v48, %v4833_v47  ;;  %v4803_v44 = vld [vmem:[#allocation15 + $0x10] sm:$0xf0]  ;;  %v4809_v47 = vld [vmem:[#allocation15 + $0x8] sm:$0xf]  ;;  %v6054_v48 = vld [vmem:[#allocation15 + $0x14] sm:$0xf0] }
 0x13c   :  { %1385 = vmatpush.bf16.msrb.mxu0 %v4850_v29  ;;  %1412 = vmatpush.bf16.msrb.mxu2 %v4842_v57  ;;  %v4826_v29 = vor.u32 %v6058_v23, %v4825_v7  ;;  %v4806_v5 = vor.u32 %v6051_v40, %v4803_v44  ;;  %v579_v57 = vadd.f32 %v7064_v15, %v7056_v10 }
 0x13e   :  { %1397 = vmatpush.bf16.msrb.mxu1 %v4870_v62  ;;  %v4817_v62 = vld [vmem:[#allocation15 + $0x20] sm:$0xf] }
 0x13f   :  { %1425 = vmatpush.bf16.msrb.mxu3 %v4846_v60  ;;  %v4818_v3 = vor.u32 %v6057_v1, %v4817_v62 }
 0x140   :  { %1386 = vmatpush.bf16.msrb.mxu0 %v4834_v49  ;;  %1413 = vmatpush.bf16.msrb.mxu2 %v4826_v29  ;;  %v4810_v49 = vor.u32 %v6054_v48, %v4809_v47 }
 0x142   :  { %1398 = vmatpush.bf16.msrb.mxu1 %v4854_v34  ;;  %v4801_v34 = vld [vmem:[#allocation15] sm:$0xf] }
 0x143   :  { %1426 = vmatpush.bf16.msrb.mxu3 %v4830_v33  ;;  %v4802_v41 = vor.u32 %v6053_v36, %v4801_v34 }
 0x144   :  { %1387 = vmatpush.bf16.msrb.mxu0 %v4818_v3  ;;  %1414 = vmatpush.bf16.msrb.mxu2 %v4810_v49  ;;  %v580_v3 = vadd.f32 %v7072_v19, %v7058_v11 }
 0x146   :  { %1399 = vmatpush.bf16.msrb.mxu1 %v4838_v55  ;;  %v578_v55 = vadd.f32 %v7060_v12, %v7054_v9 }
 0x147   :  { %1427 = vmatpush.bf16.msrb.mxu3 %v4814_v6  ;;  %v6111_v6 = vld [vmem:[#allocation15 + $0xe4] sm:$0xf] }
 0x148   :  { %1388 = vmatpush.bf16.msrb.mxu0 %v4802_v41 }
 0x14a   :  { %1400 = vmatpush.bf16.msrb.mxu1 %v4822_v28 }
 0x14e   :  { %1401 = vmatpush.bf16.msrb.mxu1 %v4806_v5 }
 0x1b3   :  { %v1116_v58 = vpop.f32.mrf.mxu0  ;;  %v1129_v59 = vpop.f32.mrf.mxu1 }
 0x1b4   :  { %v1159_v60 = vadd.f32 %v1116_v58, %v578_v55  ;;  %v1160_v62 = vadd.f32 %v1129_v59, %v579_v57  ;;  %v5043_v57 = vld [vmem:[#allocation15 + $0xf0] sm:$0xf0]  ;;  %v5049_v58 = vld [vmem:[#allocation15 + $0xe8] sm:$0xf]  ;;  %v6114_v59 = vld [vmem:[#allocation15 + $0xf4] sm:$0xf0] }
 0x1b6   :  { %v1163_v1 = vmul.f32 0.5, %v1159_v60  ;;  %v1167_v2 = vmul.f32 0.5, %v1160_v62  ;;  %v5046_v60 = vor.u32 %v6111_v6, %v5043_v57  ;;  %v5050_v62 = vor.u32 %v6114_v59, %v5049_v58  ;;  %v6099_v6 = vld [vmem:[#allocation15 + $0x84] sm:$0xf]  ;;  %v4995_v57 = vld [vmem:[#allocation15 + $0x90] sm:$0xf0] }
 0x1b7   :  { %v5001_v58 = vld [vmem:[#allocation15 + $0x88] sm:$0xf]  ;;  %v6102_v59 = vld [vmem:[#allocation15 + $0x94] sm:$0xf0] }
 0x1b8   :  { %6370 = vtanh.f32 %v1163_v1  ;;  %v6112_v1 = vld [vmem:[#allocation15 + $0xec] sm:$0xf]  ;;  %1668 = vmatpush.bf16.msra.mxu1 %v5046_v60  ;;  %1681 = vmatpush.bf16.msra.mxu2 %v5050_v62  ;;  %v4998_v60 = vor.u32 %v6099_v6, %v4995_v57  ;;  %v5002_v62 = vor.u32 %v6102_v59, %v5001_v58  ;;  %v6087_v6 = vld [vmem:[#allocation15 + $0x24] sm:$0xf]  ;;  %v4947_v57 = vld [vmem:[#allocation15 + $0x30] sm:$0xf0] }
 0x1b9   :  { %6372 = vtanh.f32 %v1167_v2  ;;  %v5051_v2 = vld [vmem:[#allocation15 + $0xf8] sm:$0xf0]  ;;  %v4953_v58 = vld [vmem:[#allocation15 + $0x28] sm:$0xf]  ;;  %v6090_v59 = vld [vmem:[#allocation15 + $0x34] sm:$0xf0] }
 0x1ba   :  { %v1142_v7 = vpop.f32.mrf.mxu2  ;;  %v1155_v9 = vpop.f32.mrf.mxu3 }
 0x1bb   :  { %v1161_v12 = vadd.f32 %v1142_v7, %v580_v3  ;;  %v1162_v23 = vadd.f32 %v1155_v9, %v581_v20  ;;  %v1118_v10 = vpop.f32.mrf.mxu0  ;;  %v1131_v15 = vpop.f32.mrf.mxu1  ;;  %v5054_v3 = vor.u32 %v6112_v1, %v5051_v2  ;;  %v5025_v20 = vld [vmem:[#allocation15 + $0xc0] sm:$0xf]  ;;  %v6109_v7 = vld [vmem:[#allocation15 + $0xcc] sm:$0xf0]  ;;  %v6107_v9 = vld [vmem:[#allocation15 + $0xc4] sm:$0xf] }
 0x1bc   :  { %v5033_v10 = vld [vmem:[#allocation15 + $0xc8] sm:$0xf]  ;;  %v6110_v15 = vld [vmem:[#allocation15 + $0xd4] sm:$0xf0]  ;;  %v6100_v1 = vld [vmem:[#allocation15 + $0x8c] sm:$0xf] }
 0x1bd   :  { %6374 = vtanh.f32 %v1161_v12  ;;  %v1172_v28 = vmul.f32 0.5, %v1162_v23  ;;  %1694 = vmatpush.bf16.msra.mxu3 %v5054_v3  ;;  %v5026_v12 = vor.u32 %v6109_v7, %v5025_v20  ;;  %v5027_v23 = vld [vmem:[#allocation15 + $0xd0] sm:$0xf0]  ;;  %v5003_v2 = vld [vmem:[#allocation15 + $0x98] sm:$0xf0] }
 0x1be   :  { %v6371_v29 = vpop.eup %6370  ;;  %v5006_v3 = vor.u32 %v6100_v1, %v5003_v2  ;;  %v4977_v20 = vld [vmem:[#allocation15 + $0x60] sm:$0xf]  ;;  %v6097_v7 = vld [vmem:[#allocation15 + $0x6c] sm:$0xf0]  ;;  %v6088_v1 = vld [vmem:[#allocation15 + $0x2c] sm:$0xf] }
 0x1bf   :  { %v6373_v8 = vpop.eup %6372  ;;  %v1165_v30 = vmul.f32 0.5, %v6371_v29  ;;  %6376 = vtanh.f32 %v1172_v28  ;;  %v5030_v28 = vor.u32 %v6107_v9, %v5027_v23  ;;  %v5034_v29 = vor.u32 %v6110_v15, %v5033_v10  ;;  %v6095_v9 = vld [vmem:[#allocation15 + $0x64] sm:$0xf]  ;;  %v4979_v23 = vld [vmem:[#allocation15 + $0x70] sm:$0xf0] }
 0x1c0   :  { %v1169_v33 = vmul.f32 0.5, %v6373_v8  ;;  %v6108_v8 = vld [vmem:[#allocation15 + $0xcc] sm:$0xf]  ;;  %v4985_v10 = vld [vmem:[#allocation15 + $0x68] sm:$0xf] }
 0x1c1   :  { %v1166_v34 = vadd.f32 0.5, %v1165_v30  ;;  %v5035_v30 = vld [vmem:[#allocation15 + $0xd8] sm:$0xf0]  ;;  %1669 = vmatpush.bf16.msra.mxu1 %v5030_v28  ;;  %1682 = vmatpush.bf16.msra.mxu2 %v5034_v29  ;;  %v6098_v15 = vld [vmem:[#allocation15 + $0x74] sm:$0xf0]  ;;  %v4982_v28 = vor.u32 %v6095_v9, %v4979_v23 }
 0x1c2   :  { %v1170_v36 = vadd.f32 0.5, %v1169_v33  ;;  %v1144_v11 = vpop.f32.mrf.mxu2  ;;  %v1157_v19 = vpop.f32.mrf.mxu3  ;;  %v5038_v33 = vor.u32 %v6108_v8, %v5035_v30  ;;  %v4986_v29 = vor.u32 %v6098_v15, %v4985_v10  ;;  %v6096_v8 = vld [vmem:[#allocation15 + $0x6c] sm:$0xf]  ;;  %v4987_v30 = vld [vmem:[#allocation15 + $0x78] sm:$0xf0] }
 0x1c3   :  { %v6375_v40 = vpop.eup %6374  ;;  %v6103_v11 = vld [vmem:[#allocation15 + $0xa4] sm:$0xf]  ;;  %v4955_v2 = vld [vmem:[#allocation15 + $0x38] sm:$0xf0]  ;;  %v4931_v23 = vld [vmem:[#allocation15 + $0x10] sm:$0xf0] }
 0x1c4   :  { %v1176_v13 = vmul.f32 %v1170_v36, %v7138_v32  ;;  %v1177_v21 = vmul.f32 %v6375_v40, %v1166_v34  ;;  %v6113_v32 = vld [vmem:[#allocation15 + $0xec] sm:$0xf0]  ;;  %v5009_v34 = vld [vmem:[#allocation15 + $0xa0] sm:$0xf]  ;;  %1695 = vmatpush.bf16.msra.mxu3 %v5038_v33  ;;  %v5011_v40 = vld [vmem:[#allocation15 + $0xb0] sm:$0xf0]  ;;  %v4990_v33 = vor.u32 %v6096_v8, %v4987_v30 }
 0x1c5   :  { %v6377_v41 = vpop.eup %6376  ;;  %v5042_v55 = vor.u32 %v6113_v32, %v5041_v54  ;;  %v6105_v36 = vld [vmem:[#allocation15 + $0xac] sm:$0xf0]  ;;  %v4993_v54 = vld [vmem:[#allocation15 + $0x80] sm:$0xf]  ;;  %v6083_v9 = vld [vmem:[#allocation15 + $0x4] sm:$0xf] }
 0x1c6   :  { %v7154_v44 = vadd.f32 %v1177_v21, %v1176_v13  ;;  %v1174_v47 = vmul.f32 0.5, %v6377_v41  ;;  %v5010_v19 = vor.u32 %v6105_v36, %v5009_v34  ;;  %v5017_v13 = vld [vmem:[#allocation15 + $0xa8] sm:$0xf]  ;;  %v6106_v21 = vld [vmem:[#allocation15 + $0xb4] sm:$0xf0]  ;;  %v5014_v41 = vor.u32 %v6103_v11, %v5011_v40 }
 0x1c7   :  { %1655 = vmatpush.bf16.msra.mxu0 %v5042_v55  ;;  %v6101_v32 = vld [vmem:[#allocation15 + $0x8c] sm:$0xf0]  ;;  %v4961_v34 = vld [vmem:[#allocation15 + $0x40] sm:$0xf]  ;;  %v6091_v11 = vld [vmem:[#allocation15 + $0x44] sm:$0xf] }
 0x1c8   :  { %6378 = vtanh.f32 %v7154_v44  ;;  %v1175_v48 = vadd.f32 0.5, %v1174_v47  ;;  %v5018_v47 = vor.u32 %v6106_v21, %v5017_v13  ;;  %1670 = vmatpush.bf16.msra.mxu1 %v5014_v41  ;;  %v4994_v55 = vor.u32 %v6101_v32, %v4993_v54  ;;  %v6093_v36 = vld [vmem:[#allocation15 + $0x4c] sm:$0xf0]  ;;  %v4963_v40 = vld [vmem:[#allocation15 + $0x50] sm:$0xf0] }
 0x1c9   :  { %v4969_v13 = vld [vmem:[#allocation15 + $0x48] sm:$0xf]  ;;  %v6094_v21 = vld [vmem:[#allocation15 + $0x54] sm:$0xf0]  ;;  %v4966_v41 = vor.u32 %v6091_v11, %v4963_v40  ;;  %v4945_v54 = vld [vmem:[#allocation15 + $0x20] sm:$0xf] }
 0x1ca   :  { %1683 = vmatpush.bf16.msra.mxu2 %v5018_v47  ;;  %v4970_v47 = vor.u32 %v6094_v21, %v4969_v13  ;;  %v6089_v32 = vld [vmem:[#allocation15 + $0x2c] sm:$0xf0]  ;;  %v4937_v10 = vld [vmem:[#allocation15 + $0x8] sm:$0xf]  ;;  %v6086_v15 = vld [vmem:[#allocation15 + $0x14] sm:$0xf0] }
 0x1cb   :  { %1656 = vmatpush.bf16.msra.mxu0 %v5026_v12  ;;  %v4978_v12 = vor.u32 %v6097_v7, %v4977_v20  ;;  %v4929_v20 = vld [vmem:[#allocation15] sm:$0xf]  ;;  %v6085_v7 = vld [vmem:[#allocation15 + $0xc] sm:$0xf0]  ;;  %v6084_v8 = vld [vmem:[#allocation15 + $0xc] sm:$0xf] }
 0x1cc   :  { %1671 = vmatpush.bf16.msra.mxu1 %v4998_v60  ;;  %v4950_v60 = vor.u32 %v6087_v6, %v4947_v57  ;;  %v4939_v30 = vld [vmem:[#allocation15 + $0x18] sm:$0xf0] }
 0x1ce   :  { %v6379_v5 = vpop.eup %6378  ;;  %1684 = vmatpush.bf16.msra.mxu2 %v5002_v62  ;;  %v4954_v62 = vor.u32 %v6090_v59, %v4953_v58 }
 0x1cf   :  { %v7157_v49 = vmul.f32 %v6379_v5, %v1175_v48  ;;  %v6104_v48 = vld [vmem:[#allocation15 + $0xac] sm:$0xf]  ;;  %v5019_v5 = vld [vmem:[#allocation15 + $0xb8] sm:$0xf0]  ;;  %1657 = vmatpush.bf16.msra.mxu0 %v5010_v19  ;;  %v4962_v19 = vor.u32 %v6093_v36, %v4961_v34 }
 0x1d0   :  { %1672 = vmatpush.bf16.msra.mxu1 %v4982_v28  ;;  %v4934_v28 = vor.u32 %v6083_v9, %v4931_v23  ;;  %v6143_v23 = vld [vmem:[#allocation15 + $0xe4] sm:$0xf] }
 0x1d1   :  { %v1188_v51 = vpack.c.bf16 %v7157_v49, %v7157_v49 }
 0x1d2   :  { %1685 = vmatpush.bf16.msra.mxu2 %v4986_v29  ;;  %v4938_v29 = vor.u32 %v6086_v15, %v4937_v10  ;;  %v5171_v15 = vld [vmem:[#allocation15 + $0xf0] sm:$0xf0] }
 0x1d3   :  { %1389 = vmatmul.bf16.vlgmr.msrb.gmra.mxu0 %v1188_v51  ;;  %1402 = vmatmul.bf16.vlgmr.msrb.gmra.mxu1 %v1188_v51 }
 0x1d4   :  { %1415 = vmatmul.bf16.vlgmr.msrb.gmra.mxu2 %v1188_v51  ;;  %1428 = vmatmul.bf16.vlgmr.msrb.gmra.mxu3 %v1188_v51  ;;  %v5022_v51 = vor.u32 %v6104_v48, %v5019_v5  ;;  %v6092_v48 = vld [vmem:[#allocation15 + $0x4c] sm:$0xf]  ;;  %v4971_v5 = vld [vmem:[#allocation15 + $0x58] sm:$0xf0] }
 0x1d5   :  { %1658 = vmatpush.bf16.msra.mxu0 %v4994_v55  ;;  %1673 = vmatpush.bf16.msra.mxu1 %v4966_v41  ;;  %v4946_v55 = vor.u32 %v6089_v32, %v4945_v54 }
 0x1d6   :  { %1696 = vmatpush.bf16.msra.mxu3 %v5022_v51  ;;  %v4974_v51 = vor.u32 %v6092_v48, %v4971_v5  ;;  %1686 = vmatpush.bf16.msra.mxu2 %v4970_v47 }
 0x1d9   :  { %1659 = vmatpush.bf16.msra.mxu0 %v4978_v12  ;;  %1674 = vmatpush.bf16.msra.mxu1 %v4950_v60  ;;  %v4930_v12 = vor.u32 %v6085_v7, %v4929_v20 }
 0x1da   :  { %1697 = vmatpush.bf16.msra.mxu3 %v5006_v3  ;;  %v4958_v3 = vor.u32 %v6088_v1, %v4955_v2  ;;  %1687 = vmatpush.bf16.msra.mxu2 %v4954_v62 }
 0x1dd   :  { %1660 = vmatpush.bf16.msra.mxu0 %v4962_v19  ;;  %1675 = vmatpush.bf16.msra.mxu1 %v4934_v28  ;;  %v5177_v28 = vld [vmem:[#allocation15 + $0xe8] sm:$0xf] }
 0x1de   :  { %1698 = vmatpush.bf16.msra.mxu3 %v4990_v33  ;;  %v4942_v33 = vor.u32 %v6084_v8, %v4939_v30  ;;  %1688 = vmatpush.bf16.msra.mxu2 %v4938_v29  ;;  %v6146_v29 = vld [vmem:[#allocation15 + $0xf4] sm:$0xf0]  ;;  %v5174_v8 = vor.u32 %v6143_v23, %v5171_v15  ;;  %v5129_v23 = vld [vmem:[#allocation15 + $0x88] sm:$0xf] }
 0x1df   :  { %v5178_v30 = vor.u32 %v6146_v29, %v5177_v28  ;;  %v6132_v29 = vld [vmem:[#allocation15 + $0x8c] sm:$0xf] }
 0x1e1   :  { %1661 = vmatpush.bf16.msra.mxu0 %v4946_v55  ;;  %1942 = vmatpush.bf16.msrb.mxu1 %v5174_v8  ;;  %v5131_v8 = vld [vmem:[#allocation15 + $0x98] sm:$0xf0] }
 0x1e2   :  { %1699 = vmatpush.bf16.msra.mxu3 %v4974_v51  ;;  %1955 = vmatpush.bf16.msrb.mxu2 %v5178_v30  ;;  %v5134_v30 = vor.u32 %v6132_v29, %v5131_v8  ;;  %v5057_v29 = vld [vmem:[#allocation15] sm:$0xf]  ;;  %v6117_v8 = vld [vmem:[#allocation15 + $0xc] sm:$0xf0] }
 0x1e5   :  { %1662 = vmatpush.bf16.msra.mxu0 %v4930_v12  ;;  %v5169_v12 = vld [vmem:[#allocation15 + $0xe0] sm:$0xf] }
 0x1e6   :  { %1700 = vmatpush.bf16.msra.mxu3 %v4958_v3 }
 0x1ea   :  { %1701 = vmatpush.bf16.msra.mxu3 %v4942_v33  ;;  %v6144_v33 = vld [vmem:[#allocation15 + $0xec] sm:$0xf] }
 0x250   :  { %v1390_v34 = vpop.f32.mrf.mxu0  ;;  %v1403_v36 = vpop.f32.mrf.mxu1 }
 0x251   :  { %v1433_v11 = vadd.f32 %v1390_v34, %v7067_v16  ;;  %v1434_v19 = vadd.f32 %v1403_v36, %v7070_v18  ;;  %v5179_v34 = vld [vmem:[#allocation15 + $0xf8] sm:$0xf0] }
 0x252   :  { %v5182_v36 = vor.u32 %v6144_v33, %v5179_v34  ;;  %v5105_v33 = vld [vmem:[#allocation15 + $0x60] sm:$0xf]  ;;  %v6129_v34 = vld [vmem:[#allocation15 + $0x6c] sm:$0xf0] }
 0x253   :  { %v1437_v40 = vmul.f32 0.5, %v1433_v11  ;;  %v1441_v13 = vmul.f32 0.5, %v1434_v19  ;;  %v5153_v11 = vld [vmem:[#allocation15 + $0xc0] sm:$0xf]  ;;  %v6141_v19 = vld [vmem:[#allocation15 + $0xcc] sm:$0xf0] }
 0x254   :  { %1968 = vmatpush.bf16.msrb.mxu3 %v5182_v36  ;;  %v6127_v36 = vld [vmem:[#allocation15 + $0x64] sm:$0xf] }
 0x255   :  { %6380 = vtanh.f32 %v1437_v40  ;;  %v6139_v40 = vld [vmem:[#allocation15 + $0xc4] sm:$0xf] }
 0x256   :  { %6382 = vtanh.f32 %v1441_v13  ;;  %v5154_v13 = vor.u32 %v6141_v19, %v5153_v11  ;;  %v5106_v11 = vor.u32 %v6129_v34, %v5105_v33  ;;  %v5107_v19 = vld [vmem:[#allocation15 + $0x70] sm:$0xf0]  ;;  %v5058_v33 = vor.u32 %v6117_v8, %v5057_v29 }
 0x257   :  { %v1416_v21 = vpop.f32.mrf.mxu2  ;;  %v1429_v41 = vpop.f32.mrf.mxu3  ;;  %v5059_v34 = vld [vmem:[#allocation15 + $0x10] sm:$0xf0] }
 0x258   :  { %v1435_v47 = vadd.f32 %v1416_v21, %v7077_v22  ;;  %v1436_v48 = vadd.f32 %v1429_v41, %v7082_v25  ;;  %v1392_v5 = vpop.f32.mrf.mxu0  ;;  %v1405_v51 = vpop.f32.mrf.mxu1  ;;  %v5155_v21 = vld [vmem:[#allocation15 + $0xd0] sm:$0xf0]  ;;  %v5161_v41 = vld [vmem:[#allocation15 + $0xc8] sm:$0xf] }
 0x259   :  { %v6140_v51 = vld [vmem:[#allocation15 + $0xcc] sm:$0xf] }
 0x25a   :  { %6384 = vtanh.f32 %v1435_v47  ;;  %v1446_v54 = vmul.f32 0.5, %v1436_v48  ;;  %v6142_v47 = vld [vmem:[#allocation15 + $0xd4] sm:$0xf0]  ;;  %v5158_v48 = vor.u32 %v6139_v40, %v5155_v21  ;;  %v5113_v40 = vld [vmem:[#allocation15 + $0x68] sm:$0xf]  ;;  %v5110_v21 = vor.u32 %v6127_v36, %v5107_v19 }
 0x25b   :  { %v6381_v32 = vpop.eup %6380  ;;  %v5162_v5 = vor.u32 %v6142_v47, %v5161_v41  ;;  %v6128_v47 = vld [vmem:[#allocation15 + $0x6c] sm:$0xf]  ;;  %v5065_v36 = vld [vmem:[#allocation15 + $0x8] sm:$0xf] }
 0x25c   :  { %v6383_v6 = vpop.eup %6382  ;;  %v1439_v55 = vmul.f32 0.5, %v6381_v32  ;;  %6386 = vtanh.f32 %v1446_v54  ;;  %v5163_v54 = vld [vmem:[#allocation15 + $0xd8] sm:$0xf0]  ;;  %1943 = vmatpush.bf16.msrb.mxu1 %v5158_v48 }
 0x25d   :  { %v1443_v16 = vmul.f32 0.5, %v6383_v6  ;;  %v5166_v32 = vor.u32 %v6140_v51, %v5163_v54  ;;  %1956 = vmatpush.bf16.msrb.mxu2 %v5162_v5  ;;  %v5137_v6 = vld [vmem:[#allocation15 + $0xa0] sm:$0xf]  ;;  %v5115_v48 = vld [vmem:[#allocation15 + $0x78] sm:$0xf0] }
 0x25e   :  { %v1440_v18 = vadd.f32 0.5, %v1439_v55  ;;  %v6137_v55 = vld [vmem:[#allocation15 + $0xac] sm:$0xf0]  ;;  %v5118_v5 = vor.u32 %v6128_v47, %v5115_v48  ;;  %v5089_v51 = vld [vmem:[#allocation15 + $0x40] sm:$0xf] }
 0x25f   :  { %v1444_v57 = vadd.f32 0.5, %v1443_v16  ;;  %v1418_v58 = vpop.f32.mrf.mxu2  ;;  %v1431_v59 = vpop.f32.mrf.mxu3  ;;  %v6135_v16 = vld [vmem:[#allocation15 + $0xa4] sm:$0xf]  ;;  %1969 = vmatpush.bf16.msrb.mxu3 %v5166_v32  ;;  %v6125_v54 = vld [vmem:[#allocation15 + $0x4c] sm:$0xf0] }
 0x260   :  { %v6385_v60 = vpop.eup %6384  ;;  %v5145_v58 = vld [vmem:[#allocation15 + $0xa8] sm:$0xf]  ;;  %v6138_v59 = vld [vmem:[#allocation15 + $0xb4] sm:$0xf0]  ;;  %v6123_v32 = vld [vmem:[#allocation15 + $0x44] sm:$0xf] }
 0x261   :  { %v1450_v62 = vmul.f32 %v1444_v57, %v7154_v44  ;;  %v1451_v1 = vmul.f32 %v6385_v60, %v1440_v18  ;;  %v6145_v44 = vld [vmem:[#allocation15 + $0xec] sm:$0xf0]  ;;  %v5138_v18 = vor.u32 %v6137_v55, %v5137_v6  ;;  %v5139_v57 = vld [vmem:[#allocation15 + $0xb0] sm:$0xf0]  ;;  %v5090_v6 = vor.u32 %v6125_v54, %v5089_v51  ;;  %v7173_v47 = vld [vmem:[#allocation16] sm:$0xff] }
 0x262   :  { %v6387_v22 = vpop.eup %6386  ;;  %v5170_v10 = vor.u32 %v6145_v44, %v5169_v12  ;;  %v5142_v60 = vor.u32 %v6135_v16, %v5139_v57  ;;  %v5123_v44 = vld [vmem:[#allocation15 + $0x90] sm:$0xf0]  ;;  %v5097_v16 = vld [vmem:[#allocation15 + $0x48] sm:$0xf]  ;;  %v586_v48 = vadd.f32 %v7173_v47, %v7079_v24 }
 0x263   :  { %v7166_v2 = vadd.f32 %v1451_v1, %v1450_v62  ;;  %v1448_v25 = vmul.f32 0.5, %v6387_v22  ;;  %v5146_v62 = vor.u32 %v6138_v59, %v5145_v58  ;;  %v6136_v1 = vld [vmem:[#allocation15 + $0xac] sm:$0xf]  ;;  %v5147_v22 = vld [vmem:[#allocation15 + $0xb8] sm:$0xf0] }
 0x264   :  { %1929 = vmatpush.bf16.msrb.mxu0 %v5170_v10  ;;  %1944 = vmatpush.bf16.msrb.mxu1 %v5142_v60  ;;  %v6134_v10 = vld [vmem:[#allocation15 + $0x94] sm:$0xf0]  ;;  %v5091_v55 = vld [vmem:[#allocation15 + $0x50] sm:$0xf0]  ;;  %v6124_v59 = vld [vmem:[#allocation15 + $0x4c] sm:$0xf] }
 0x265   :  { %6388 = vtanh.f32 %v7166_v2  ;;  %v1449_v3 = vadd.f32 0.5, %v1448_v25  ;;  %v5150_v25 = vor.u32 %v6136_v1, %v5147_v22  ;;  %1957 = vmatpush.bf16.msrb.mxu2 %v5146_v62  ;;  %v5130_v28 = vor.u32 %v6134_v10, %v5129_v23  ;;  %v5099_v60 = vld [vmem:[#allocation15 + $0x58] sm:$0xf0]  ;;  %v5073_v1 = vld [vmem:[#allocation15 + $0x20] sm:$0xf] }
 0x266   :  { %v5094_v57 = vor.u32 %v6123_v32, %v5091_v55  ;;  %v5102_v62 = vor.u32 %v6124_v59, %v5099_v60  ;;  %v6121_v22 = vld [vmem:[#allocation15 + $0x2c] sm:$0xf0]  ;;  %v6120_v10 = vld [vmem:[#allocation15 + $0x2c] sm:$0xf]  ;;  %v7185_v59 = vld [vmem:[#allocation16 + $0x18] sm:$0xff] }
 0x267   :  { %1970 = vmatpush.bf16.msrb.mxu3 %v5150_v25  ;;  %v6119_v25 = vld [vmem:[#allocation15 + $0x24] sm:$0xf]  ;;  %v589_v24 = vadd.f32 %v7185_v59, %v7088_v31 }
 0x268   :  { %1930 = vmatpush.bf16.msrb.mxu0 %v5154_v13  ;;  %v6130_v13 = vld [vmem:[#allocation15 + $0x74] sm:$0xf0] }
 0x269   :  { %1958 = vmatpush.bf16.msrb.mxu2 %v5130_v28  ;;  %v5114_v41 = vor.u32 %v6130_v13, %v5113_v40  ;;  %v6116_v13 = vld [vmem:[#allocation15 + $0xc] sm:$0xf] }
 0x26b   :  { %v6389_v20 = vpop.eup %6388  ;;  %1971 = vmatpush.bf16.msrb.mxu3 %v5134_v30  ;;  %v6115_v30 = vld [vmem:[#allocation15 + $0x4] sm:$0xf] }
 0x26c   :  { %v7169_v7 = vmul.f32 %v6389_v20, %v1449_v3  ;;  %1931 = vmatpush.bf16.msrb.mxu0 %v5138_v18  ;;  %v5121_v3 = vld [vmem:[#allocation15 + $0x80] sm:$0xf]  ;;  %v6133_v20 = vld [vmem:[#allocation15 + $0x8c] sm:$0xf0]  ;;  %v6126_v18 = vld [vmem:[#allocation15 + $0x54] sm:$0xf0]  ;;  %v5062_v19 = vor.u32 %v6115_v30, %v5059_v34 }
 0x26d   :  { %v5122_v12 = vor.u32 %v6133_v20, %v5121_v3  ;;  %1959 = vmatpush.bf16.msrb.mxu2 %v5114_v41  ;;  %v5098_v58 = vor.u32 %v6126_v18, %v5097_v16  ;;  %v5074_v3 = vor.u32 %v6121_v22, %v5073_v1  ;;  %v5075_v20 = vld [vmem:[#allocation15 + $0x30] sm:$0xf0] }
 0x26e   :  { %v1462_v9 = vpack.c.bf16 %v7169_v7, %v7169_v7 }
 0x26f   :  { %1972 = vmatpush.bf16.msrb.mxu3 %v5118_v5  ;;  %v7177_v5 = vld [vmem:[#allocation16 + $0x8] sm:$0xff] }
 0x270   :  { %1663 = vmatmul.bf16.vlgmr.msra.gmra.mxu0 %v1462_v9  ;;  %1676 = vmatmul.bf16.vlgmr.msra.gmra.mxu1 %v1462_v9  ;;  %v587_v51 = vadd.f32 %v7177_v5, %v7084_v26 }
 0x271   :  { %1689 = vmatmul.bf16.vlgmr.msra.gmra.mxu2 %v1462_v9  ;;  %1702 = vmatmul.bf16.vlgmr.msra.gmra.mxu3 %v1462_v9  ;;  %v6131_v9 = vld [vmem:[#allocation15 + $0x84] sm:$0xf] }
 0x272   :  { %v5126_v15 = vor.u32 %v6131_v9, %v5123_v44  ;;  %1932 = vmatpush.bf16.msrb.mxu0 %v5122_v12  ;;  %1960 = vmatpush.bf16.msrb.mxu2 %v5098_v58  ;;  %v5081_v9 = vld [vmem:[#allocation15 + $0x28] sm:$0xf]  ;;  %v6122_v12 = vld [vmem:[#allocation15 + $0x34] sm:$0xf0]  ;;  %v5078_v44 = vor.u32 %v6119_v25, %v5075_v20 }
 0x273   :  { %1973 = vmatpush.bf16.msrb.mxu3 %v5102_v62  ;;  %v5082_v23 = vor.u32 %v6122_v12, %v5081_v9 }
 0x274   :  { %1945 = vmatpush.bf16.msrb.mxu1 %v5126_v15  ;;  %v5083_v15 = vld [vmem:[#allocation15 + $0x38] sm:$0xf0] }
 0x275   :  { %v5086_v28 = vor.u32 %v6120_v10, %v5083_v15 }
 0x276   :  { %1933 = vmatpush.bf16.msrb.mxu0 %v5106_v11  ;;  %1961 = vmatpush.bf16.msrb.mxu2 %v5082_v23  ;;  %v6118_v11 = vld [vmem:[#allocation15 + $0x14] sm:$0xf0] }
 0x277   :  { %1974 = vmatpush.bf16.msrb.mxu3 %v5086_v28  ;;  %v5066_v40 = vor.u32 %v6118_v11, %v5065_v36 }
 0x278   :  { %1946 = vmatpush.bf16.msrb.mxu1 %v5110_v21  ;;  %v5067_v21 = vld [vmem:[#allocation15 + $0x18] sm:$0xf0] }
 0x279   :  { %v5070_v41 = vor.u32 %v6116_v13, %v5067_v21  ;;  %v6175_v13 = vld [vmem:[#allocation15 + $0xe4] sm:$0xf] }
 0x27a   :  { %1934 = vmatpush.bf16.msrb.mxu0 %v5090_v6  ;;  %1962 = vmatpush.bf16.msrb.mxu2 %v5066_v40  ;;  %v5297_v40 = vld [vmem:[#allocation15 + $0xe0] sm:$0xf] }
 0x27b   :  { %1975 = vmatpush.bf16.msrb.mxu3 %v5070_v41  ;;  %v5299_v41 = vld [vmem:[#allocation15 + $0xf0] sm:$0xf0] }
 0x27c   :  { %1947 = vmatpush.bf16.msrb.mxu1 %v5094_v57  ;;  %v7181_v57 = vld [vmem:[#allocation16 + $0x10] sm:$0xff] }
 0x27d   :  { %v588_v58 = vadd.f32 %v7181_v57, %v7086_v27 }
 0x27e   :  { %1935 = vmatpush.bf16.msrb.mxu0 %v5074_v3 }
 0x280   :  { %1948 = vmatpush.bf16.msrb.mxu1 %v5078_v44 }
 0x282   :  { %1936 = vmatpush.bf16.msrb.mxu0 %v5058_v33 }
 0x284   :  { %1949 = vmatpush.bf16.msrb.mxu1 %v5062_v19 }
 0x2ed   :  { %v1664_v54 = vpop.f32.mrf.mxu0  ;;  %v1677_v32 = vpop.f32.mrf.mxu1 }
 0x2ee   :  { %v1707_v6 = vadd.f32 %v1664_v54, %v586_v48  ;;  %v1708_v55 = vadd.f32 %v1677_v32, %v587_v51  ;;  %v5305_v48 = vld [vmem:[#allocation15 + $0xe8] sm:$0xf]  ;;  %v6178_v51 = vld [vmem:[#allocation15 + $0xf4] sm:$0xf0]  ;;  %v5302_v54 = vor.u32 %v6175_v13, %v5299_v41  ;;  %v5251_v13 = vld [vmem:[#allocation15 + $0x90] sm:$0xf0] }
 0x2ef   :  { %v5306_v32 = vor.u32 %v6178_v51, %v5305_v48  ;;  %v6166_v41 = vld [vmem:[#allocation15 + $0x94] sm:$0xf0] }
 0x2f0   :  { %v1711_v16 = vmul.f32 0.5, %v1707_v6  ;;  %v1715_v18 = vmul.f32 0.5, %v1708_v55  ;;  %v6176_v6 = vld [vmem:[#allocation15 + $0xec] sm:$0xf]  ;;  %v5307_v55 = vld [vmem:[#allocation15 + $0xf8] sm:$0xf0]  ;;  %2216 = vmatpush.bf16.msra.mxu1 %v5302_v54 }
 0x2f1   :  { %2229 = vmatpush.bf16.msra.mxu2 %v5306_v32  ;;  %v6164_v54 = vld [vmem:[#allocation15 + $0x8c] sm:$0xf]  ;;  %v5259_v32 = vld [vmem:[#allocation15 + $0x98] sm:$0xf0] }
 0x2f2   :  { %6390 = vtanh.f32 %v1711_v16  ;;  %v5310_v16 = vor.u32 %v6176_v6, %v5307_v55  ;;  %v5262_v6 = vor.u32 %v6164_v54, %v5259_v32  ;;  %v5233_v55 = vld [vmem:[#allocation15 + $0x60] sm:$0xf] }
 0x2f3   :  { %6392 = vtanh.f32 %v1715_v18  ;;  %v5281_v18 = vld [vmem:[#allocation15 + $0xc0] sm:$0xf] }
 0x2f4   :  { %v1690_v26 = vpop.f32.mrf.mxu2  ;;  %v1703_v60 = vpop.f32.mrf.mxu3  ;;  %2242 = vmatpush.bf16.msra.mxu3 %v5310_v16  ;;  %v6161_v16 = vld [vmem:[#allocation15 + $0x6c] sm:$0xf0]  ;;  %v5185_v32 = vld [vmem:[#allocation15] sm:$0xf] }
 0x2f5   :  { %v1709_v62 = vadd.f32 %v1690_v26, %v588_v58  ;;  %v1710_v1 = vadd.f32 %v1703_v60, %v589_v24  ;;  %v1666_v22 = vpop.f32.mrf.mxu0  ;;  %v1679_v25 = vpop.f32.mrf.mxu1  ;;  %v6173_v58 = vld [vmem:[#allocation15 + $0xcc] sm:$0xf0]  ;;  %v6171_v24 = vld [vmem:[#allocation15 + $0xc4] sm:$0xf]  ;;  %v5283_v60 = vld [vmem:[#allocation15 + $0xd0] sm:$0xf0] }
 0x2f6   :  { %v5282_v26 = vor.u32 %v6173_v58, %v5281_v18  ;;  %v5286_v22 = vor.u32 %v6171_v24, %v5283_v60  ;;  %v6159_v18 = vld [vmem:[#allocation15 + $0x64] sm:$0xf]  ;;  %v5234_v58 = vor.u32 %v6161_v16, %v5233_v55  ;;  %v5235_v24 = vld [vmem:[#allocation15 + $0x70] sm:$0xf0]  ;;  %v6162_v60 = vld [vmem:[#allocation15 + $0x74] sm:$0xf0] }
 0x2f7   :  { %6394 = vtanh.f32 %v1709_v62  ;;  %v1720_v3 = vmul.f32 0.5, %v1710_v1  ;;  %v5289_v62 = vld [vmem:[#allocation15 + $0xc8] sm:$0xf]  ;;  %v6174_v1 = vld [vmem:[#allocation15 + $0xd4] sm:$0xf0] }
 0x2f8   :  { %v6391_v20 = vpop.eup %6390  ;;  %v5290_v25 = vor.u32 %v6174_v1, %v5289_v62  ;;  %2217 = vmatpush.bf16.msra.mxu1 %v5286_v22  ;;  %v5238_v62 = vor.u32 %v6159_v18, %v5235_v24  ;;  %v6160_v22 = vld [vmem:[#allocation15 + $0x6c] sm:$0xf]  ;;  %v6147_v55 = vld [vmem:[#allocation15 + $0x4] sm:$0xf]  ;;  %v5187_v18 = vld [vmem:[#allocation15 + $0x10] sm:$0xf0] }
 0x2f9   :  { %v6393_v9 = vpop.eup %6392  ;;  %v1713_v12 = vmul.f32 0.5, %v6391_v20  ;;  %6396 = vtanh.f32 %v1720_v3  ;;  %v6172_v3 = vld [vmem:[#allocation15 + $0xcc] sm:$0xf]  ;;  %v5291_v20 = vld [vmem:[#allocation15 + $0xd8] sm:$0xf0] }
 0x2fa   :  { %v1717_v44 = vmul.f32 0.5, %v6393_v9  ;;  %v5294_v9 = vor.u32 %v6172_v3, %v5291_v20  ;;  %2230 = vmatpush.bf16.msra.mxu2 %v5290_v25  ;;  %v5243_v25 = vld [vmem:[#allocation15 + $0x78] sm:$0xf0]  ;;  %v5217_v20 = vld [vmem:[#allocation15 + $0x40] sm:$0xf] }
 0x2fb   :  { %v1714_v27 = vadd.f32 0.5, %v1713_v12  ;;  %v5265_v12 = vld [vmem:[#allocation15 + $0xa0] sm:$0xf]  ;;  %v5246_v3 = vor.u32 %v6160_v22, %v5243_v25  ;;  %v6150_v24 = vld [vmem:[#allocation15 + $0x14] sm:$0xf0] }
 0x2fc   :  { %v1718_v23 = vadd.f32 0.5, %v1717_v44  ;;  %v1692_v10 = vpop.f32.mrf.mxu2  ;;  %v1705_v15 = vpop.f32.mrf.mxu3  ;;  %v6169_v44 = vld [vmem:[#allocation15 + $0xac] sm:$0xf0]  ;;  %2243 = vmatpush.bf16.msra.mxu3 %v5294_v9 }
 0x2fd   :  { %v6395_v28 = vpop.eup %6394  ;;  %v5267_v10 = vld [vmem:[#allocation15 + $0xb0] sm:$0xf0]  ;;  %v5273_v15 = vld [vmem:[#allocation15 + $0xa8] sm:$0xf]  ;;  %v6157_v9 = vld [vmem:[#allocation15 + $0x4c] sm:$0xf0] }
 0x2fe   :  { %v1724_v31 = vmul.f32 %v1718_v23, %v7166_v2  ;;  %v1725_v29 = vmul.f32 %v6395_v28, %v1714_v27  ;;  %v6177_v2 = vld [vmem:[#allocation15 + $0xec] sm:$0xf0]  ;;  %v6167_v27 = vld [vmem:[#allocation15 + $0xa4] sm:$0xf]  ;;  %v5266_v23 = vor.u32 %v6169_v44, %v5265_v12  ;;  %v6170_v28 = vld [vmem:[#allocation15 + $0xb4] sm:$0xf0]  ;;  %v5218_v44 = vor.u32 %v6157_v9, %v5217_v20 }
 0x2ff   :  { %v6397_v8 = vpop.eup %6396  ;;  %v5298_v21 = vor.u32 %v6177_v2, %v5297_v40  ;;  %v6163_v40 = vld [vmem:[#allocation15 + $0x84] sm:$0xf] }
 0x300   :  { %v7190_v30 = vadd.f32 %v1725_v29, %v1724_v31  ;;  %v1722_v33 = vmul.f32 0.5, %v6397_v8  ;;  %v5270_v31 = vor.u32 %v6167_v27, %v5267_v10  ;;  %v5274_v29 = vor.u32 %v6170_v28, %v5273_v15  ;;  %v6168_v8 = vld [vmem:[#allocation15 + $0xac] sm:$0xf]  ;;  %v6155_v12 = vld [vmem:[#allocation15 + $0x44] sm:$0xf] }
 0x301   :  { %2203 = vmatpush.bf16.msra.mxu0 %v5298_v21  ;;  %v5257_v21 = vld [vmem:[#allocation15 + $0x88] sm:$0xf]  ;;  %v5254_v48 = vor.u32 %v6163_v40, %v5251_v13  ;;  %v5219_v27 = vld [vmem:[#allocation15 + $0x50] sm:$0xf0]  ;;  %v6158_v10 = vld [vmem:[#allocation15 + $0x54] sm:$0xf0] }
 0x302   :  { %6398 = vtanh.f32 %v7190_v30  ;;  %v1723_v34 = vadd.f32 0.5, %v1722_v33  ;;  %v5275_v33 = vld [vmem:[#allocation15 + $0xb8] sm:$0xf0]  ;;  %2218 = vmatpush.bf16.msra.mxu1 %v5270_v31  ;;  %2231 = vmatpush.bf16.msra.mxu2 %v5274_v29  ;;  %v5258_v51 = vor.u32 %v6166_v41, %v5257_v21  ;;  %v5222_v15 = vor.u32 %v6155_v12, %v5219_v27  ;;  %v6156_v31 = vld [vmem:[#allocation15 + $0x4c] sm:$0xf] }
 0x303   :  { %v5227_v29 = vld [vmem:[#allocation15 + $0x58] sm:$0xf0]  ;;  %v5203_v40 = vld [vmem:[#allocation15 + $0x30] sm:$0xf0]  ;;  %v6154_v13 = vld [vmem:[#allocation15 + $0x34] sm:$0xf0] }
 0x305   :  { %2204 = vmatpush.bf16.msra.mxu0 %v5282_v26  ;;  %v5241_v26 = vld [vmem:[#allocation15 + $0x68] sm:$0xf] }
 0x306   :  { %2219 = vmatpush.bf16.msra.mxu1 %v5254_v48  ;;  %2232 = vmatpush.bf16.msra.mxu2 %v5258_v51  ;;  %v5242_v1 = vor.u32 %v6162_v60, %v5241_v26  ;;  %v6152_v48 = vld [vmem:[#allocation15 + $0x2c] sm:$0xf]  ;;  %v5211_v51 = vld [vmem:[#allocation15 + $0x38] sm:$0xf0]  ;;  %v5190_v26 = vor.u32 %v6147_v55, %v5187_v18  ;;  %v6207_v55 = vld [vmem:[#allocation15 + $0xe4] sm:$0xf] }
 0x307   :  { %v5214_v54 = vor.u32 %v6152_v48, %v5211_v51  ;;  %v5427_v18 = vld [vmem:[#allocation15 + $0xf0] sm:$0xf0] }
 0x308   :  { %v6399_v36 = vpop.eup %6398 }
 0x309   :  { %v7193_v11 = vmul.f32 %v6399_v36, %v1723_v34  ;;  %2205 = vmatpush.bf16.msra.mxu0 %v5266_v23  ;;  %v5278_v34 = vor.u32 %v6168_v8, %v5275_v33  ;;  %v5249_v36 = vld [vmem:[#allocation15 + $0x80] sm:$0xf]  ;;  %v5225_v23 = vld [vmem:[#allocation15 + $0x48] sm:$0xf]  ;;  %v5230_v8 = vor.u32 %v6156_v31, %v5227_v29 }
 0x30a   :  { %2220 = vmatpush.bf16.msra.mxu1 %v5238_v62  ;;  %2233 = vmatpush.bf16.msra.mxu2 %v5242_v1  ;;  %v5226_v28 = vor.u32 %v6158_v10, %v5225_v23  ;;  %v5201_v33 = vld [vmem:[#allocation15 + $0x20] sm:$0xf]  ;;  %v6148_v62 = vld [vmem:[#allocation15 + $0xc] sm:$0xf]  ;;  %v5195_v1 = vld [vmem:[#allocation15 + $0x18] sm:$0xf0] }
 0x30b   :  { %v1736_v19 = vpack.c.bf16 %v7193_v11, %v7193_v11  ;;  %2244 = vmatpush.bf16.msra.mxu3 %v5278_v34  ;;  %v6153_v34 = vld [vmem:[#allocation15 + $0x2c] sm:$0xf0]  ;;  %v5198_v22 = vor.u32 %v6148_v62, %v5195_v1  ;;  %v6208_v62 = vld [vmem:[#allocation15 + $0xec] sm:$0xf]  ;;  %v5435_v1 = vld [vmem:[#allocation15 + $0xf8] sm:$0xf0] }
 0x30d   :  { %1937 = vmatmul.bf16.vlgmr.msrb.gmra.mxu0 %v1736_v19  ;;  %1950 = vmatmul.bf16.vlgmr.msrb.gmra.mxu1 %v1736_v19 }
 0x30e   :  { %1963 = vmatmul.bf16.vlgmr.msrb.gmra.mxu2 %v1736_v19  ;;  %1976 = vmatmul.bf16.vlgmr.msrb.gmra.mxu3 %v1736_v19  ;;  %v6165_v19 = vld [vmem:[#allocation15 + $0x8c] sm:$0xf0] }
 0x30f   :  { %v5250_v2 = vor.u32 %v6165_v19, %v5249_v36  ;;  %2245 = vmatpush.bf16.msra.mxu3 %v5262_v6  ;;  %2221 = vmatpush.bf16.msra.mxu1 %v5222_v15  ;;  %v6151_v36 = vld [vmem:[#allocation15 + $0x24] sm:$0xf]  ;;  %v5202_v19 = vor.u32 %v6153_v34, %v5201_v33  ;;  %v6149_v6 = vld [vmem:[#allocation15 + $0xc] sm:$0xf0] }
 0x310   :  { %2234 = vmatpush.bf16.msra.mxu2 %v5226_v28  ;;  %v5206_v21 = vor.u32 %v6151_v36, %v5203_v40  ;;  %v5186_v16 = vor.u32 %v6149_v6, %v5185_v32  ;;  %v5425_v6 = vld [vmem:[#allocation15 + $0xe0] sm:$0xf] }
 0x311   :  { %2206 = vmatpush.bf16.msra.mxu0 %v5250_v2  ;;  %v5209_v2 = vld [vmem:[#allocation15 + $0x28] sm:$0xf] }
 0x312   :  { %v5210_v41 = vor.u32 %v6154_v13, %v5209_v2 }
 0x313   :  { %2246 = vmatpush.bf16.msra.mxu3 %v5246_v3  ;;  %2222 = vmatpush.bf16.msra.mxu1 %v5206_v21 }
 0x314   :  { %2235 = vmatpush.bf16.msra.mxu2 %v5210_v41 }
 0x315   :  { %2207 = vmatpush.bf16.msra.mxu0 %v5234_v58  ;;  %v5193_v58 = vld [vmem:[#allocation15 + $0x8] sm:$0xf] }
 0x316   :  { %v5194_v60 = vor.u32 %v6150_v24, %v5193_v58  ;;  %v5433_v58 = vld [vmem:[#allocation15 + $0xe8] sm:$0xf]  ;;  %v6210_v24 = vld [vmem:[#allocation15 + $0xf4] sm:$0xf0] }
 0x317   :  { %2247 = vmatpush.bf16.msra.mxu3 %v5230_v8  ;;  %2223 = vmatpush.bf16.msra.mxu1 %v5190_v26  ;;  %v5430_v26 = vor.u32 %v6207_v55, %v5427_v18  ;;  %v6196_v18 = vld [vmem:[#allocation15 + $0x8c] sm:$0xf] }
 0x318   :  { %2236 = vmatpush.bf16.msra.mxu2 %v5194_v60  ;;  %v5434_v60 = vor.u32 %v6210_v24, %v5433_v58  ;;  %v5387_v58 = vld [vmem:[#allocation15 + $0x98] sm:$0xf0] }
 0x319   :  { %2208 = vmatpush.bf16.msra.mxu0 %v5218_v44  ;;  %v5390_v24 = vor.u32 %v6196_v18, %v5387_v58  ;;  %v6179_v18 = vld [vmem:[#allocation15 + $0x4] sm:$0xf] }
 0x31b   :  { %2248 = vmatpush.bf16.msra.mxu3 %v5214_v54  ;;  %2490 = vmatpush.bf16.msrb.mxu1 %v5430_v26  ;;  %v5361_v26 = vld [vmem:[#allocation15 + $0x60] sm:$0xf] }
 0x31c   :  { %2503 = vmatpush.bf16.msrb.mxu2 %v5434_v60  ;;  %v6193_v60 = vld [vmem:[#allocation15 + $0x6c] sm:$0xf0] }
 0x31d   :  { %2209 = vmatpush.bf16.msra.mxu0 %v5202_v19 }
 0x31f   :  { %2249 = vmatpush.bf16.msra.mxu3 %v5198_v22  ;;  %v5438_v22 = vor.u32 %v6208_v62, %v5435_v1  ;;  %v6191_v62 = vld [vmem:[#allocation15 + $0x64] sm:$0xf]  ;;  %v5362_v1 = vor.u32 %v6193_v60, %v5361_v26  ;;  %v5321_v26 = vld [vmem:[#allocation15 + $0x8] sm:$0xf]  ;;  %v6182_v60 = vld [vmem:[#allocation15 + $0x14] sm:$0xf0] }
 0x321   :  { %2210 = vmatpush.bf16.msra.mxu0 %v5186_v16 }
 0x323   :  { %2516 = vmatpush.bf16.msrb.mxu3 %v5438_v22  ;;  %v5363_v22 = vld [vmem:[#allocation15 + $0x70] sm:$0xf0] }
 0x38a   :  { %v1938_v25 = vpop.f32.mrf.mxu0  ;;  %v1951_v3 = vpop.f32.mrf.mxu1 }
 0x38b   :  { %v1981_v20 = vadd.f32 %v1938_v25, %v7091_v37  ;;  %v1982_v9 = vadd.f32 %v1951_v3, %v7094_v43  ;;  %v5409_v25 = vld [vmem:[#allocation15 + $0xc0] sm:$0xf]  ;;  %v6205_v3 = vld [vmem:[#allocation15 + $0xcc] sm:$0xf0] }
 0x38d   :  { %v1985_v12 = vmul.f32 0.5, %v1981_v20  ;;  %v1989_v44 = vmul.f32 0.5, %v1982_v9  ;;  %v6203_v20 = vld [vmem:[#allocation15 + $0xc4] sm:$0xf]  ;;  %v5410_v9 = vor.u32 %v6205_v3, %v5409_v25  ;;  %v5369_v25 = vld [vmem:[#allocation15 + $0x68] sm:$0xf] }
 0x38e   :  { %v6194_v3 = vld [vmem:[#allocation15 + $0x74] sm:$0xf0] }
 0x38f   :  { %6400 = vtanh.f32 %v1985_v12  ;;  %v5411_v12 = vld [vmem:[#allocation15 + $0xd0] sm:$0xf0] }
 0x390   :  { %6402 = vtanh.f32 %v1989_v44  ;;  %v5417_v44 = vld [vmem:[#allocation15 + $0xc8] sm:$0xf] }
 0x391   :  { %v1964_v27 = vpop.f32.mrf.mxu2  ;;  %v1977_v23 = vpop.f32.mrf.mxu3 }
 0x392   :  { %v1983_v10 = vadd.f32 %v1964_v27, %v7097_v61  ;;  %v1984_v15 = vadd.f32 %v1977_v23, %v7102_v14  ;;  %v1940_v28 = vpop.f32.mrf.mxu0  ;;  %v1953_v31 = vpop.f32.mrf.mxu1  ;;  %v6206_v27 = vld [vmem:[#allocation15 + $0xd4] sm:$0xf0]  ;;  %v5414_v23 = vor.u32 %v6203_v20, %v5411_v12  ;;  %v5366_v20 = vor.u32 %v6191_v62, %v5363_v22  ;;  %v6192_v12 = vld [vmem:[#allocation15 + $0x6c] sm:$0xf] }
 0x393   :  { %v5419_v28 = vld [vmem:[#allocation15 + $0xd8] sm:$0xf0]  ;;  %v6180_v22 = vld [vmem:[#allocation15 + $0xc] sm:$0xf] }
 0x394   :  { %6404 = vtanh.f32 %v1983_v10  ;;  %v1994_v29 = vmul.f32 0.5, %v1984_v15  ;;  %v5418_v10 = vor.u32 %v6206_v27, %v5417_v44  ;;  %v6204_v15 = vld [vmem:[#allocation15 + $0xcc] sm:$0xf]  ;;  %2491 = vmatpush.bf16.msrb.mxu1 %v5414_v23  ;;  %v5371_v44 = vld [vmem:[#allocation15 + $0x78] sm:$0xf0] }
 0x395   :  { %v6401_v8 = vpop.eup %6400  ;;  %v5422_v31 = vor.u32 %v6204_v15, %v5419_v28  ;;  %v5374_v27 = vor.u32 %v6192_v12, %v5371_v44  ;;  %v5345_v23 = vld [vmem:[#allocation15 + $0x40] sm:$0xf]  ;;  %v6187_v15 = vld [vmem:[#allocation15 + $0x44] sm:$0xf] }
 0x396   :  { %v6403_v33 = vpop.eup %6402  ;;  %v1987_v34 = vmul.f32 0.5, %v6401_v8  ;;  %6406 = vtanh.f32 %v1994_v29  ;;  %2504 = vmatpush.bf16.msrb.mxu2 %v5418_v10  ;;  %v5393_v29 = vld [vmem:[#allocation15 + $0xa0] sm:$0xf]  ;;  %v6201_v8 = vld [vmem:[#allocation15 + $0xac] sm:$0xf0] }
 0x397   :  { %v1991_v37 = vmul.f32 0.5, %v6403_v33  ;;  %v6199_v33 = vld [vmem:[#allocation15 + $0xa4] sm:$0xf]  ;;  %2517 = vmatpush.bf16.msrb.mxu3 %v5422_v31  ;;  %v6189_v10 = vld [vmem:[#allocation15 + $0x4c] sm:$0xf0] }
 0x398   :  { %v1988_v43 = vadd.f32 0.5, %v1987_v34  ;;  %v5394_v34 = vor.u32 %v6201_v8, %v5393_v29  ;;  %v5346_v28 = vor.u32 %v6189_v10, %v5345_v23  ;;  %v5347_v31 = vld [vmem:[#allocation15 + $0x50] sm:$0xf0]  ;;  %v5353_v29 = vld [vmem:[#allocation15 + $0x48] sm:$0xf] }
 0x399   :  { %v1992_v36 = vadd.f32 0.5, %v1991_v37  ;;  %v1966_v19 = vpop.f32.mrf.mxu2  ;;  %v1979_v40 = vpop.f32.mrf.mxu3  ;;  %v5395_v37 = vld [vmem:[#allocation15 + $0xb0] sm:$0xf0]  ;;  %v6190_v8 = vld [vmem:[#allocation15 + $0x54] sm:$0xf0] }
 0x39a   :  { %v6405_v2 = vpop.eup %6404  ;;  %v5398_v19 = vor.u32 %v6199_v33, %v5395_v37  ;;  %v5350_v33 = vor.u32 %v6187_v15, %v5347_v31  ;;  %v6188_v37 = vld [vmem:[#allocation15 + $0x4c] sm:$0xf]  ;;  %v5553_v10 = vld [vmem:[#allocation15 + $0xe0] sm:$0xf]  ;;  %v6241_v15 = vld [vmem:[#allocation15 + $0xec] sm:$0xf0] }
 0x39b   :  { %v1998_v13 = vmul.f32 %v1992_v36, %v7190_v30  ;;  %v1999_v21 = vmul.f32 %v6405_v2, %v1988_v43  ;;  %v6209_v30 = vld [vmem:[#allocation15 + $0xec] sm:$0xf0]  ;;  %v5401_v43 = vld [vmem:[#allocation15 + $0xa8] sm:$0xf]  ;;  %v6202_v36 = vld [vmem:[#allocation15 + $0xb4] sm:$0xf0]  ;;  %v5554_v31 = vor.u32 %v6241_v15, %v5553_v10 }
 0x39c   :  { %v6407_v61 = vpop.eup %6406  ;;  %v5426_v16 = vor.u32 %v6209_v30, %v5425_v6  ;;  %v5402_v40 = vor.u32 %v6202_v36, %v5401_v43  ;;  %v6200_v2 = vld [vmem:[#allocation15 + $0xac] sm:$0xf]  ;;  %2492 = vmatpush.bf16.msrb.mxu1 %v5398_v19  ;;  %v5385_v6 = vld [vmem:[#allocation15 + $0x88] sm:$0xf]  ;;  %v6198_v30 = vld [vmem:[#allocation15 + $0x94] sm:$0xf0] }
 0x39d   :  { %v7202_v41 = vadd.f32 %v1999_v21, %v1998_v13  ;;  %v1996_v14 = vmul.f32 0.5, %v6407_v61  ;;  %v5403_v13 = vld [vmem:[#allocation15 + $0xb8] sm:$0xf0]  ;;  %v5377_v61 = vld [vmem:[#allocation15 + $0x80] sm:$0xf] }
 0x39e   :  { %2477 = vmatpush.bf16.msrb.mxu0 %v5426_v16  ;;  %v5406_v21 = vor.u32 %v6200_v2, %v5403_v13  ;;  %2505 = vmatpush.bf16.msrb.mxu2 %v5402_v40  ;;  %v5386_v16 = vor.u32 %v6198_v30, %v5385_v6  ;;  %v5355_v43 = vld [vmem:[#allocation15 + $0x58] sm:$0xf0]  ;;  %v5329_v19 = vld [vmem:[#allocation15 + $0x20] sm:$0xf]  ;;  %v6185_v40 = vld [vmem:[#allocation15 + $0x2c] sm:$0xf0] }
 0x39f   :  { %6408 = vtanh.f32 %v7202_v41  ;;  %v1997_v48 = vadd.f32 0.5, %v1996_v14  ;;  %v6197_v14 = vld [vmem:[#allocation15 + $0x8c] sm:$0xf0]  ;;  %v5358_v36 = vor.u32 %v6188_v37, %v5355_v43  ;;  %v6183_v2 = vld [vmem:[#allocation15 + $0x24] sm:$0xf]  ;;  %v5330_v13 = vor.u32 %v6185_v40, %v5329_v19 }
 0x3a0   :  { %2518 = vmatpush.bf16.msrb.mxu3 %v5406_v21  ;;  %v5331_v21 = vld [vmem:[#allocation15 + $0x30] sm:$0xf0]  ;;  %v5339_v6 = vld [vmem:[#allocation15 + $0x38] sm:$0xf0]  ;;  %v6237_v19 = vld [vmem:[#allocation15 + $0xcc] sm:$0xf0] }
 0x3a1   :  { %v6235_v40 = vld [vmem:[#allocation15 + $0xc4] sm:$0xf]  ;;  %v5507_v15 = vld [vmem:[#allocation15 + $0x90] sm:$0xf0] }
 0x3a2   :  { %2478 = vmatpush.bf16.msrb.mxu0 %v5410_v9  ;;  %2506 = vmatpush.bf16.msrb.mxu2 %v5386_v16  ;;  %v5370_v9 = vor.u32 %v6194_v3, %v5369_v25  ;;  %v6181_v16 = vld [vmem:[#allocation15 + $0xc] sm:$0xf0]  ;;  %v5323_v25 = vld [vmem:[#allocation15 + $0x18] sm:$0xf0]  ;;  %v6227_v10 = vld [vmem:[#allocation15 + $0x84] sm:$0xf] }
 0x3a3   :  { %v5326_v3 = vor.u32 %v6180_v22, %v5323_v25  ;;  %v6232_v25 = vld [vmem:[#allocation15 + $0xac] sm:$0xf] }
 0x3a4   :  { %2519 = vmatpush.bf16.msrb.mxu3 %v5390_v24  ;;  %v5315_v24 = vld [vmem:[#allocation15 + $0x10] sm:$0xf0] }
 0x3a5   :  { %v6409_v51 = vpop.eup %6408  ;;  %v5318_v62 = vor.u32 %v6179_v18, %v5315_v24  ;;  %v5523_v24 = vld [vmem:[#allocation15 + $0xb0] sm:$0xf0] }
 0x3a6   :  { %v7205_v54 = vmul.f32 %v6409_v51, %v1997_v48  ;;  %2479 = vmatpush.bf16.msrb.mxu0 %v5394_v34  ;;  %v6195_v48 = vld [vmem:[#allocation15 + $0x84] sm:$0xf]  ;;  %v5378_v51 = vor.u32 %v6197_v14, %v5377_v61  ;;  %2507 = vmatpush.bf16.msrb.mxu2 %v5370_v9  ;;  %v5354_v34 = vor.u32 %v6190_v8, %v5353_v29  ;;  %v5337_v61 = vld [vmem:[#allocation15 + $0x28] sm:$0xf]  ;;  %v6186_v14 = vld [vmem:[#allocation15 + $0x34] sm:$0xf0] }
 0x3a7   :  { %v595_v9 = vadd.f32 %v7177_v5, %v7104_v17  ;;  %v5555_v29 = vld [vmem:[#allocation15 + $0xf0] sm:$0xf0]  ;;  %v5561_v8 = vld [vmem:[#allocation15 + $0xe8] sm:$0xf]  ;;  %v5537_v5 = vld [vmem:[#allocation15 + $0xc0] sm:$0xf] }
 0x3a8   :  { %v2010_v32 = vpack.c.bf16 %v7205_v54, %v7205_v54  ;;  %2520 = vmatpush.bf16.msrb.mxu3 %v5374_v27 }
 0x3aa   :  { %2211 = vmatmul.bf16.vlgmr.msra.gmra.mxu0 %v2010_v32  ;;  %2224 = vmatmul.bf16.vlgmr.msra.gmra.mxu1 %v2010_v32 }
 0x3ab   :  { %2237 = vmatmul.bf16.vlgmr.msra.gmra.mxu2 %v2010_v32  ;;  %2250 = vmatmul.bf16.vlgmr.msra.gmra.mxu3 %v2010_v32  ;;  %v5379_v32 = vld [vmem:[#allocation15 + $0x90] sm:$0xf0] }
 0x3ac   :  { %v5382_v55 = vor.u32 %v6195_v48, %v5379_v32  ;;  %2480 = vmatpush.bf16.msrb.mxu0 %v5378_v51  ;;  %2508 = vmatpush.bf16.msrb.mxu2 %v5354_v34  ;;  %v5334_v48 = vor.u32 %v6183_v2, %v5331_v21  ;;  %v5338_v51 = vor.u32 %v6186_v14, %v5337_v61  ;;  %v6184_v32 = vld [vmem:[#allocation15 + $0x2c] sm:$0xf]  ;;  %v5539_v21 = vld [vmem:[#allocation15 + $0xd0] sm:$0xf0]  ;;  %v5545_v61 = vld [vmem:[#allocation15 + $0xc8] sm:$0xf] }
 0x3ad   :  { %2521 = vmatpush.bf16.msrb.mxu3 %v5358_v36  ;;  %v5342_v30 = vor.u32 %v6184_v32, %v5339_v6  ;;  %v596_v2 = vadd.f32 %v7181_v57, %v7106_v46  ;;  %v6238_v14 = vld [vmem:[#allocation15 + $0xd4] sm:$0xf0]  ;;  %v6236_v6 = vld [vmem:[#allocation15 + $0xcc] sm:$0xf]  ;;  %v6233_v57 = vld [vmem:[#allocation15 + $0xac] sm:$0xf0] }
 0x3ae   :  { %2493 = vmatpush.bf16.msrb.mxu1 %v5382_v55  ;;  %v5313_v55 = vld [vmem:[#allocation15] sm:$0xf]  ;;  %v5546_v32 = vor.u32 %v6238_v14, %v5545_v61 }
 0x3af   :  { %v5314_v58 = vor.u32 %v6181_v16, %v5313_v55  ;;  %v5521_v55 = vld [vmem:[#allocation15 + $0xa0] sm:$0xf] }
 0x3b0   :  { %2481 = vmatpush.bf16.msrb.mxu0 %v5362_v1  ;;  %2509 = vmatpush.bf16.msrb.mxu2 %v5338_v51  ;;  %v5322_v1 = vor.u32 %v6182_v60, %v5321_v26  ;;  %v5542_v51 = vor.u32 %v6235_v40, %v5539_v21  ;;  %v5522_v22 = vor.u32 %v6233_v57, %v5521_v55  ;;  %v5491_v57 = vld [vmem:[#allocation15 + $0x70] sm:$0xf0] }
 0x3b1   :  { %2522 = vmatpush.bf16.msrb.mxu3 %v5342_v30  ;;  %v5547_v30 = vld [vmem:[#allocation15 + $0xd8] sm:$0xf0] }
 0x3b2   :  { %2494 = vmatpush.bf16.msrb.mxu1 %v5366_v20  ;;  %v594_v20 = vadd.f32 %v7173_v47, %v7099_v63  ;;  %v6240_v63 = vld [vmem:[#allocation15 + $0xec] sm:$0xf]  ;;  %v5563_v47 = vld [vmem:[#allocation15 + $0xf8] sm:$0xf0]  ;;  %v5550_v46 = vor.u32 %v6236_v6, %v5547_v30 }
 0x3b3   :  { %v5566_v17 = vor.u32 %v6240_v63, %v5563_v47  ;;  %v5510_v63 = vor.u32 %v6227_v10, %v5507_v15  ;;  %v5483_v10 = vld [vmem:[#allocation15 + $0x58] sm:$0xf0] }
 0x3b4   :  { %2482 = vmatpush.bf16.msrb.mxu0 %v5346_v28  ;;  %2510 = vmatpush.bf16.msrb.mxu2 %v5322_v1  ;;  %v6239_v28 = vld [vmem:[#allocation15 + $0xe4] sm:$0xf] }
 0x3b5   :  { %2523 = vmatpush.bf16.msrb.mxu3 %v5326_v3  ;;  %v5558_v43 = vor.u32 %v6239_v28, %v5555_v29  ;;  %v6230_v29 = vld [vmem:[#allocation15 + $0x94] sm:$0xf0] }
 0x3b6   :  { %2495 = vmatpush.bf16.msrb.mxu1 %v5350_v33  ;;  %v6242_v33 = vld [vmem:[#allocation15 + $0xf4] sm:$0xf0] }
 0x3b7   :  { %v5562_v36 = vor.u32 %v6242_v33, %v5561_v8  ;;  %v6228_v8 = vld [vmem:[#allocation15 + $0x8c] sm:$0xf] }
 0x3b8   :  { %2483 = vmatpush.bf16.msrb.mxu0 %v5330_v13  ;;  %v5538_v13 = vor.u32 %v6237_v19, %v5537_v5 }
 0x3b9   :  { %2777 = vmatpush.bf16.msra.mxu2 %v5562_v36  ;;  %2790 = vmatpush.bf16.msra.mxu3 %v5566_v17 }
 0x3ba   :  { %2496 = vmatpush.bf16.msrb.mxu1 %v5334_v48  ;;  %v597_v48 = vadd.f32 %v7185_v59, %v7108_v50  ;;  %v5529_v50 = vld [vmem:[#allocation15 + $0xa8] sm:$0xf]  ;;  %v6234_v59 = vld [vmem:[#allocation15 + $0xb4] sm:$0xf0] }
 0x3bc   :  { %2484 = vmatpush.bf16.msrb.mxu0 %v5314_v58  ;;  %v6231_v58 = vld [vmem:[#allocation15 + $0xa4] sm:$0xf] }
 0x3bd   :  { %2778 = vmatpush.bf16.msra.mxu2 %v5546_v32  ;;  %v5526_v3 = vor.u32 %v6231_v58, %v5523_v24  ;;  %2791 = vmatpush.bf16.msra.mxu3 %v5550_v46  ;;  %v5497_v58 = vld [vmem:[#allocation15 + $0x68] sm:$0xf]  ;;  %v6226_v24 = vld [vmem:[#allocation15 + $0x74] sm:$0xf0] }
 0x3be   :  { %2497 = vmatpush.bf16.msrb.mxu1 %v5318_v62 }
 0x3c0   :  { %2751 = vmatpush.bf16.msra.mxu0 %v5554_v31  ;;  %v5513_v31 = vld [vmem:[#allocation15 + $0x88] sm:$0xf] }
 0x3c1   :  { %v5514_v47 = vor.u32 %v6230_v29, %v5513_v31  ;;  %v6217_v31 = vld [vmem:[#allocation15 + $0x2c] sm:$0xf0]  ;;  %v6215_v29 = vld [vmem:[#allocation15 + $0x24] sm:$0xf] }
 0x3c2   :  { %2764 = vmatpush.bf16.msra.mxu1 %v5558_v43  ;;  %v5515_v43 = vld [vmem:[#allocation15 + $0x98] sm:$0xf0] }
 0x3c3   :  { %v5518_v5 = vor.u32 %v6228_v8, %v5515_v43 }
 0x3c4   :  { %2752 = vmatpush.bf16.msra.mxu0 %v5538_v13 }
 0x3c6   :  { %2765 = vmatpush.bf16.msra.mxu1 %v5542_v51 }
 0x3c8   :  { %2753 = vmatpush.bf16.msra.mxu0 %v5522_v22 }
 0x3ca   :  { %2766 = vmatpush.bf16.msra.mxu1 %v5526_v3 }
 0x3ce   :  { %2767 = vmatpush.bf16.msra.mxu1 %v5510_v63  ;;  %v6216_v63 = vld [vmem:[#allocation15 + $0x2c] sm:$0xf] }
 0x427   :  { %v2212_v12 = vpop.f32.mrf.mxu0  ;;  %v2225_v44 = vpop.f32.mrf.mxu1 }
 0x428   :  { %v2255_v27 = vadd.f32 %v2212_v12, %v594_v20  ;;  %v2256_v23 = vadd.f32 %v2225_v44, %v595_v9  ;;  %v5530_v20 = vor.u32 %v6234_v59, %v5529_v50  ;;  %v5531_v9 = vld [vmem:[#allocation15 + $0xb8] sm:$0xf0]  ;;  %v5505_v12 = vld [vmem:[#allocation15 + $0x80] sm:$0xf]  ;;  %v6229_v44 = vld [vmem:[#allocation15 + $0x8c] sm:$0xf0] }
 0x429   :  { %v5473_v50 = vld [vmem:[#allocation15 + $0x40] sm:$0xf]  ;;  %v6221_v59 = vld [vmem:[#allocation15 + $0x4c] sm:$0xf0] }
 0x42a   :  { %v2259_v34 = vmul.f32 0.5, %v2255_v27  ;;  %v2263_v37 = vmul.f32 0.5, %v2256_v23  ;;  %v5534_v23 = vor.u32 %v6232_v25, %v5531_v9  ;;  %2779 = vmatpush.bf16.msra.mxu2 %v5530_v20  ;;  %v6219_v25 = vld [vmem:[#allocation15 + $0x44] sm:$0xf]  ;;  %v5474_v3 = vor.u32 %v6221_v59, %v5473_v50  ;;  %v5475_v20 = vld [vmem:[#allocation15 + $0x50] sm:$0xf0] }
 0x42b   :  { %v5481_v9 = vld [vmem:[#allocation15 + $0x48] sm:$0xf]  ;;  %v6269_v50 = vld [vmem:[#allocation13 + $0xcc] sm:$0xf0] }
 0x42c   :  { %6410 = vtanh.f32 %v2259_v34  ;;  %2792 = vmatpush.bf16.msra.mxu3 %v5534_v23  ;;  %v6220_v23 = vld [vmem:[#allocation15 + $0x4c] sm:$0xf] }
 0x42d   :  { %6412 = vtanh.f32 %v2263_v37  ;;  %v5506_v37 = vor.u32 %v6229_v44, %v5505_v12  ;;  %v6222_v12 = vld [vmem:[#allocation15 + $0x54] sm:$0xf0]  ;;  %v5478_v44 = vor.u32 %v6219_v25, %v5475_v20  ;;  %v5486_v15 = vor.u32 %v6220_v23, %v5483_v10  ;;  %v5667_v20 = vld [vmem:[#allocation13 + $0xd0] sm:$0xf0]  ;;  %v5675_v23 = vld [vmem:[#allocation13 + $0xd8] sm:$0xf0] }
 0x42e   :  { %v2238_v16 = vpop.f32.mrf.mxu2  ;;  %v2251_v18 = vpop.f32.mrf.mxu3  ;;  %2780 = vmatpush.bf16.msra.mxu2 %v5514_v47  ;;  %v5467_v47 = vld [vmem:[#allocation15 + $0x38] sm:$0xf0] }
 0x42f   :  { %v2257_v26 = vadd.f32 %v2238_v16, %v596_v2  ;;  %v2258_v60 = vadd.f32 %v2251_v18, %v597_v48  ;;  %v2214_v62 = vpop.f32.mrf.mxu0  ;;  %v2227_v1 = vpop.f32.mrf.mxu1  ;;  %2754 = vmatpush.bf16.msra.mxu0 %v5506_v37  ;;  %v6225_v16 = vld [vmem:[#allocation15 + $0x6c] sm:$0xf0]  ;;  %v6223_v18 = vld [vmem:[#allocation15 + $0x64] sm:$0xf]  ;;  %v6218_v37 = vld [vmem:[#allocation15 + $0x34] sm:$0xf0] }
 0x430   :  { %2793 = vmatpush.bf16.msra.mxu3 %v5518_v5  ;;  %v6224_v62 = vld [vmem:[#allocation15 + $0x6c] sm:$0xf]  ;;  %v5499_v1 = vld [vmem:[#allocation15 + $0x78] sm:$0xf0]  ;;  %v5441_v5 = vld [vmem:[#allocation15] sm:$0xf] }
 0x431   :  { %6414 = vtanh.f32 %v2257_v26  ;;  %v2268_v27 = vmul.f32 0.5, %v2258_v60  ;;  %v5494_v26 = vor.u32 %v6223_v18, %v5491_v57  ;;  %v5498_v60 = vor.u32 %v6226_v24, %v5497_v58  ;;  %v6271_v18 = vld [vmem:[#allocation13 + $0xe4] sm:$0xf]  ;;  %v5689_v24 = vld [vmem:[#allocation13 + $0xe8] sm:$0xf] }
 0x432   :  { %v6411_v28 = vpop.eup %6410  ;;  %v5502_v22 = vor.u32 %v6224_v62, %v5499_v1  ;;  %v5691_v1 = vld [vmem:[#allocation13 + $0xf8] sm:$0xf0] }
 0x433   :  { %v6413_v33 = vpop.eup %6412  ;;  %v2261_v34 = vmul.f32 0.5, %v6411_v28  ;;  %6416 = vtanh.f32 %v2268_v27  ;;  %2768 = vmatpush.bf16.msra.mxu1 %v5494_v26  ;;  %2781 = vmatpush.bf16.msra.mxu2 %v5498_v60  ;;  %v5482_v27 = vor.u32 %v6222_v12, %v5481_v9  ;;  %v5457_v28 = vld [vmem:[#allocation15 + $0x20] sm:$0xf]  ;;  %v6274_v26 = vld [vmem:[#allocation13 + $0xf4] sm:$0xf0] }
 0x434   :  { %v2265_v36 = vmul.f32 0.5, %v6413_v33  ;;  %2794 = vmatpush.bf16.msra.mxu3 %v5502_v22  ;;  %v5458_v8 = vor.u32 %v6217_v31, %v5457_v28  ;;  %v5459_v33 = vld [vmem:[#allocation15 + $0x30] sm:$0xf0]  ;;  %v6272_v60 = vld [vmem:[#allocation13 + $0xec] sm:$0xf]  ;;  %v5690_v62 = vor.u32 %v6274_v26, %v5689_v24 }
 0x435   :  { %v2262_v17 = vadd.f32 0.5, %v2261_v34  ;;  %v5465_v34 = vld [vmem:[#allocation15 + $0x28] sm:$0xf]  ;;  %v5462_v43 = vor.u32 %v6215_v29, %v5459_v33  ;;  %v5665_v22 = vld [vmem:[#allocation13 + $0xc0] sm:$0xf]  ;;  %v5694_v59 = vor.u32 %v6272_v60, %v5691_v1 }
 0x436   :  { %v2266_v19 = vadd.f32 0.5, %v2265_v36  ;;  %v2240_v40 = vpop.f32.mrf.mxu2  ;;  %v2253_v2 = vpop.f32.mrf.mxu3  ;;  %v5466_v36 = vor.u32 %v6218_v37, %v5465_v34  ;;  %v5666_v25 = vor.u32 %v6269_v50, %v5665_v22  ;;  %v5673_v9 = vld [vmem:[#allocation13 + $0xc8] sm:$0xf]  ;;  %v5649_v28 = vld [vmem:[#allocation13 + $0xa0] sm:$0xf] }
 0x437   :  { %v6415_v13 = vpop.eup %6414  ;;  %2769 = vmatpush.bf16.msra.mxu1 %v5478_v44  ;;  %2782 = vmatpush.bf16.msra.mxu2 %v5482_v27  ;;  %v6211_v40 = vld [vmem:[#allocation15 + $0x4] sm:$0xf]  ;;  %v6270_v44 = vld [vmem:[#allocation13 + $0xd4] sm:$0xf0]  ;;  %v6268_v27 = vld [vmem:[#allocation13 + $0xcc] sm:$0xf] }
 0x438   :  { %v2272_v21 = vmul.f32 %v2266_v19, %v7202_v41  ;;  %v2273_v61 = vmul.f32 %v6415_v13, %v2262_v17  ;;  %v5489_v41 = vld [vmem:[#allocation15 + $0x60] sm:$0xf]  ;;  %2795 = vmatpush.bf16.msra.mxu3 %v5486_v15  ;;  %v5470_v17 = vor.u32 %v6216_v63, %v5467_v47  ;;  %v6213_v19 = vld [vmem:[#allocation15 + $0xc] sm:$0xf0]  ;;  %v5443_v13 = vld [vmem:[#allocation15 + $0x10] sm:$0xf0]  ;;  %v5674_v10 = vor.u32 %v6270_v44, %v5673_v9 }
 0x439   :  { %v6417_v14 = vpop.eup %6416  ;;  %v5490_v46 = vor.u32 %v6225_v16, %v5489_v41  ;;  %v5442_v2 = vor.u32 %v6213_v19, %v5441_v5  ;;  %v6273_v16 = vld [vmem:[#allocation13 + $0xec] sm:$0xf0]  ;;  %v5678_v15 = vor.u32 %v6268_v27, %v5675_v23  ;;  %v6263_v29 = vld [vmem:[#allocation13 + $0xa4] sm:$0xf]  ;;  %v5651_v33 = vld [vmem:[#allocation13 + $0xb0] sm:$0xf0] }
 0x43a   :  { %v7218_v48 = vadd.f32 %v2273_v61, %v2272_v21  ;;  %v2270_v51 = vmul.f32 0.5, %v6417_v14  ;;  %v5449_v21 = vld [vmem:[#allocation15 + $0x8] sm:$0xf]  ;;  %v6214_v61 = vld [vmem:[#allocation15 + $0x14] sm:$0xf0]  ;;  %v5446_v14 = vor.u32 %v6211_v40, %v5443_v13 }
 0x43b   :  { %2755 = vmatpush.bf16.msra.mxu0 %v5490_v46  ;;  %2770 = vmatpush.bf16.msra.mxu1 %v5462_v43  ;;  %v5683_v46 = vld [vmem:[#allocation13 + $0xf0] sm:$0xf0]  ;;  %v6265_v31 = vld [vmem:[#allocation13 + $0xac] sm:$0xf0]  ;;  %v5657_v34 = vld [vmem:[#allocation13 + $0xa8] sm:$0xf]  ;;  %v5654_v43 = vor.u32 %v6263_v29, %v5651_v33 }
 0x43c   :  { %6418 = vtanh.f32 %v7218_v48  ;;  %v2271_v32 = vadd.f32 0.5, %v2270_v51  ;;  %2783 = vmatpush.bf16.msra.mxu2 %v5466_v36  ;;  %2796 = vmatpush.bf16.msra.mxu3 %v5470_v17  ;;  %v5450_v51 = vor.u32 %v6214_v61, %v5449_v21  ;;  %v5686_v58 = vor.u32 %v6271_v18, %v5683_v46  ;;  %v6266_v37 = vld [vmem:[#allocation13 + $0xb4] sm:$0xf0]  ;;  %v6264_v63 = vld [vmem:[#allocation13 + $0xac] sm:$0xf] }
 0x43d   :  { %v5658_v36 = vor.u32 %v6266_v37, %v5657_v34  ;;  %v5659_v47 = vld [vmem:[#allocation13 + $0xb8] sm:$0xf0]  ;;  %v5633_v5 = vld [vmem:[#allocation13 + $0x80] sm:$0xf]  ;;  %v6261_v19 = vld [vmem:[#allocation13 + $0x8c] sm:$0xf0] }
 0x43e   :  { %v5662_v17 = vor.u32 %v6264_v63, %v5659_v47  ;;  %v6259_v40 = vld [vmem:[#allocation13 + $0x84] sm:$0xf]  ;;  %v5635_v13 = vld [vmem:[#allocation13 + $0x90] sm:$0xf0]  ;;  %v5641_v21 = vld [vmem:[#allocation13 + $0x88] sm:$0xf] }
 0x43f   :  { %2756 = vmatpush.bf16.msra.mxu0 %v5474_v3  ;;  %2771 = vmatpush.bf16.msra.mxu1 %v5446_v14  ;;  %v6267_v3 = vld [vmem:[#allocation13 + $0xc4] sm:$0xf]  ;;  %v6262_v61 = vld [vmem:[#allocation13 + $0x94] sm:$0xf0]  ;;  %v5638_v14 = vor.u32 %v6259_v40, %v5635_v13  ;;  %v5619_v24 = vld [vmem:[#allocation13 + $0x70] sm:$0xf0] }
 0x440   :  { %2784 = vmatpush.bf16.msra.mxu2 %v5450_v51  ;;  %v5670_v12 = vor.u32 %v6267_v3, %v5667_v20  ;;  %v5642_v51 = vor.u32 %v6262_v61, %v5641_v21  ;;  %v6255_v18 = vld [vmem:[#allocation13 + $0x64] sm:$0xf]  ;;  %v5625_v26 = vld [vmem:[#allocation13 + $0x68] sm:$0xf]  ;;  %v6258_v60 = vld [vmem:[#allocation13 + $0x74] sm:$0xf0] }
 0x441   :  { %v5622_v22 = vor.u32 %v6255_v18, %v5619_v24  ;;  %v5626_v50 = vor.u32 %v6258_v60, %v5625_v26  ;;  %v5601_v3 = vld [vmem:[#allocation13 + $0x40] sm:$0xf]  ;;  %v6253_v9 = vld [vmem:[#allocation13 + $0x4c] sm:$0xf0]  ;;  %v5603_v44 = vld [vmem:[#allocation13 + $0x50] sm:$0xf0] }
 0x442   :  { %v6419_v6 = vpop.eup %6418  ;;  %v5611_v29 = vld [vmem:[#allocation13 + $0x58] sm:$0xf0]  ;;  %v6249_v34 = vld [vmem:[#allocation13 + $0x2c] sm:$0xf0]  ;;  %v6247_v37 = vld [vmem:[#allocation13 + $0x24] sm:$0xf] }
 0x443   :  { %v7221_v30 = vmul.f32 %v6419_v6, %v2271_v32  ;;  %2757 = vmatpush.bf16.msra.mxu0 %v5458_v8  ;;  %v6212_v32 = vld [vmem:[#allocation15 + $0xc] sm:$0xf]  ;;  %v5451_v6 = vld [vmem:[#allocation15 + $0x18] sm:$0xf0]  ;;  %v5650_v8 = vor.u32 %v6265_v31, %v5649_v28  ;;  %v5609_v28 = vld [vmem:[#allocation13 + $0x48] sm:$0xf] }
 0x444   :  { %v5454_v41 = vor.u32 %v6212_v32, %v5451_v6  ;;  %v6260_v32 = vld [vmem:[#allocation13 + $0x8c] sm:$0xf]  ;;  %v5643_v6 = vld [vmem:[#allocation13 + $0x98] sm:$0xf0]  ;;  %v6250_v63 = vld [vmem:[#allocation13 + $0x34] sm:$0xf0] }
 0x445   :  { %v2284_v55 = vpack.c.bf16 %v7221_v30, %v7221_v30  ;;  %v6252_v31 = vld [vmem:[#allocation13 + $0x4c] sm:$0xf]  ;;  %v5569_v13 = vld [vmem:[#allocation13] sm:$0xf]  ;;  %v5577_v18 = vld [vmem:[#allocation13 + $0x8] sm:$0xf] }
 0x446   :  { %2797 = vmatpush.bf16.msra.mxu3 %v5454_v41  ;;  %v5617_v41 = vld [vmem:[#allocation13 + $0x60] sm:$0xf]  ;;  %v5614_v33 = vor.u32 %v6252_v31, %v5611_v29  ;;  %v6248_v47 = vld [vmem:[#allocation13 + $0x2c] sm:$0xf]  ;;  %v5579_v24 = vld [vmem:[#allocation13 + $0x18] sm:$0xf0] }
 0x447   :  { %2485 = vmatmul.bf16.vlgmr.msrb.gmra.mxu0 %v2284_v55  ;;  %2498 = vmatmul.bf16.vlgmr.msrb.gmra.mxu1 %v2284_v55  ;;  %v5809_v31 = vld [vmem:[#allocation15 + $0x1e0] sm:$0xf]  ;;  %v6305_v29 = vld [vmem:[#allocation15 + $0x1ec] sm:$0xf0] }
 0x448   :  { %2511 = vmatmul.bf16.vlgmr.msrb.gmra.mxu2 %v2284_v55  ;;  %2524 = vmatmul.bf16.vlgmr.msrb.gmra.mxu3 %v2284_v55  ;;  %v5681_v55 = vld [vmem:[#allocation13 + $0xe0] sm:$0xf] }
 0x449   :  { %2758 = vmatpush.bf16.msra.mxu0 %v5442_v2  ;;  %v5682_v57 = vor.u32 %v6273_v16, %v5681_v55  ;;  %3060 = vmatpush.bf16.msrb.mxu1 %v5686_v58  ;;  %v5634_v2 = vor.u32 %v6261_v19, %v5633_v5  ;;  %v5646_v55 = vor.u32 %v6260_v32, %v5643_v6  ;;  %v6257_v16 = vld [vmem:[#allocation13 + $0x6c] sm:$0xf0] }
 0x44a   :  { %3089 = vmatpush.bf16.msrb.mxu2 %v5690_v62  ;;  %3118 = vmatpush.bf16.msrb.mxu3 %v5694_v59  ;;  %v5618_v58 = vor.u32 %v6257_v16, %v5617_v41  ;;  %v6256_v59 = vld [vmem:[#allocation13 + $0x6c] sm:$0xf]  ;;  %v6245_v6 = vld [vmem:[#allocation13 + $0xc] sm:$0xf0]  ;;  %v5571_v41 = vld [vmem:[#allocation13 + $0x10] sm:$0xf0] }
 0x44d   :  { %3031 = vmatpush.bf16.msrb.mxu0 %v5682_v57  ;;  %3061 = vmatpush.bf16.msrb.mxu1 %v5670_v12  ;;  %v6251_v12 = vld [vmem:[#allocation13 + $0x44] sm:$0xf] }
 0x44e   :  { %3090 = vmatpush.bf16.msrb.mxu2 %v5674_v10  ;;  %3119 = vmatpush.bf16.msrb.mxu3 %v5678_v15  ;;  %v5602_v10 = vor.u32 %v6253_v9, %v5601_v3  ;;  %v5606_v15 = vor.u32 %v6251_v12, %v5603_v44 }
 0x451   :  { %3032 = vmatpush.bf16.msrb.mxu0 %v5666_v25  ;;  %3062 = vmatpush.bf16.msrb.mxu1 %v5654_v43  ;;  %v5627_v25 = vld [vmem:[#allocation13 + $0x78] sm:$0xf0]  ;;  %v5587_v43 = vld [vmem:[#allocation13 + $0x30] sm:$0xf0] }
 0x452   :  { %3091 = vmatpush.bf16.msrb.mxu2 %v5658_v36  ;;  %3120 = vmatpush.bf16.msrb.mxu3 %v5662_v17  ;;  %v5630_v20 = vor.u32 %v6256_v59, %v5627_v25  ;;  %v5593_v36 = vld [vmem:[#allocation13 + $0x28] sm:$0xf]  ;;  %v5590_v40 = vor.u32 %v6247_v37, %v5587_v43  ;;  %v6306_v43 = vld [vmem:[#allocation15 + $0x1f4] sm:$0xf0] }
 0x453   :  { %v5594_v32 = vor.u32 %v6250_v63, %v5593_v36  ;;  %v5817_v37 = vld [vmem:[#allocation15 + $0x1e8] sm:$0xf] }
 0x454   :  { %v7243_v63 = vor.u32 %v6306_v43, %v5817_v37  ;;  %v6525_v37 = vld [vmem:[#allocation16 + $0x8] sm:$0xff] }
 0x455   :  { %3033 = vmatpush.bf16.msrb.mxu0 %v5650_v8  ;;  %3063 = vmatpush.bf16.msrb.mxu1 %v5638_v14  ;;  %v5585_v8 = vld [vmem:[#allocation13 + $0x20] sm:$0xf]  ;;  %v603_v43 = vadd.f32 %v6525_v37, %v7124_v53  ;;  %v6286_v53 = vld [vmem:[#allocation15 + $0x154] sm:$0xf0] }
 0x456   :  { %3092 = vmatpush.bf16.msrb.mxu2 %v5642_v51  ;;  %3121 = vmatpush.bf16.msrb.mxu3 %v5646_v55  ;;  %v5586_v19 = vor.u32 %v6249_v34, %v5585_v8  ;;  %v6243_v55 = vld [vmem:[#allocation13 + $0x4] sm:$0xf]  ;;  %v5811_v34 = vld [vmem:[#allocation15 + $0x1f0] sm:$0xf0] }
 0x457   :  { %v6303_v8 = vld [vmem:[#allocation15 + $0x1e4] sm:$0xf] }
 0x458   :  { %v7241_v36 = vor.u32 %v6303_v8, %v5811_v34  ;;  %v6524_v8 = vld [vmem:[#allocation16] sm:$0xff] }
 0x459   :  { %3034 = vmatpush.bf16.msrb.mxu0 %v5634_v2  ;;  %3064 = vmatpush.bf16.msrb.mxu1 %v5622_v22  ;;  %v5595_v2 = vld [vmem:[#allocation13 + $0x38] sm:$0xf0]  ;;  %v602_v34 = vadd.f32 %v6524_v8, %v7119_v45 }
 0x45a   :  { %3093 = vmatpush.bf16.msrb.mxu2 %v5626_v50  ;;  %3122 = vmatpush.bf16.msrb.mxu3 %v5630_v20  ;;  %v5598_v16 = vor.u32 %v6248_v47, %v5595_v2  ;;  %v6304_v47 = vld [vmem:[#allocation15 + $0x1ec] sm:$0xf] }
 0x45d   :  { %3035 = vmatpush.bf16.msrb.mxu0 %v5618_v58  ;;  %3065 = vmatpush.bf16.msrb.mxu1 %v5606_v15  ;;  %v6244_v58 = vld [vmem:[#allocation13 + $0xc] sm:$0xf] }
 0x45e   :  { %3123 = vmatpush.bf16.msrb.mxu3 %v5614_v33  ;;  %v5582_v50 = vor.u32 %v6244_v58, %v5579_v24  ;;  %v7239_v33 = vor.u32 %v6305_v29, %v5809_v31  ;;  %v6298_v58 = vld [vmem:[#allocation15 + $0x1b4] sm:$0xf0]  ;;  %v6288_v29 = vld [vmem:[#allocation15 + $0x16c] sm:$0xf] }
 0x45f   :  { %v6290_v31 = vld [vmem:[#allocation15 + $0x174] sm:$0xf0] }
 0x461   :  { %3036 = vmatpush.bf16.msrb.mxu0 %v5602_v10  ;;  %3066 = vmatpush.bf16.msrb.mxu1 %v5590_v40  ;;  %v5795_v40 = vld [vmem:[#allocation15 + $0x1d0] sm:$0xf0] }
 0x462   :  { %3124 = vmatpush.bf16.msrb.mxu3 %v5598_v16  ;;  %v6295_v16 = vld [vmem:[#allocation15 + $0x1a4] sm:$0xf] }
 0x465   :  { %3037 = vmatpush.bf16.msrb.mxu0 %v5586_v19  ;;  %v6299_v19 = vld [vmem:[#allocation15 + $0x1c4] sm:$0xf] }
 0x466   :  { %3125 = vmatpush.bf16.msrb.mxu3 %v5582_v50  ;;  %v6293_v50 = vld [vmem:[#allocation15 + $0x18c] sm:$0xf0] }
 0x4c4   :  { %v2486_v46 = vpop.f32.mrf.mxu0  ;;  %v2499_v57 = vpop.f32.mrf.mxu1 }
 0x4c5   :  { %v2529_v62 = vadd.f32 %v2486_v46, %v7111_v56  ;;  %v2530_v1 = vadd.f32 %v2499_v57, %v7114_v0  ;;  %v6254_v56 = vld [vmem:[#allocation13 + $0x54] sm:$0xf0] }
 0x4c6   :  { %v5610_v0 = vor.u32 %v6254_v56, %v5609_v28  ;;  %v6246_v46 = vld [vmem:[#allocation13 + $0x14] sm:$0xf0] }
 0x4c7   :  { %v2533_v27 = vmul.f32 0.5, %v2529_v62  ;;  %v2537_v23 = vmul.f32 0.5, %v2530_v1  ;;  %v5578_v1 = vor.u32 %v6246_v46, %v5577_v18  ;;  %v5779_v18 = vld [vmem:[#allocation15 + $0x1b0] sm:$0xf0]  ;;  %v5785_v46 = vld [vmem:[#allocation15 + $0x1a8] sm:$0xf] }
 0x4c8   :  { %3094 = vmatpush.bf16.msrb.mxu2 %v5610_v0  ;;  %v7264_v24 = vor.u32 %v6295_v16, %v5779_v18  ;;  %v6284_v16 = vld [vmem:[#allocation15 + $0x14c] sm:$0xf]  ;;  %v5739_v18 = vld [vmem:[#allocation15 + $0x158] sm:$0xf0] }
 0x4c9   :  { %6420 = vtanh.f32 %v2533_v27 }
 0x4ca   :  { %6422 = vtanh.f32 %v2537_v23 }
 0x4cb   :  { %v2512_v17 = vpop.f32.mrf.mxu2  ;;  %v2525_v5 = vpop.f32.mrf.mxu3 }
 0x4cc   :  { %v2531_v21 = vadd.f32 %v2512_v17, %v7117_v42  ;;  %v2532_v61 = vadd.f32 %v2525_v5, %v7122_v52  ;;  %v2488_v14 = vpop.f32.mrf.mxu0  ;;  %v2501_v51 = vpop.f32.mrf.mxu1  ;;  %v5570_v42 = vor.u32 %v6245_v6, %v5569_v13  ;;  %v5574_v52 = vor.u32 %v6243_v55, %v5571_v41  ;;  %3095 = vmatpush.bf16.msrb.mxu2 %v5594_v32  ;;  %v5819_v17 = vld [vmem:[#allocation15 + $0x1f8] sm:$0xf0]  ;;  %v5793_v5 = vld [vmem:[#allocation15 + $0x1c0] sm:$0xf]  ;;  %v6297_v55 = vld [vmem:[#allocation15 + $0x1ac] sm:$0xf0] }
 0x4cd   :  { %v7252_v13 = vor.u32 %v6299_v19, %v5795_v40  ;;  %v6300_v14 = vld [vmem:[#allocation15 + $0x1cc] sm:$0xf]  ;;  %v5803_v32 = vld [vmem:[#allocation15 + $0x1d8] sm:$0xf0]  ;;  %v5777_v6 = vld [vmem:[#allocation15 + $0x1a0] sm:$0xf] }
 0x4ce   :  { %6424 = vtanh.f32 %v2531_v21  ;;  %v2542_v57 = vmul.f32 0.5, %v2532_v61  ;;  %3038 = vmatpush.bf16.msrb.mxu0 %v5570_v42  ;;  %3067 = vmatpush.bf16.msrb.mxu1 %v5574_v52  ;;  %v5801_v21 = vld [vmem:[#allocation15 + $0x1c8] sm:$0xf]  ;;  %v6302_v61 = vld [vmem:[#allocation15 + $0x1d4] sm:$0xf0]  ;;  %v7257_v41 = vor.u32 %v6300_v14, %v5803_v32  ;;  %v2836_v42 = vpack.c.bf16 %v7193_v11, %v7169_v7 }
 0x4cf   :  { %v6421_v26 = vpop.eup %6420  ;;  %v7255_v51 = vor.u32 %v6302_v61, %v5801_v21  ;;  %v2837_v52 = vpack.c.bf16 %v7221_v30, %v7205_v54  ;;  %v6291_v7 = vld [vmem:[#allocation15 + $0x184] sm:$0xf]  ;;  %v6292_v30 = vld [vmem:[#allocation15 + $0x18c] sm:$0xf]  ;;  %v5731_v14 = vld [vmem:[#allocation15 + $0x150] sm:$0xf0] }
 0x4d0   :  { %v6423_v60 = vpop.eup %6422  ;;  %v2535_v62 = vmul.f32 0.5, %v6421_v26  ;;  %6426 = vtanh.f32 %v2542_v57  ;;  %3096 = vmatpush.bf16.msrb.mxu2 %v5578_v1  ;;  %v7260_v57 = vor.u32 %v6297_v55, %v5777_v6  ;;  %v7266_v26 = vor.u32 %v6298_v58, %v5785_v46  ;;  %v6283_v61 = vld [vmem:[#allocation15 + $0x144] sm:$0xf]  ;;  %v5737_v32 = vld [vmem:[#allocation15 + $0x148] sm:$0xf] }
 0x4d1   :  { %v2539_v22 = vmul.f32 0.5, %v6423_v60  ;;  %v6296_v60 = vld [vmem:[#allocation15 + $0x1ac] sm:$0xf]  ;;  %v7306_v46 = vor.u32 %v6283_v61, %v5731_v14  ;;  %v7308_v58 = vor.u32 %v6286_v53, %v5737_v32  ;;  %v5705_v61 = vld [vmem:[#allocation15 + $0x108] sm:$0xf] }
 0x4d2   :  { %v2536_v59 = vadd.f32 0.5, %v2535_v62  ;;  %v5787_v62 = vld [vmem:[#allocation15 + $0x1b8] sm:$0xf0]  ;;  %v6278_v14 = vld [vmem:[#allocation15 + $0x114] sm:$0xf0] }
 0x4d3   :  { %v2540_v25 = vadd.f32 0.5, %v2539_v22  ;;  %v2514_v3 = vpop.f32.mrf.mxu2  ;;  %v2527_v20 = vpop.f32.mrf.mxu3  ;;  %v7276_v1 = vor.u32 %v6296_v60, %v5787_v62  ;;  %v5761_v22 = vld [vmem:[#allocation15 + $0x180] sm:$0xf]  ;;  %v6279_v60 = vld [vmem:[#allocation15 + $0x124] sm:$0xf] }
 0x4d4   :  { %v6425_v9 = vpop.eup %6424  ;;  %v7279_v11 = vor.u32 %v6293_v50, %v5761_v22  ;;  %v6294_v3 = vld [vmem:[#allocation15 + $0x194] sm:$0xf0]  ;;  %v7311_v50 = vor.u32 %v6284_v16, %v5739_v18  ;;  %v6276_v53 = vld [vmem:[#allocation15 + $0x10c] sm:$0xf]  ;;  %v5707_v16 = vld [vmem:[#allocation15 + $0x118] sm:$0xf0] }
 0x4d5   :  { %v2546_v12 = vmul.f32 %v2540_v25, %v7218_v48  ;;  %v2547_v44 = vmul.f32 %v6425_v9, %v2536_v59  ;;  %v2835_v48 = vpack.c.bf16 %v7157_v49, %v7141_v39  ;;  %v7246_v39 = vor.u32 %v6304_v47, %v5819_v17  ;;  %v6301_v49 = vld [vmem:[#allocation15 + $0x1cc] sm:$0xf0]  ;;  %v5763_v59 = vld [vmem:[#allocation15 + $0x190] sm:$0xf0]  ;;  %v5769_v25 = vld [vmem:[#allocation15 + $0x188] sm:$0xf] }
 0x4d6   :  { %v6427_v27 = vpop.eup %6426  ;;  %v7250_v2 = vor.u32 %v6301_v49, %v5793_v5  ;;  %v7281_v20 = vor.u32 %v6291_v7, %v5763_v59  ;;  %v7283_v54 = vor.u32 %v6294_v3, %v5769_v25  ;;  %v5771_v9 = vld [vmem:[#allocation15 + $0x198] sm:$0xf0]  ;;  %v5729_v5 = vld [vmem:[#allocation15 + $0x140] sm:$0xf]  ;;  %v6285_v49 = vld [vmem:[#allocation15 + $0x14c] sm:$0xf0] }
 0x4d7   :  { %v7230_v23 = vadd.f32 %v2547_v44, %v2546_v12  ;;  %v2544_v10 = vmul.f32 0.5, %v6427_v27  ;;  %v5745_v12 = vld [vmem:[#allocation15 + $0x160] sm:$0xf]  ;;  %v7286_v44 = vor.u32 %v6292_v30, %v5771_v9  ;;  %v6289_v27 = vld [vmem:[#allocation15 + $0x16c] sm:$0xf0]  ;;  %v7302_v45 = vor.u32 %v6285_v49, %v5729_v5 }
 0x4d8   :  { %v5755_v17 = vld [vmem:[#allocation15 + $0x178] sm:$0xf0]  ;;  %v5715_v7 = vld [vmem:[#allocation15 + $0x130] sm:$0xf0]  ;;  %v5721_v59 = vld [vmem:[#allocation15 + $0x128] sm:$0xf] }
 0x4d9   :  { %6428 = vtanh.f32 %v7230_v23  ;;  %v2545_v15 = vadd.f32 0.5, %v2544_v10  ;;  %v6287_v10 = vld [vmem:[#allocation15 + $0x164] sm:$0xf]  ;;  %v7299_v21 = vor.u32 %v6288_v29, %v5755_v17  ;;  %v6282_v25 = vld [vmem:[#allocation15 + $0x134] sm:$0xf0]  ;;  %v6526_v9 = vld [vmem:[#allocation16 + $0x10] sm:$0xff] }
 0x4da   :  { %v6280_v3 = vld [vmem:[#allocation15 + $0x12c] sm:$0xf]  ;;  %v5723_v30 = vld [vmem:[#allocation15 + $0x138] sm:$0xf0]  ;;  %v6277_v5 = vld [vmem:[#allocation15 + $0x10c] sm:$0xf0] }
 0x4db   :  { %v6275_v49 = vld [vmem:[#allocation15 + $0x104] sm:$0xf] }
 0x4df   :  { %v6429_v28 = vpop.eup %6428 }
 0x4e0   :  { %v7233_v56 = vmul.f32 %v6429_v28, %v2545_v15  ;;  %v5747_v15 = vld [vmem:[#allocation15 + $0x170] sm:$0xf0]  ;;  %v7290_v28 = vor.u32 %v6289_v27, %v5745_v12  ;;  %v604_v12 = vadd.f32 %v6526_v9, %v7128_v35  ;;  %v7325_v35 = vor.u32 %v6280_v3, %v5723_v30 }
 0x4e2   :  { %v2558_v0 = vpack.c.bf16 %v7233_v56, %v7233_v56 }
 0x4e4   :  { %2759 = vmatmul.bf16.vlgmr.msra.gmra.mxu0 %v2558_v0  ;;  %2772 = vmatmul.bf16.vlgmr.msra.gmra.mxu1 %v2558_v0 }
 0x4e5   :  { %2785 = vmatmul.bf16.vlgmr.msra.gmra.mxu2 %v2558_v0  ;;  %2798 = vmatmul.bf16.vlgmr.msra.gmra.mxu3 %v2558_v0  ;;  %v7292_v0 = vor.u32 %v6287_v10, %v5747_v15  ;;  %v6527_v10 = vld [vmem:[#allocation16 + $0x18] sm:$0xff] }
 0x4e6   :  { %3413 = vmatpush.bf16.msra.mxu0 %v7239_v33  ;;  %3426 = vmatpush.bf16.msra.mxu1 %v7241_v36  ;;  %v605_v15 = vadd.f32 %v6527_v10, %v7132_v38  ;;  %v5697_v38 = vld [vmem:[#allocation15 + $0x100] sm:$0xf] }
 0x4e7   :  { %3439 = vmatpush.bf16.msra.mxu2 %v7243_v63  ;;  %3452 = vmatpush.bf16.msra.mxu3 %v7246_v39 }
 0x4ea   :  { %3414 = vmatpush.bf16.msra.mxu0 %v7250_v2  ;;  %3427 = vmatpush.bf16.msra.mxu1 %v7252_v13 }
 0x4eb   :  { %3440 = vmatpush.bf16.msra.mxu2 %v7255_v51  ;;  %3453 = vmatpush.bf16.msra.mxu3 %v7257_v41 }
 0x4ee   :  { %3415 = vmatpush.bf16.msra.mxu0 %v7260_v57  ;;  %3428 = vmatpush.bf16.msra.mxu1 %v7264_v24 }
 0x4ef   :  { %3441 = vmatpush.bf16.msra.mxu2 %v7266_v26  ;;  %3454 = vmatpush.bf16.msra.mxu3 %v7276_v1 }
 0x4f2   :  { %3416 = vmatpush.bf16.msra.mxu0 %v7279_v11  ;;  %3429 = vmatpush.bf16.msra.mxu1 %v7281_v20 }
 0x4f3   :  { %3442 = vmatpush.bf16.msra.mxu2 %v7283_v54  ;;  %3455 = vmatpush.bf16.msra.mxu3 %v7286_v44 }
 0x4f4   :  { %3039 = vmatmul.bf16.vlgmr.msrb.gmra.mxu0 %v2835_v48  ;;  %3068 = vmatmul.bf16.vlgmr.msrb.gmra.mxu1 %v2835_v48 }
 0x4f5   :  { %3097 = vmatmul.bf16.vlgmr.msrb.gmra.mxu2 %v2835_v48  ;;  %3126 = vmatmul.bf16.vlgmr.msrb.gmra.mxu3 %v2835_v48  ;;  %v5753_v48 = vld [vmem:[#allocation15 + $0x168] sm:$0xf] }
 0x4f6   :  { %v7297_v47 = vor.u32 %v6290_v31, %v5753_v48  ;;  %3417 = vmatpush.bf16.msra.mxu0 %v7290_v28  ;;  %3430 = vmatpush.bf16.msra.mxu1 %v7292_v0  ;;  %v7320_v48 = vor.u32 %v6279_v60, %v5715_v7  ;;  %v7322_v31 = vor.u32 %v6282_v25, %v5721_v59 }
 0x4f7   :  { %3456 = vmatpush.bf16.msra.mxu3 %v7299_v21 }
 0x4f8   :  { %3443 = vmatpush.bf16.msra.mxu2 %v7297_v47 }
 0x4fa   :  { %3418 = vmatpush.bf16.msra.mxu0 %v7302_v45  ;;  %3431 = vmatpush.bf16.msra.mxu1 %v7306_v46 }
 0x4fb   :  { %3457 = vmatpush.bf16.msra.mxu3 %v7311_v50 }
 0x4fc   :  { %3444 = vmatpush.bf16.msra.mxu2 %v7308_v58 }
 0x4fe   :  { %3432 = vmatpush.bf16.msra.mxu1 %v7320_v48 }
 0x4ff   :  { %3458 = vmatpush.bf16.msra.mxu3 %v7325_v35 }
 0x500   :  { %3445 = vmatpush.bf16.msra.mxu2 %v7322_v31 }
 0x504   :  { %3044 = vmatmul.bf16.gmra.mxu0 %v2836_v42  ;;  %3073 = vmatmul.bf16.gmra.mxu1 %v2836_v42 }
 0x505   :  { %3102 = vmatmul.bf16.gmra.mxu2 %v2836_v42  ;;  %3131 = vmatmul.bf16.gmra.mxu3 %v2836_v42  ;;  %v5713_v42 = vld [vmem:[#allocation15 + $0x120] sm:$0xf] }
 0x514   :  { %3049 = vmatmul.bf16.gmra.mxu0 %v2837_v52  ;;  %3078 = vmatmul.bf16.gmra.mxu1 %v2837_v52 }
 0x515   :  { %3107 = vmatmul.bf16.gmra.mxu2 %v2837_v52  ;;  %3136 = vmatmul.bf16.gmra.mxu3 %v2837_v52  ;;  %v6281_v52 = vld [vmem:[#allocation15 + $0x12c] sm:$0xf0] }
 0x516   :  { %v7315_v27 = vor.u32 %v6281_v52, %v5713_v42  ;;  %v7337_v42 = vor.u32 %v6276_v53, %v5707_v16 }
 0x518   :  { %3419 = vmatpush.bf16.msra.mxu0 %v7315_v27  ;;  %3459 = vmatpush.bf16.msra.mxu3 %v7337_v42 }
 0x51c   :  { %3531 = vmatpush.bf16.msrb.mxu3 %v7246_v39 }
 0x520   :  { %3532 = vmatpush.bf16.msrb.mxu3 %v7257_v41 }
 0x524   :  { %3533 = vmatpush.bf16.msrb.mxu3 %v7276_v1 }
 0x528   :  { %3534 = vmatpush.bf16.msrb.mxu3 %v7286_v44 }
 0x52c   :  { %3535 = vmatpush.bf16.msrb.mxu3 %v7299_v21 }
 0x530   :  { %3536 = vmatpush.bf16.msrb.mxu3 %v7311_v50 }
 0x534   :  { %3537 = vmatpush.bf16.msrb.mxu3 %v7325_v35 }
 0x538   :  { %3538 = vmatpush.bf16.msrb.mxu3 %v7337_v42 }
 0x561   :  { %v2760_v19 = vpop.f32.mrf.mxu0  ;;  %v2773_v40 = vpop.f32.mrf.mxu1 }
 0x562   :  { %v2803_v6 = vadd.f32 %v2760_v19, %v602_v34  ;;  %v2804_v55 = vadd.f32 %v2773_v40, %v603_v43  ;;  %v7328_v19 = vor.u32 %v6277_v5, %v5697_v38  ;;  %v5699_v40 = vld [vmem:[#allocation15 + $0x110] sm:$0xf0] }
 0x564   :  { %v2807_v62 = vmul.f32 0.5, %v2803_v6  ;;  %v2811_v22 = vmul.f32 0.5, %v2804_v55  ;;  %v7332_v6 = vor.u32 %v6275_v49, %v5699_v40  ;;  %v7334_v55 = vor.u32 %v6278_v14, %v5705_v61  ;;  %3420 = vmatpush.bf16.msra.mxu0 %v7328_v19 }
 0x566   :  { %6430 = vtanh.f32 %v2807_v62  ;;  %3433 = vmatpush.bf16.msra.mxu1 %v7332_v6  ;;  %3446 = vmatpush.bf16.msra.mxu2 %v7334_v55 }
 0x567   :  { %6432 = vtanh.f32 %v2811_v22 }
 0x568   :  { %v2786_v29 = vpop.f32.mrf.mxu2  ;;  %v2799_v8 = vpop.f32.mrf.mxu3  ;;  %3492 = vmatpush.bf16.msrb.mxu0 %v7239_v33 }
 0x569   :  { %v2805_v34 = vadd.f32 %v2786_v29, %v604_v12  ;;  %v2806_v37 = vadd.f32 %v2799_v8, %v605_v15  ;;  %v2762_v43 = vpop.f32.mrf.mxu0  ;;  %v2775_v17 = vpop.f32.mrf.mxu1 }
 0x56a   :  { %3505 = vmatpush.bf16.msrb.mxu1 %v7241_v36  ;;  %3518 = vmatpush.bf16.msrb.mxu2 %v7243_v63 }
 0x56b   :  { %6434 = vtanh.f32 %v2805_v34  ;;  %v2816_v32 = vmul.f32 0.5, %v2806_v37 }
 0x56c   :  { %v6431_v18 = vpop.eup %6430  ;;  %3493 = vmatpush.bf16.msrb.mxu0 %v7250_v2 }
 0x56d   :  { %v6433_v52 = vpop.eup %6432  ;;  %v2809_v60 = vmul.f32 0.5, %v6431_v18  ;;  %6436 = vtanh.f32 %v2816_v32 }
 0x56e   :  { %v2813_v62 = vmul.f32 0.5, %v6433_v52  ;;  %3506 = vmatpush.bf16.msrb.mxu1 %v7252_v13  ;;  %3519 = vmatpush.bf16.msrb.mxu2 %v7255_v51 }
 0x56f   :  { %v2810_v22 = vadd.f32 0.5, %v2809_v60 }
 0x570   :  { %v2814_v7 = vadd.f32 0.5, %v2813_v62  ;;  %v2788_v59 = vpop.f32.mrf.mxu2  ;;  %v2801_v25 = vpop.f32.mrf.mxu3  ;;  %3494 = vmatpush.bf16.msrb.mxu0 %v7260_v57 }
 0x571   :  { %v6435_v3 = vpop.eup %6434 }
 0x572   :  { %v2820_v30 = vmul.f32 %v2814_v7, %v7230_v23  ;;  %v2821_v9 = vmul.f32 %v6435_v3, %v2810_v22  ;;  %3507 = vmatpush.bf16.msrb.mxu1 %v7264_v24  ;;  %3520 = vmatpush.bf16.msrb.mxu2 %v7266_v26 }
 0x573   :  { %v6437_v12 = vpop.eup %6436 }
 0x574   :  { %v2822_v10 = vadd.f32 %v2821_v9, %v2820_v30  ;;  %v2818_v15 = vmul.f32 0.5, %v6437_v12  ;;  %3495 = vmatpush.bf16.msrb.mxu0 %v7279_v11 }
 0x576   :  { %6438 = vtanh.f32 %v2822_v10  ;;  %v2819_v23 = vadd.f32 0.5, %v2818_v15  ;;  %3508 = vmatpush.bf16.msrb.mxu1 %v7281_v20  ;;  %3521 = vmatpush.bf16.msrb.mxu2 %v7283_v54 }
 0x578   :  { %3496 = vmatpush.bf16.msrb.mxu0 %v7290_v28  ;;  %v3098_v37 = vpop.f32.mrf.mxu2  ;;  %v3127_v43 = vpop.f32.mrf.mxu3 }
 0x57a   :  { %3509 = vmatpush.bf16.msrb.mxu1 %v7292_v0  ;;  %3522 = vmatpush.bf16.msrb.mxu2 %v7297_v47 }
 0x57c   :  { %v6439_v29 = vpop.eup %6438  ;;  %3497 = vmatpush.bf16.msrb.mxu0 %v7302_v45 }
 0x57d   :  { %v2824_v8 = vmul.f32 %v6439_v29, %v2819_v23 }
 0x57e   :  { %3510 = vmatpush.bf16.msrb.mxu1 %v7306_v46  ;;  %3523 = vmatpush.bf16.msrb.mxu2 %v7308_v58 }
 0x57f   :  { %v2838_v34 = vpack.c.bf16 %v2824_v8, %v7233_v56  ;;  %v3069_v56 = vpop.f32.mrf.mxu1  ;;  %v7465_v8 = vld [vmem:[#allocation16 + $0x20] sm:$0xff] }
 0x580   :  { %3498 = vmatpush.bf16.msrb.mxu0 %v7315_v27  ;;  %v7417_v5 = vpop.f32.mrf.mxu2  ;;  %v7419_v49 = vpop.f32.mrf.mxu3 }
 0x581   :  { %3054 = vmatmul.bf16.gmra.mxu0 %v2838_v34  ;;  %3083 = vmatmul.bf16.gmra.mxu1 %v2838_v34 }
 0x582   :  { %3112 = vmatmul.bf16.gmra.mxu2 %v2838_v34  ;;  %3141 = vmatmul.bf16.gmra.mxu3 %v2838_v34  ;;  %v7467_v34 = vld [vmem:[#allocation16 + $0x28] sm:$0xff] }
 0x583   :  { %3511 = vmatpush.bf16.msrb.mxu1 %v7320_v48  ;;  %3524 = vmatpush.bf16.msrb.mxu2 %v7322_v31 }
 0x584   :  { %3499 = vmatpush.bf16.msrb.mxu0 %v7328_v19 }
 0x587   :  { %3512 = vmatpush.bf16.msrb.mxu1 %v7332_v6  ;;  %3525 = vmatpush.bf16.msrb.mxu2 %v7334_v55  ;;  %v7415_v38 = vpop.f32.mrf.mxu1 }
 0x588   :  { %v7425_v14 = vpop.f32.mrf.mxu2  ;;  %v7427_v32 = vpop.f32.mrf.mxu3 }
 0x589   :  { %7741 = vst [vmem:[#allocation36_spill] sm:$0xff] %v7425_v14 }
 0x58a   :  { %7742 = vst [vmem:[#allocation37_spill] sm:$0xff] %v7427_v32 }
 0x58f   :  { %v7423_v61 = vpop.f32.mrf.mxu1 }
 0x590   :  { %v7433_v18 = vpop.f32.mrf.mxu2  ;;  %v7435_v52 = vpop.f32.mrf.mxu3 }
 0x591   :  { %3421 = vmatmul.bf16.vlgmr.msra.gmra.mxu0 %v6904_v4  ;;  %3434 = vmatmul.bf16.vlgmr.msra.gmra.mxu1 %v6904_v4  ;;  %7745 = vst [vmem:[#allocation40_spill] sm:$0xff] %v7433_v18 }
 0x592   :  { %3447 = vmatmul.bf16.vlgmr.msra.gmra.mxu2 %v6904_v4  ;;  %3460 = vmatmul.bf16.vlgmr.msra.gmra.mxu3 %v6904_v4  ;;  %v3040_v4 = vpop.f32.mrf.mxu0  ;;  %7746 = vst [vmem:[#allocation41_spill] sm:$0xff] %v7435_v52 }
 0x593   :  { %3571 = vmatpush.bf16.msra.mxu0 %v7239_v33  ;;  %3584 = vmatpush.bf16.msra.mxu1 %v7241_v36 }
 0x594   :  { %3597 = vmatpush.bf16.msra.mxu2 %v7243_v63  ;;  %3610 = vmatpush.bf16.msra.mxu3 %v7246_v39 }
 0x597   :  { %3572 = vmatpush.bf16.msra.mxu0 %v7250_v2  ;;  %3585 = vmatpush.bf16.msra.mxu1 %v7252_v13  ;;  %v7431_v16 = vpop.f32.mrf.mxu1 }
 0x598   :  { %3598 = vmatpush.bf16.msra.mxu2 %v7255_v51  ;;  %3611 = vmatpush.bf16.msra.mxu3 %v7257_v41  ;;  %7744 = vst [vmem:[#allocation39_spill] sm:$0xff] %v7431_v16  ;;  %v7441_v22 = vpop.f32.mrf.mxu2  ;;  %v7443_v7 = vpop.f32.mrf.mxu3 }
 0x599   :  { %7749 = vst [vmem:[#allocation44_spill] sm:$0xff] %v7441_v22 }
 0x59a   :  { %v7413_v17 = vpop.f32.mrf.mxu0  ;;  %7750 = vst [vmem:[#allocation45_spill] sm:$0xff] %v7443_v7  ;;  %v7475_v7 = vld [vmem:[#allocation16 + $0x30] sm:$0xff] }
 0x59b   :  { %3573 = vmatpush.bf16.msra.mxu0 %v7260_v57  ;;  %3586 = vmatpush.bf16.msra.mxu1 %v7264_v24 }
 0x59c   :  { %3599 = vmatpush.bf16.msra.mxu2 %v7266_v26  ;;  %3612 = vmatpush.bf16.msra.mxu3 %v7276_v1 }
 0x59f   :  { %3574 = vmatpush.bf16.msra.mxu0 %v7279_v11  ;;  %3587 = vmatpush.bf16.msra.mxu1 %v7281_v20  ;;  %v7439_v62 = vpop.f32.mrf.mxu1 }
 0x5a0   :  { %3600 = vmatpush.bf16.msra.mxu2 %v7283_v54  ;;  %3613 = vmatpush.bf16.msra.mxu3 %v7286_v44  ;;  %7748 = vst [vmem:[#allocation43_spill] sm:$0xff] %v7439_v62  ;;  %v7449_v3 = vpop.f32.mrf.mxu2  ;;  %v7451_v30 = vpop.f32.mrf.mxu3  ;;  %v3154_v62 = vadd.f32 %v7475_v7, %v3098_v37 }
 0x5a1   :  { %7753 = vst [vmem:[#allocation48_spill] sm:$0xff] %v7449_v3  ;;  %v3152_v3 = vadd.f32 %v7465_v8, %v3040_v4 }
 0x5a2   :  { %v7421_v40 = vpop.f32.mrf.mxu0  ;;  %7754 = vst [vmem:[#allocation49_spill] sm:$0xff] %v7451_v30  ;;  %v3153_v30 = vadd.f32 %v7467_v34, %v3069_v56 }
 0x5a3   :  { %3575 = vmatpush.bf16.msra.mxu0 %v7290_v28  ;;  %3588 = vmatpush.bf16.msra.mxu1 %v7292_v0 }
 0x5a4   :  { %3601 = vmatpush.bf16.msra.mxu2 %v7297_v47  ;;  %3614 = vmatpush.bf16.msra.mxu3 %v7299_v21 }
 0x5a7   :  { %3576 = vmatpush.bf16.msra.mxu0 %v7302_v45  ;;  %3589 = vmatpush.bf16.msra.mxu1 %v7306_v46  ;;  %v7447_v25 = vpop.f32.mrf.mxu1 }
 0x5a8   :  { %3602 = vmatpush.bf16.msra.mxu2 %v7308_v58  ;;  %3615 = vmatpush.bf16.msra.mxu3 %v7311_v50  ;;  %7752 = vst [vmem:[#allocation47_spill] sm:$0xff] %v7447_v25 }
 0x5aa   :  { %v7429_v53 = vpop.f32.mrf.mxu0 }
 0x5ab   :  { %3577 = vmatpush.bf16.msra.mxu0 %v7315_v27  ;;  %3590 = vmatpush.bf16.msra.mxu1 %v7320_v48  ;;  %7743 = vst [vmem:[#allocation38_spill] sm:$0xff] %v7429_v53 }
 0x5ac   :  { %3603 = vmatpush.bf16.msra.mxu2 %v7322_v31  ;;  %3616 = vmatpush.bf16.msra.mxu3 %v7325_v35 }
 0x5af   :  { %3578 = vmatpush.bf16.msra.mxu0 %v7328_v19  ;;  %3591 = vmatpush.bf16.msra.mxu1 %v7332_v6 }
 0x5b0   :  { %3604 = vmatpush.bf16.msra.mxu2 %v7334_v55  ;;  %3617 = vmatpush.bf16.msra.mxu3 %v7337_v42 }
 0x5b2   :  { %v7437_v60 = vpop.f32.mrf.mxu0 }
 0x5b3   :  { %7747 = vst [vmem:[#allocation42_spill] sm:$0xff] %v7437_v60 }
 0x5ba   :  { %v7445_v59 = vpop.f32.mrf.mxu0 }
 0x5bb   :  { %7751 = vst [vmem:[#allocation46_spill] sm:$0xff] %v7445_v59 }
 0x5fe   :  { %v7453_v9 = vpop.f32.mrf.mxu0  ;;  %v7455_v12 = vpop.f32.mrf.mxu1 }
 0x5ff   :  { %7755 = vst [vmem:[#allocation50_spill] sm:$0xff] %v7453_v9 }
 0x600   :  { %7756 = vst [vmem:[#allocation51_spill] sm:$0xff] %v7455_v12 }
 0x605   :  { %v7457_v10 = vpop.f32.mrf.mxu2  ;;  %v7459_v15 = vpop.f32.mrf.mxu3 }
 0x606   :  { %7757 = vst [vmem:[#allocation52_spill] sm:$0xff] %v7457_v10  ;;  %v7461_v23 = vpop.f32.mrf.mxu0  ;;  %v7463_v29 = vpop.f32.mrf.mxu1 }
 0x607   :  { %7758 = vst [vmem:[#allocation53_spill] sm:$0xff] %v7459_v15 }
 0x608   :  { %7759 = vst [vmem:[#allocation54_spill] sm:$0xff] %v7461_v23  ;;  %v7477_v23 = vld [vmem:[#allocation16 + $0x38] sm:$0xff] }
 0x609   :  { %7760 = vst [vmem:[#allocation55_spill] sm:$0xff] %v7463_v29  ;;  %v3155_v4 = vadd.f32 %v7477_v23, %v3127_v43 }
 0x60d   :  { %v7471_v25 = vpop.f32.mrf.mxu2  ;;  %v7473_v9 = vpop.f32.mrf.mxu3 }
 0x60e   :  { %7761 = vst [vmem:[#allocation56_spill] sm:$0xff] %v7471_v25  ;;  %v3422_v12 = vpop.f32.mrf.mxu0  ;;  %v3435_v10 = vpop.f32.mrf.mxu1 }
 0x60f   :  { %7762 = vst [vmem:[#allocation57_spill] sm:$0xff] %v7473_v9  ;;  %v3465_v59 = vadd.f32 %v3422_v12, %v3152_v3  ;;  %v3466_v15 = vadd.f32 %v3435_v10, %v3153_v30 }
 0x611   :  { %v3469_v29 = vmul.f32 0.5, %v3465_v59  ;;  %v3473_v22 = vmul.f32 0.5, %v3466_v15 }
 0x613   :  { %6440 = vtanh.f32 %v3469_v29 }
 0x614   :  { %6442 = vtanh.f32 %v3473_v22 }
 0x615   :  { %v3448_v56 = vpop.f32.mrf.mxu2  ;;  %v3461_v25 = vpop.f32.mrf.mxu3 }
 0x616   :  { %v3467_v60 = vadd.f32 %v3448_v56, %v3154_v62  ;;  %v3468_v9 = vadd.f32 %v3461_v25, %v3155_v4  ;;  %v3424_v52 = vpop.f32.mrf.mxu0  ;;  %v3437_v18 = vpop.f32.mrf.mxu1 }
 0x618   :  { %6444 = vtanh.f32 %v3467_v60  ;;  %v3478_v3 = vmul.f32 0.5, %v3468_v9 }
 0x619   :  { %v6441_v30 = vpop.eup %6440 }
 0x61a   :  { %v6443_v12 = vpop.eup %6442  ;;  %v3471_v10 = vmul.f32 0.5, %v6441_v30  ;;  %6446 = vtanh.f32 %v3478_v3 }
 0x61b   :  { %v3475_v16 = vmul.f32 0.5, %v6443_v12  ;;  %v3158_v12 = vadd.f32 %v7475_v7, %v7417_v5 }
 0x61c   :  { %v3472_v59 = vadd.f32 0.5, %v3471_v10  ;;  %v3159_v10 = vadd.f32 %v7477_v23, %v7419_v49 }
 0x61d   :  { %v3476_v15 = vadd.f32 0.5, %v3475_v16  ;;  %v3450_v29 = vpop.f32.mrf.mxu2  ;;  %v3463_v37 = vpop.f32.mrf.mxu3 }
 0x61e   :  { %v6445_v53 = vpop.eup %6444 }
 0x61f   :  { %v3482_v43 = vmul.f32 0.0, %v3476_v15  ;;  %v3483_v22 = vmul.f32 %v6445_v53, %v3472_v59  ;;  %v3157_v53 = vadd.f32 %v7467_v34, %v7415_v38 }
 0x620   :  { %v6447_v32 = vpop.eup %6446 }
 0x621   :  { %v7481_v14 = vadd.f32 %v3483_v22, %v3482_v43  ;;  %v3480_v18 = vmul.f32 0.5, %v6447_v32  ;;  %v3156_v32 = vadd.f32 %v7465_v8, %v7413_v17 }
 0x623   :  { %6448 = vtanh.f32 %v7481_v14  ;;  %v3481_v52 = vadd.f32 0.5, %v3480_v18 }
 0x629   :  { %v6449_v60 = vpop.eup %6448 }
 0x62a   :  { %v3486_v62 = vmul.f32 %v6449_v60, %v3481_v52 }
 0x62c   :  { %v3491_v25 = vpack.c.bf16 %v3486_v62, %v3486_v62 }
 0x62e   :  { %3500 = vmatmul.bf16.vlgmr.msrb.gmra.mxu0 %v3491_v25  ;;  %3513 = vmatmul.bf16.vlgmr.msrb.gmra.mxu1 %v3491_v25 }
 0x62f   :  { %3526 = vmatmul.bf16.vlgmr.msrb.gmra.mxu2 %v3491_v25  ;;  %3539 = vmatmul.bf16.vlgmr.msrb.gmra.mxu3 %v3491_v25 }
 0x630   :  { %3650 = vmatpush.bf16.msrb.mxu0 %v7239_v33  ;;  %3663 = vmatpush.bf16.msrb.mxu1 %v7241_v36 }
 0x631   :  { %3676 = vmatpush.bf16.msrb.mxu2 %v7243_v63  ;;  %3689 = vmatpush.bf16.msrb.mxu3 %v7246_v39 }
 0x634   :  { %3651 = vmatpush.bf16.msrb.mxu0 %v7250_v2  ;;  %3664 = vmatpush.bf16.msrb.mxu1 %v7252_v13 }
 0x635   :  { %3677 = vmatpush.bf16.msrb.mxu2 %v7255_v51  ;;  %3690 = vmatpush.bf16.msrb.mxu3 %v7257_v41 }
 0x638   :  { %3652 = vmatpush.bf16.msrb.mxu0 %v7260_v57  ;;  %3665 = vmatpush.bf16.msrb.mxu1 %v7264_v24 }
 0x639   :  { %3678 = vmatpush.bf16.msrb.mxu2 %v7266_v26  ;;  %3691 = vmatpush.bf16.msrb.mxu3 %v7276_v1 }
 0x63c   :  { %3653 = vmatpush.bf16.msrb.mxu0 %v7279_v11  ;;  %3666 = vmatpush.bf16.msrb.mxu1 %v7281_v20 }
 0x63d   :  { %3679 = vmatpush.bf16.msrb.mxu2 %v7283_v54  ;;  %3692 = vmatpush.bf16.msrb.mxu3 %v7286_v44 }
 0x640   :  { %3654 = vmatpush.bf16.msrb.mxu0 %v7290_v28  ;;  %3667 = vmatpush.bf16.msrb.mxu1 %v7292_v0 }
 0x641   :  { %3680 = vmatpush.bf16.msrb.mxu2 %v7297_v47  ;;  %3693 = vmatpush.bf16.msrb.mxu3 %v7299_v21 }
 0x644   :  { %3655 = vmatpush.bf16.msrb.mxu0 %v7302_v45  ;;  %3668 = vmatpush.bf16.msrb.mxu1 %v7306_v46 }
 0x645   :  { %3681 = vmatpush.bf16.msrb.mxu2 %v7308_v58  ;;  %3694 = vmatpush.bf16.msrb.mxu3 %v7311_v50 }
 0x648   :  { %3656 = vmatpush.bf16.msrb.mxu0 %v7315_v27  ;;  %3669 = vmatpush.bf16.msrb.mxu1 %v7320_v48 }
 0x649   :  { %3682 = vmatpush.bf16.msrb.mxu2 %v7322_v31  ;;  %3695 = vmatpush.bf16.msrb.mxu3 %v7325_v35 }
 0x64c   :  { %3657 = vmatpush.bf16.msrb.mxu0 %v7328_v19  ;;  %3670 = vmatpush.bf16.msrb.mxu1 %v7332_v6 }
 0x64d   :  { %3683 = vmatpush.bf16.msrb.mxu2 %v7334_v55  ;;  %3696 = vmatpush.bf16.msrb.mxu3 %v7337_v42 }
 0x6ab   :  { %v3501_v16 = vpop.f32.mrf.mxu0  ;;  %v3514_v9 = vpop.f32.mrf.mxu1 }
 0x6ac   :  { %v3544_v4 = vadd.f32 %v3501_v16, %v3156_v32  ;;  %v3545_v56 = vadd.f32 %v3514_v9, %v3157_v53 }
 0x6ae   :  { %v3548_v3 = vmul.f32 0.5, %v3544_v4  ;;  %v3552_v30 = vmul.f32 0.5, %v3545_v56 }
 0x6b0   :  { %6450 = vtanh.f32 %v3548_v3 }
 0x6b1   :  { %6452 = vtanh.f32 %v3552_v30 }
 0x6b2   :  { %v3527_v59 = vpop.f32.mrf.mxu2  ;;  %v3540_v15 = vpop.f32.mrf.mxu3 }
 0x6b3   :  { %v3546_v17 = vadd.f32 %v3527_v59, %v3158_v12  ;;  %v3547_v29 = vadd.f32 %v3540_v15, %v3159_v10  ;;  %v3503_v37 = vpop.f32.mrf.mxu0  ;;  %v3516_v38 = vpop.f32.mrf.mxu1  ;;  %v3161_v59 = vadd.f32 %v7467_v34, %v7423_v61 }
 0x6b5   :  { %6454 = vtanh.f32 %v3546_v17  ;;  %v3557_v43 = vmul.f32 0.5, %v3547_v29 }
 0x6b6   :  { %v6451_v22 = vpop.eup %6450 }
 0x6b7   :  { %v6453_v18 = vpop.eup %6452  ;;  %v3550_v52 = vmul.f32 0.5, %v6451_v22  ;;  %6456 = vtanh.f32 %v3557_v43  ;;  %v7763_v22 = vld [vmem:[#allocation36_spill] sm:$0xff] }
 0x6b8   :  { %v3554_v60 = vmul.f32 0.5, %v6453_v18  ;;  %v3162_v18 = vadd.f32 %v7475_v7, %v7763_v22 }
 0x6b9   :  { %v3551_v62 = vadd.f32 0.5, %v3550_v52  ;;  %v7764_v52 = vld [vmem:[#allocation37_spill] sm:$0xff] }
 0x6ba   :  { %v3555_v25 = vadd.f32 0.5, %v3554_v60  ;;  %v3529_v5 = vpop.f32.mrf.mxu2  ;;  %v3542_v32 = vpop.f32.mrf.mxu3  ;;  %v3163_v60 = vadd.f32 %v7477_v23, %v7764_v52 }
 0x6bb   :  { %v6455_v53 = vpop.eup %6454 }
 0x6bc   :  { %v3561_v49 = vmul.f32 %v3555_v25, %v7481_v14  ;;  %v3562_v16 = vmul.f32 %v6455_v53, %v3551_v62  ;;  %v3160_v14 = vadd.f32 %v7465_v8, %v7421_v40 }
 0x6bd   :  { %v6457_v9 = vpop.eup %6456 }
 0x6be   :  { %v7525_v4 = vadd.f32 %v3562_v16, %v3561_v49  ;;  %v3559_v56 = vmul.f32 0.5, %v6457_v9 }
 0x6c0   :  { %6458 = vtanh.f32 %v7525_v4  ;;  %v3560_v3 = vadd.f32 0.5, %v3559_v56 }
 0x6c6   :  { %v6459_v30 = vpop.eup %6458 }
 0x6c7   :  { %v3565_v12 = vmul.f32 %v6459_v30, %v3560_v3 }
 0x6c9   :  { %v3570_v10 = vpack.c.bf16 %v3565_v12, %v3565_v12 }
 0x6cb   :  { %3579 = vmatmul.bf16.vlgmr.msra.gmra.mxu0 %v3570_v10  ;;  %3592 = vmatmul.bf16.vlgmr.msra.gmra.mxu1 %v3570_v10 }
 0x6cc   :  { %3605 = vmatmul.bf16.vlgmr.msra.gmra.mxu2 %v3570_v10  ;;  %3618 = vmatmul.bf16.vlgmr.msra.gmra.mxu3 %v3570_v10 }
 0x6cd   :  { %3729 = vmatpush.bf16.msra.mxu0 %v7239_v33  ;;  %3742 = vmatpush.bf16.msra.mxu1 %v7241_v36 }
 0x6ce   :  { %3755 = vmatpush.bf16.msra.mxu2 %v7243_v63  ;;  %3768 = vmatpush.bf16.msra.mxu3 %v7246_v39 }
 0x6d1   :  { %3730 = vmatpush.bf16.msra.mxu0 %v7250_v2  ;;  %3743 = vmatpush.bf16.msra.mxu1 %v7252_v13 }
 0x6d2   :  { %3756 = vmatpush.bf16.msra.mxu2 %v7255_v51  ;;  %3769 = vmatpush.bf16.msra.mxu3 %v7257_v41 }
 0x6d5   :  { %3731 = vmatpush.bf16.msra.mxu0 %v7260_v57  ;;  %3744 = vmatpush.bf16.msra.mxu1 %v7264_v24 }
 0x6d6   :  { %3757 = vmatpush.bf16.msra.mxu2 %v7266_v26  ;;  %3770 = vmatpush.bf16.msra.mxu3 %v7276_v1 }
 0x6d9   :  { %3732 = vmatpush.bf16.msra.mxu0 %v7279_v11  ;;  %3745 = vmatpush.bf16.msra.mxu1 %v7281_v20 }
 0x6da   :  { %3758 = vmatpush.bf16.msra.mxu2 %v7283_v54  ;;  %3771 = vmatpush.bf16.msra.mxu3 %v7286_v44 }
 0x6dd   :  { %3733 = vmatpush.bf16.msra.mxu0 %v7290_v28  ;;  %3746 = vmatpush.bf16.msra.mxu1 %v7292_v0 }
 0x6de   :  { %3759 = vmatpush.bf16.msra.mxu2 %v7297_v47  ;;  %3772 = vmatpush.bf16.msra.mxu3 %v7299_v21 }
 0x6e1   :  { %3734 = vmatpush.bf16.msra.mxu0 %v7302_v45  ;;  %3747 = vmatpush.bf16.msra.mxu1 %v7306_v46 }
 0x6e2   :  { %3760 = vmatpush.bf16.msra.mxu2 %v7308_v58  ;;  %3773 = vmatpush.bf16.msra.mxu3 %v7311_v50 }
 0x6e5   :  { %3735 = vmatpush.bf16.msra.mxu0 %v7315_v27  ;;  %3748 = vmatpush.bf16.msra.mxu1 %v7320_v48 }
 0x6e6   :  { %3761 = vmatpush.bf16.msra.mxu2 %v7322_v31  ;;  %3774 = vmatpush.bf16.msra.mxu3 %v7325_v35 }
 0x6e9   :  { %3736 = vmatpush.bf16.msra.mxu0 %v7328_v19  ;;  %3749 = vmatpush.bf16.msra.mxu1 %v7332_v6 }
 0x6ea   :  { %3762 = vmatpush.bf16.msra.mxu2 %v7334_v55  ;;  %3775 = vmatpush.bf16.msra.mxu3 %v7337_v42 }
 0x748   :  { %v3580_v15 = vpop.f32.mrf.mxu0  ;;  %v3593_v17 = vpop.f32.mrf.mxu1 }
 0x749   :  { %v3623_v29 = vadd.f32 %v3580_v15, %v3160_v14  ;;  %v3624_v37 = vadd.f32 %v3593_v17, %v3161_v59 }
 0x74b   :  { %v3627_v38 = vmul.f32 0.5, %v3623_v29  ;;  %v3631_v43 = vmul.f32 0.5, %v3624_v37 }
 0x74d   :  { %6460 = vtanh.f32 %v3627_v38 }
 0x74e   :  { %6462 = vtanh.f32 %v3631_v43 }
 0x74f   :  { %v3606_v62 = vpop.f32.mrf.mxu2  ;;  %v3619_v25 = vpop.f32.mrf.mxu3 }
 0x750   :  { %v3625_v40 = vadd.f32 %v3606_v62, %v3162_v18  ;;  %v3626_v5 = vadd.f32 %v3619_v25, %v3163_v60  ;;  %v3582_v32 = vpop.f32.mrf.mxu0  ;;  %v3595_v61 = vpop.f32.mrf.mxu1  ;;  %v7766_v60 = vld [vmem:[#allocation39_spill] sm:$0xff] }
 0x751   :  { %v3165_v62 = vadd.f32 %v7467_v34, %v7766_v60 }
 0x752   :  { %6464 = vtanh.f32 %v3625_v40  ;;  %v3636_v53 = vmul.f32 0.5, %v3626_v5 }
 0x753   :  { %v6461_v49 = vpop.eup %6460 }
 0x754   :  { %v6463_v16 = vpop.eup %6462  ;;  %v3629_v9 = vmul.f32 0.5, %v6461_v49  ;;  %6466 = vtanh.f32 %v3636_v53  ;;  %v7767_v49 = vld [vmem:[#allocation40_spill] sm:$0xff] }
 0x755   :  { %v3633_v56 = vmul.f32 0.5, %v6463_v16  ;;  %v3166_v16 = vadd.f32 %v7475_v7, %v7767_v49 }
 0x756   :  { %v3630_v3 = vadd.f32 0.5, %v3629_v9  ;;  %v7768_v9 = vld [vmem:[#allocation41_spill] sm:$0xff] }
 0x757   :  { %v3634_v30 = vadd.f32 0.5, %v3633_v56  ;;  %v3608_v12 = vpop.f32.mrf.mxu2  ;;  %v3621_v10 = vpop.f32.mrf.mxu3  ;;  %v3167_v56 = vadd.f32 %v7477_v23, %v7768_v9 }
 0x758   :  { %v6465_v14 = vpop.eup %6464 }
 0x759   :  { %v3640_v59 = vmul.f32 %v3634_v30, %v7525_v4  ;;  %v3641_v15 = vmul.f32 %v6465_v14, %v3630_v3  ;;  %v7765_v4 = vld [vmem:[#allocation38_spill] sm:$0xff] }
 0x75a   :  { %v6467_v17 = vpop.eup %6466  ;;  %v3164_v52 = vadd.f32 %v7465_v8, %v7765_v4 }
 0x75b   :  { %v7569_v29 = vadd.f32 %v3641_v15, %v3640_v59  ;;  %v3638_v37 = vmul.f32 0.5, %v6467_v17 }
 0x75d   :  { %6468 = vtanh.f32 %v7569_v29  ;;  %v3639_v38 = vadd.f32 0.5, %v3638_v37 }
 0x763   :  { %v6469_v43 = vpop.eup %6468 }
 0x764   :  { %v3644_v22 = vmul.f32 %v6469_v43, %v3639_v38 }
 0x766   :  { %v3649_v18 = vpack.c.bf16 %v3644_v22, %v3644_v22 }
 0x768   :  { %3658 = vmatmul.bf16.vlgmr.msrb.gmra.mxu0 %v3649_v18  ;;  %3671 = vmatmul.bf16.vlgmr.msrb.gmra.mxu1 %v3649_v18 }
 0x769   :  { %3684 = vmatmul.bf16.vlgmr.msrb.gmra.mxu2 %v3649_v18  ;;  %3697 = vmatmul.bf16.vlgmr.msrb.gmra.mxu3 %v3649_v18 }
 0x76a   :  { %3808 = vmatpush.bf16.msrb.mxu0 %v7239_v33  ;;  %3821 = vmatpush.bf16.msrb.mxu1 %v7241_v36 }
 0x76b   :  { %3834 = vmatpush.bf16.msrb.mxu2 %v7243_v63  ;;  %3847 = vmatpush.bf16.msrb.mxu3 %v7246_v39 }
 0x76e   :  { %3809 = vmatpush.bf16.msrb.mxu0 %v7250_v2  ;;  %3822 = vmatpush.bf16.msrb.mxu1 %v7252_v13 }
 0x76f   :  { %3835 = vmatpush.bf16.msrb.mxu2 %v7255_v51  ;;  %3848 = vmatpush.bf16.msrb.mxu3 %v7257_v41 }
 0x772   :  { %3810 = vmatpush.bf16.msrb.mxu0 %v7260_v57  ;;  %3823 = vmatpush.bf16.msrb.mxu1 %v7264_v24 }
 0x773   :  { %3836 = vmatpush.bf16.msrb.mxu2 %v7266_v26  ;;  %3849 = vmatpush.bf16.msrb.mxu3 %v7276_v1 }
 0x776   :  { %3811 = vmatpush.bf16.msrb.mxu0 %v7279_v11  ;;  %3824 = vmatpush.bf16.msrb.mxu1 %v7281_v20 }
 0x777   :  { %3837 = vmatpush.bf16.msrb.mxu2 %v7283_v54  ;;  %3850 = vmatpush.bf16.msrb.mxu3 %v7286_v44 }
 0x77a   :  { %3812 = vmatpush.bf16.msrb.mxu0 %v7290_v28  ;;  %3825 = vmatpush.bf16.msrb.mxu1 %v7292_v0 }
 0x77b   :  { %3838 = vmatpush.bf16.msrb.mxu2 %v7297_v47  ;;  %3851 = vmatpush.bf16.msrb.mxu3 %v7299_v21 }
 0x77e   :  { %3813 = vmatpush.bf16.msrb.mxu0 %v7302_v45  ;;  %3826 = vmatpush.bf16.msrb.mxu1 %v7306_v46 }
 0x77f   :  { %3839 = vmatpush.bf16.msrb.mxu2 %v7308_v58  ;;  %3852 = vmatpush.bf16.msrb.mxu3 %v7311_v50 }
 0x782   :  { %3814 = vmatpush.bf16.msrb.mxu0 %v7315_v27  ;;  %3827 = vmatpush.bf16.msrb.mxu1 %v7320_v48 }
 0x783   :  { %3840 = vmatpush.bf16.msrb.mxu2 %v7322_v31  ;;  %3853 = vmatpush.bf16.msrb.mxu3 %v7325_v35 }
 0x786   :  { %3815 = vmatpush.bf16.msrb.mxu0 %v7328_v19  ;;  %3828 = vmatpush.bf16.msrb.mxu1 %v7332_v6 }
 0x787   :  { %3841 = vmatpush.bf16.msrb.mxu2 %v7334_v55  ;;  %3854 = vmatpush.bf16.msrb.mxu3 %v7337_v42 }
 0x7e5   :  { %v3659_v25 = vpop.f32.mrf.mxu0  ;;  %v3672_v40 = vpop.f32.mrf.mxu1 }
 0x7e6   :  { %v3702_v5 = vadd.f32 %v3659_v25, %v3164_v52  ;;  %v3703_v32 = vadd.f32 %v3672_v40, %v3165_v62 }
 0x7e8   :  { %v3706_v61 = vmul.f32 0.5, %v3702_v5  ;;  %v3710_v53 = vmul.f32 0.5, %v3703_v32 }
 0x7ea   :  { %6470 = vtanh.f32 %v3706_v61 }
 0x7eb   :  { %6472 = vtanh.f32 %v3710_v53 }
 0x7ec   :  { %v3685_v3 = vpop.f32.mrf.mxu2  ;;  %v3698_v30 = vpop.f32.mrf.mxu3 }
 0x7ed   :  { %v3704_v12 = vadd.f32 %v3685_v3, %v3166_v16  ;;  %v3705_v10 = vadd.f32 %v3698_v30, %v3167_v56  ;;  %v3661_v14 = vpop.f32.mrf.mxu0  ;;  %v3674_v59 = vpop.f32.mrf.mxu1  ;;  %v7770_v56 = vld [vmem:[#allocation43_spill] sm:$0xff] }
 0x7ee   :  { %v3169_v3 = vadd.f32 %v7467_v34, %v7770_v56 }
 0x7ef   :  { %6474 = vtanh.f32 %v3704_v12  ;;  %v3715_v15 = vmul.f32 0.5, %v3705_v10 }
 0x7f0   :  { %v6471_v17 = vpop.eup %6470 }
 0x7f1   :  { %v6473_v37 = vpop.eup %6472  ;;  %v3708_v38 = vmul.f32 0.5, %v6471_v17  ;;  %6476 = vtanh.f32 %v3715_v15  ;;  %v7771_v17 = vld [vmem:[#allocation44_spill] sm:$0xff] }
 0x7f2   :  { %v3712_v43 = vmul.f32 0.5, %v6473_v37  ;;  %v3170_v37 = vadd.f32 %v7475_v7, %v7771_v17 }
 0x7f3   :  { %v3709_v22 = vadd.f32 0.5, %v3708_v38  ;;  %v7772_v38 = vld [vmem:[#allocation45_spill] sm:$0xff] }
 0x7f4   :  { %v3713_v18 = vadd.f32 0.5, %v3712_v43  ;;  %v3687_v4 = vpop.f32.mrf.mxu2  ;;  %v3700_v52 = vpop.f32.mrf.mxu3  ;;  %v3171_v43 = vadd.f32 %v7477_v23, %v7772_v38 }
 0x7f5   :  { %v6475_v60 = vpop.eup %6474 }
 0x7f6   :  { %v3719_v62 = vmul.f32 %v3713_v18, %v7569_v29  ;;  %v3720_v25 = vmul.f32 %v6475_v60, %v3709_v22  ;;  %v7769_v29 = vld [vmem:[#allocation42_spill] sm:$0xff] }
 0x7f7   :  { %v6477_v40 = vpop.eup %6476  ;;  %v3168_v9 = vadd.f32 %v7465_v8, %v7769_v29 }
 0x7f8   :  { %v7613_v5 = vadd.f32 %v3720_v25, %v3719_v62  ;;  %v3717_v32 = vmul.f32 0.5, %v6477_v40 }
 0x7fa   :  { %6478 = vtanh.f32 %v7613_v5  ;;  %v3718_v61 = vadd.f32 0.5, %v3717_v32 }
 0x800   :  { %v6479_v53 = vpop.eup %6478 }
 0x801   :  { %v3723_v49 = vmul.f32 %v6479_v53, %v3718_v61 }
 0x803   :  { %v3728_v16 = vpack.c.bf16 %v3723_v49, %v3723_v49 }
 0x805   :  { %3737 = vmatmul.bf16.vlgmr.msra.gmra.mxu0 %v3728_v16  ;;  %3750 = vmatmul.bf16.vlgmr.msra.gmra.mxu1 %v3728_v16 }
 0x806   :  { %3763 = vmatmul.bf16.vlgmr.msra.gmra.mxu2 %v3728_v16  ;;  %3776 = vmatmul.bf16.vlgmr.msra.gmra.mxu3 %v3728_v16 }
 0x807   :  { %3887 = vmatpush.bf16.msra.mxu0 %v7239_v33  ;;  %3900 = vmatpush.bf16.msra.mxu1 %v7241_v36 }
 0x808   :  { %3913 = vmatpush.bf16.msra.mxu2 %v7243_v63  ;;  %3926 = vmatpush.bf16.msra.mxu3 %v7246_v39 }
 0x80b   :  { %3888 = vmatpush.bf16.msra.mxu0 %v7250_v2  ;;  %3901 = vmatpush.bf16.msra.mxu1 %v7252_v13 }
 0x80c   :  { %3914 = vmatpush.bf16.msra.mxu2 %v7255_v51  ;;  %3927 = vmatpush.bf16.msra.mxu3 %v7257_v41 }
 0x80f   :  { %3889 = vmatpush.bf16.msra.mxu0 %v7260_v57  ;;  %3902 = vmatpush.bf16.msra.mxu1 %v7264_v24 }
 0x810   :  { %3915 = vmatpush.bf16.msra.mxu2 %v7266_v26  ;;  %3928 = vmatpush.bf16.msra.mxu3 %v7276_v1 }
 0x813   :  { %3890 = vmatpush.bf16.msra.mxu0 %v7279_v11  ;;  %3903 = vmatpush.bf16.msra.mxu1 %v7281_v20 }
 0x814   :  { %3916 = vmatpush.bf16.msra.mxu2 %v7283_v54  ;;  %3929 = vmatpush.bf16.msra.mxu3 %v7286_v44 }
 0x817   :  { %3891 = vmatpush.bf16.msra.mxu0 %v7290_v28  ;;  %3904 = vmatpush.bf16.msra.mxu1 %v7292_v0 }
 0x818   :  { %3917 = vmatpush.bf16.msra.mxu2 %v7297_v47  ;;  %3930 = vmatpush.bf16.msra.mxu3 %v7299_v21 }
 0x81b   :  { %3892 = vmatpush.bf16.msra.mxu0 %v7302_v45  ;;  %3905 = vmatpush.bf16.msra.mxu1 %v7306_v46 }
 0x81c   :  { %3918 = vmatpush.bf16.msra.mxu2 %v7308_v58  ;;  %3931 = vmatpush.bf16.msra.mxu3 %v7311_v50 }
 0x81f   :  { %3893 = vmatpush.bf16.msra.mxu0 %v7315_v27  ;;  %3906 = vmatpush.bf16.msra.mxu1 %v7320_v48 }
 0x820   :  { %3919 = vmatpush.bf16.msra.mxu2 %v7322_v31  ;;  %3932 = vmatpush.bf16.msra.mxu3 %v7325_v35 }
 0x823   :  { %3894 = vmatpush.bf16.msra.mxu0 %v7328_v19  ;;  %3907 = vmatpush.bf16.msra.mxu1 %v7332_v6 }
 0x824   :  { %3920 = vmatpush.bf16.msra.mxu2 %v7334_v55  ;;  %3933 = vmatpush.bf16.msra.mxu3 %v7337_v42 }
 0x882   :  { %v3738_v30 = vpop.f32.mrf.mxu0  ;;  %v3751_v12 = vpop.f32.mrf.mxu1 }
 0x883   :  { %v3781_v10 = vadd.f32 %v3738_v30, %v3168_v9  ;;  %v3782_v14 = vadd.f32 %v3751_v12, %v3169_v3 }
 0x885   :  { %v3785_v59 = vmul.f32 0.5, %v3781_v10  ;;  %v3789_v15 = vmul.f32 0.5, %v3782_v14 }
 0x887   :  { %6480 = vtanh.f32 %v3785_v59 }
 0x888   :  { %6482 = vtanh.f32 %v3789_v15 }
 0x889   :  { %v3764_v22 = vpop.f32.mrf.mxu2  ;;  %v3777_v18 = vpop.f32.mrf.mxu3 }
 0x88a   :  { %v3783_v4 = vadd.f32 %v3764_v22, %v3170_v37  ;;  %v3784_v52 = vadd.f32 %v3777_v18, %v3171_v43  ;;  %v3740_v60 = vpop.f32.mrf.mxu0  ;;  %v3753_v62 = vpop.f32.mrf.mxu1 }
 0x88b   :  { %v6314_v60 = vld [vmem:[#allocation9 + $0x38] sm:$0xff]  ;;  %v6313_v62 = vld [vmem:[#allocation9 + $0x30] sm:$0xff] }
 0x88c   :  { %6484 = vtanh.f32 %v3783_v4  ;;  %v3794_v25 = vmul.f32 0.5, %v3784_v52 }
 0x88d   :  { %v6481_v40 = vpop.eup %6480 }
 0x88e   :  { %v6483_v32 = vpop.eup %6482  ;;  %v3787_v61 = vmul.f32 0.5, %v6481_v40  ;;  %6486 = vtanh.f32 %v3794_v25  ;;  %v6312_v25 = vld [vmem:[#allocation9 + $0x28] sm:$0xff]  ;;  %v6311_v40 = vld [vmem:[#allocation9 + $0x20] sm:$0xff] }
 0x88f   :  { %v3791_v53 = vmul.f32 0.5, %v6483_v32  ;;  %v7777_v32 = vld [vmem:[#allocation50_spill] sm:$0xff] }
 0x890   :  { %v3788_v49 = vadd.f32 0.5, %v3787_v61  ;;  %v3176_v61 = vadd.f32 %v7465_v8, %v7777_v32  ;;  %v7782_v32 = vld [vmem:[#allocation55_spill] sm:$0xff] }
 0x891   :  { %v3792_v16 = vadd.f32 0.5, %v3791_v53  ;;  %v3766_v29 = vpop.f32.mrf.mxu2  ;;  %v3779_v9 = vpop.f32.mrf.mxu3  ;;  %v7778_v53 = vld [vmem:[#allocation51_spill] sm:$0xff] }
 0x892   :  { %v6485_v56 = vpop.eup %6484  ;;  %v6310_v9 = vld [vmem:[#allocation9 + $0x18] sm:$0xff] }
 0x893   :  { %v3798_v3 = vmul.f32 %v3792_v16, %v7613_v5  ;;  %v3799_v30 = vmul.f32 %v6485_v56, %v3788_v49  ;;  %v3177_v49 = vadd.f32 %v7467_v34, %v7778_v53 }
 0x894   :  { %v6487_v12 = vpop.eup %6486 }
 0x895   :  { %v7657_v10 = vadd.f32 %v3799_v30, %v3798_v3  ;;  %v3796_v14 = vmul.f32 0.5, %v6487_v12  ;;  %v6309_v30 = vld [vmem:[#allocation9 + $0x10] sm:$0xff] }
 0x897   :  { %6488 = vtanh.f32 %v7657_v10  ;;  %v3797_v59 = vadd.f32 0.5, %v3796_v14  ;;  %v7779_v14 = vld [vmem:[#allocation52_spill] sm:$0xff] }
 0x89d   :  { %v6489_v15 = vpop.eup %6488 }
 0x89e   :  { %v3802_v17 = vmul.f32 %v6489_v15, %v3797_v59  ;;  %v3178_v59 = vadd.f32 %v7475_v7, %v7779_v14  ;;  %v7780_v15 = vld [vmem:[#allocation53_spill] sm:$0xff] }
 0x8a0   :  { %v3807_v37 = vpack.c.bf16 %v3802_v17, %v3802_v17  ;;  %v3179_v17 = vadd.f32 %v7477_v23, %v7780_v15  ;;  %v7784_v15 = vld [vmem:[#allocation57_spill] sm:$0xff] }
 0x8a2   :  { %3816 = vmatmul.bf16.vlgmr.msrb.gmra.mxu0 %v3807_v37  ;;  %3829 = vmatmul.bf16.vlgmr.msrb.gmra.mxu1 %v3807_v37 }
 0x8a3   :  { %3842 = vmatmul.bf16.vlgmr.msrb.gmra.mxu2 %v3807_v37  ;;  %3855 = vmatmul.bf16.vlgmr.msrb.gmra.mxu3 %v3807_v37 }
 0x8a4   :  { %3966 = vmatpush.bf16.msrb.mxu0 %v7239_v33  ;;  %3979 = vmatpush.bf16.msrb.mxu1 %v7241_v36  ;;  %v7773_v33 = vld [vmem:[#allocation46_spill] sm:$0xff] }
 0x8a5   :  { %3992 = vmatpush.bf16.msrb.mxu2 %v7243_v63  ;;  %4005 = vmatpush.bf16.msrb.mxu3 %v7246_v39  ;;  %v3172_v36 = vadd.f32 %v7465_v8, %v7773_v33  ;;  %v7774_v63 = vld [vmem:[#allocation47_spill] sm:$0xff]  ;;  %v6308_v8 = vld [vmem:[#allocation9 + $0x8] sm:$0xff] }
 0x8a6   :  { %v3173_v39 = vadd.f32 %v7467_v34, %v7774_v63 }
 0x8a8   :  { %3967 = vmatpush.bf16.msrb.mxu0 %v7250_v2  ;;  %3980 = vmatpush.bf16.msrb.mxu1 %v7252_v13 }
 0x8a9   :  { %3993 = vmatpush.bf16.msrb.mxu2 %v7255_v51  ;;  %4006 = vmatpush.bf16.msrb.mxu3 %v7257_v41 }
 0x8ac   :  { %3968 = vmatpush.bf16.msrb.mxu0 %v7260_v57  ;;  %3981 = vmatpush.bf16.msrb.mxu1 %v7264_v24 }
 0x8ad   :  { %3994 = vmatpush.bf16.msrb.mxu2 %v7266_v26  ;;  %4007 = vmatpush.bf16.msrb.mxu3 %v7276_v1  ;;  %v7775_v26 = vld [vmem:[#allocation48_spill] sm:$0xff] }
 0x8ae   :  { %v3174_v1 = vadd.f32 %v7475_v7, %v7775_v26 }
 0x8b0   :  { %3969 = vmatpush.bf16.msrb.mxu0 %v7279_v11  ;;  %3982 = vmatpush.bf16.msrb.mxu1 %v7281_v20  ;;  %v7776_v11 = vld [vmem:[#allocation49_spill] sm:$0xff] }
 0x8b1   :  { %3995 = vmatpush.bf16.msrb.mxu2 %v7283_v54  ;;  %4008 = vmatpush.bf16.msrb.mxu3 %v7286_v44  ;;  %v3175_v20 = vadd.f32 %v7477_v23, %v7776_v11 }
 0x8b4   :  { %3970 = vmatpush.bf16.msrb.mxu0 %v7290_v28  ;;  %3983 = vmatpush.bf16.msrb.mxu1 %v7292_v0 }
 0x8b5   :  { %3996 = vmatpush.bf16.msrb.mxu2 %v7297_v47  ;;  %4009 = vmatpush.bf16.msrb.mxu3 %v7299_v21 }
 0x8b8   :  { %3971 = vmatpush.bf16.msrb.mxu0 %v7302_v45  ;;  %3984 = vmatpush.bf16.msrb.mxu1 %v7306_v46 }
 0x8b9   :  { %3997 = vmatpush.bf16.msrb.mxu2 %v7308_v58  ;;  %4010 = vmatpush.bf16.msrb.mxu3 %v7311_v50 }
 0x8bc   :  { %3972 = vmatpush.bf16.msrb.mxu0 %v7315_v27  ;;  %3985 = vmatpush.bf16.msrb.mxu1 %v7320_v48 }
 0x8bd   :  { %3998 = vmatpush.bf16.msrb.mxu2 %v7322_v31  ;;  %4011 = vmatpush.bf16.msrb.mxu3 %v7325_v35 }
 0x8c0   :  { %3973 = vmatpush.bf16.msrb.mxu0 %v7328_v19  ;;  %3986 = vmatpush.bf16.msrb.mxu1 %v7332_v6 }
 0x8c1   :  { %3999 = vmatpush.bf16.msrb.mxu2 %v7334_v55  ;;  %4012 = vmatpush.bf16.msrb.mxu3 %v7337_v42 }
 0x91f   :  { %v3817_v2 = vpop.f32.mrf.mxu0  ;;  %v3830_v13 = vpop.f32.mrf.mxu1 }
 0x920   :  { %v3860_v51 = vadd.f32 %v3817_v2, %v3172_v36  ;;  %v3861_v41 = vadd.f32 %v3830_v13, %v3173_v39  ;;  %v6307_v13 = vld [vmem:[#allocation9] sm:$0xff] }
 0x922   :  { %v3864_v57 = vmul.f32 0.5, %v3860_v51  ;;  %v3868_v24 = vmul.f32 0.5, %v3861_v41 }
 0x924   :  { %6490 = vtanh.f32 %v3864_v57 }
 0x925   :  { %6492 = vtanh.f32 %v3868_v24 }
 0x926   :  { %v3843_v54 = vpop.f32.mrf.mxu2  ;;  %v3856_v44 = vpop.f32.mrf.mxu3 }
 0x927   :  { %v3862_v28 = vadd.f32 %v3843_v54, %v3174_v1  ;;  %v3863_v0 = vadd.f32 %v3856_v44, %v3175_v20  ;;  %v3819_v47 = vpop.f32.mrf.mxu0  ;;  %v3832_v21 = vpop.f32.mrf.mxu1  ;;  %v6322_v20 = vld [vmem:[#allocation18 + $0x38] sm:$0xff] }
 0x929   :  { %6494 = vtanh.f32 %v3862_v28  ;;  %v3873_v45 = vmul.f32 0.5, %v3863_v0  ;;  %v6321_v28 = vld [vmem:[#allocation18 + $0x30] sm:$0xff] }
 0x92a   :  { %v6491_v46 = vpop.eup %6490 }
 0x92b   :  { %v6493_v58 = vpop.eup %6492  ;;  %v3866_v50 = vmul.f32 0.5, %v6491_v46  ;;  %6496 = vtanh.f32 %v3873_v45 }
 0x92c   :  { %v3870_v27 = vmul.f32 0.5, %v6493_v58 }
 0x92d   :  { %v3867_v48 = vadd.f32 0.5, %v3866_v50 }
 0x92e   :  { %v3871_v31 = vadd.f32 0.5, %v3870_v27  ;;  %v3845_v35 = vpop.f32.mrf.mxu2  ;;  %v3858_v19 = vpop.f32.mrf.mxu3  ;;  %v4040_v27 = vld [vmem:[#allocation7] sm:$0xf] }
 0x92f   :  { %v6495_v6 = vpop.eup %6494  ;;  %v6329_v35 = vld [vmem:[#allocation19 + $0x30] sm:$0xff]  ;;  %v6319_v19 = vld [vmem:[#allocation18 + $0x20] sm:$0xff] }
 0x930   :  { %v3877_v55 = vmul.f32 %v3871_v31, %v7657_v10  ;;  %v3878_v42 = vmul.f32 %v6495_v6, %v3867_v48  ;;  %v6330_v48 = vld [vmem:[#allocation19 + $0x38] sm:$0xff]  ;;  %v6320_v31 = vld [vmem:[#allocation18 + $0x28] sm:$0xff] }
 0x931   :  { %v6497_v5 = vpop.eup %6496  ;;  %v6328_v6 = vld [vmem:[#allocation19 + $0x28] sm:$0xff] }
 0x932   :  { %v3879_v38 = vadd.f32 %v3878_v42, %v3877_v55  ;;  %v3875_v43 = vmul.f32 0.5, %v6497_v5  ;;  %v6318_v55 = vld [vmem:[#allocation18 + $0x18] sm:$0xff]  ;;  %v6327_v42 = vld [vmem:[#allocation19 + $0x20] sm:$0xff]  ;;  %v6317_v5 = vld [vmem:[#allocation18 + $0x10] sm:$0xff] }
 0x934   :  { %6498 = vtanh.f32 %v3879_v38  ;;  %v3876_v22 = vadd.f32 0.5, %v3875_v43  ;;  %v6316_v43 = vld [vmem:[#allocation18 + $0x8] sm:$0xff] }
 0x93a   :  { %v6499_v18 = vpop.eup %6498 }
 0x93b   :  { %v3881_v4 = vmul.f32 %v6499_v18, %v3876_v22  ;;  %v6325_v22 = vld [vmem:[#allocation19 + $0x10] sm:$0xff]  ;;  %v6315_v18 = vld [vmem:[#allocation18] sm:$0xff] }
 0x93d   :  { %v3886_v52 = vpack.c.bf16 %v3881_v4, %v3881_v4  ;;  %v6324_v4 = vld [vmem:[#allocation19 + $0x8] sm:$0xff] }
 0x93f   :  { %3895 = vmatmul.bf16.vlgmr.msra.gmra.mxu0 %v3886_v52  ;;  %3908 = vmatmul.bf16.vlgmr.msra.gmra.mxu1 %v3886_v52 }
 0x940   :  { %3921 = vmatmul.bf16.vlgmr.msra.gmra.mxu2 %v3886_v52  ;;  %3934 = vmatmul.bf16.vlgmr.msra.gmra.mxu3 %v3886_v52  ;;  %v6323_v52 = vld [vmem:[#allocation19] sm:$0xff] }
 0x941   :  { %4106 = vmatpush.bf16.msra.mxu0 %v6314_v60  ;;  %4263 = vmatpush.bf16.msra.mxu2 %v6322_v20  ;;  %v6528_v60 = vld [vmem:[#allocation16 + $0x20] sm:$0xff] }
 0x942   :  { %4202 = vmatpush.bf16.msra.mxu1 %v6330_v48 }
 0x945   :  { %4107 = vmatpush.bf16.msra.mxu0 %v6313_v62  ;;  %4264 = vmatpush.bf16.msra.mxu2 %v6321_v28  ;;  %v7781_v62 = vld [vmem:[#allocation54_spill] sm:$0xff] }
 0x946   :  { %4203 = vmatpush.bf16.msra.mxu1 %v6329_v35 }
 0x949   :  { %4108 = vmatpush.bf16.msra.mxu0 %v6312_v25  ;;  %4265 = vmatpush.bf16.msra.mxu2 %v6320_v31  ;;  %v3180_v25 = vadd.f32 %v6528_v60, %v7781_v62 }
 0x94a   :  { %4204 = vmatpush.bf16.msra.mxu1 %v6328_v6 }
 0x94d   :  { %4109 = vmatpush.bf16.msra.mxu0 %v6311_v40  ;;  %4266 = vmatpush.bf16.msra.mxu2 %v6319_v19  ;;  %v6529_v40 = vld [vmem:[#allocation16 + $0x28] sm:$0xff] }
 0x94e   :  { %4205 = vmatpush.bf16.msra.mxu1 %v6327_v42  ;;  %v6332_v42 = vld [vmem:[#allocation21 + $0x8] sm:$0xff] }
 0x951   :  { %4110 = vmatpush.bf16.msra.mxu0 %v6310_v9  ;;  %4267 = vmatpush.bf16.msra.mxu2 %v6318_v55  ;;  %v6333_v55 = vld [vmem:[#allocation21 + $0x10] sm:$0xff] }
 0x955   :  { %4111 = vmatpush.bf16.msra.mxu0 %v6309_v30  ;;  %4268 = vmatpush.bf16.msra.mxu2 %v6317_v5 }
 0x959   :  { %4112 = vmatpush.bf16.msra.mxu0 %v6308_v8  ;;  %4269 = vmatpush.bf16.msra.mxu2 %v6316_v43  ;;  %v6336_v8 = vld [vmem:[#allocation21 + $0x28] sm:$0xff]  ;;  %v4276_v43 = vld [vmem:[%s7736_s10] sm:$0xff]  ;;  %s4365_s10 = sshll.u32 %s6906_s2, 4  ;;  %s4366_s10 = int_to_ptr.vmem [resolvable:$true] %s4365_s10 }
 0x95d   :  { %4113 = vmatpush.bf16.msra.mxu0 %v6307_v13  ;;  %4270 = vmatpush.bf16.msra.mxu2 %v6315_v18  ;;  %v6335_v13 = vld [vmem:[#allocation21 + $0x20] sm:$0xff] }
 0x9bc   :  { %v3896_v16 = vpop.f32.mrf.mxu0  ;;  %v3909_v29 = vpop.f32.mrf.mxu1 }
 0x9bd   :  { %v3939_v56 = vadd.f32 %v3896_v16, %v3176_v61  ;;  %v3940_v3 = vadd.f32 %v3909_v29, %v3177_v49  ;;  %v3181_v61 = vadd.f32 %v6529_v40, %v7782_v32  ;;  %v6338_v16 = vld [vmem:[#allocation21 + $0x38] sm:$0xff] }
 0x9be   :  { %4346 = vmatpush.bf16.msra.mxu3 %v6338_v16 }
 0x9bf   :  { %v3943_v12 = vmul.f32 0.5, %v3939_v56  ;;  %v3947_v10 = vmul.f32 0.5, %v3940_v3  ;;  %v6337_v56 = vld [vmem:[#allocation21 + $0x30] sm:$0xff] }
 0x9c1   :  { %6500 = vtanh.f32 %v3943_v12  ;;  %v6530_v12 = vld [vmem:[#allocation16 + $0x30] sm:$0xff] }
 0x9c2   :  { %6502 = vtanh.f32 %v3947_v10  ;;  %v7783_v10 = vld [vmem:[#allocation56_spill] sm:$0xff]  ;;  %4347 = vmatpush.bf16.msra.mxu3 %v6337_v56 }
 0x9c3   :  { %v3922_v34 = vpop.f32.mrf.mxu2  ;;  %v3935_v37 = vpop.f32.mrf.mxu3  ;;  %v3182_v14 = vadd.f32 %v6530_v12, %v7783_v10 }
 0x9c4   :  { %v3941_v33 = vadd.f32 %v3922_v34, %v3178_v59  ;;  %v3942_v36 = vadd.f32 %v3935_v37, %v3179_v17  ;;  %v3898_v63 = vpop.f32.mrf.mxu0  ;;  %v3911_v39 = vpop.f32.mrf.mxu1  ;;  %v6531_v59 = vld [vmem:[#allocation16 + $0x38] sm:$0xff] }
 0x9c5   :  { %v3183_v17 = vadd.f32 %v6531_v59, %v7784_v15 }
 0x9c6   :  { %6504 = vtanh.f32 %v3941_v33  ;;  %v3952_v2 = vmul.f32 0.5, %v3942_v36  ;;  %4348 = vmatpush.bf16.msra.mxu3 %v6336_v8 }
 0x9c7   :  { %v6501_v51 = vpop.eup %6500 }
 0x9c8   :  { %v6503_v41 = vpop.eup %6502  ;;  %v3945_v57 = vmul.f32 0.5, %v6501_v51  ;;  %6506 = vtanh.f32 %v3952_v2 }
 0x9c9   :  { %v3949_v7 = vmul.f32 0.5, %v6503_v41 }
 0x9ca   :  { %v3946_v24 = vadd.f32 0.5, %v3945_v57  ;;  %4349 = vmatpush.bf16.msra.mxu3 %v6335_v13 }
 0x9cb   :  { %v3950_v23 = vadd.f32 0.5, %v3949_v7  ;;  %v3924_v26 = vpop.f32.mrf.mxu2  ;;  %v3937_v1 = vpop.f32.mrf.mxu3 }
 0x9cc   :  { %v6505_v11 = vpop.eup %6504  ;;  %v6334_v26 = vld [vmem:[#allocation21 + $0x18] sm:$0xff] }
 0x9cd   :  { %v3956_v54 = vmul.f32 %v3950_v23, %v3879_v38  ;;  %v3957_v44 = vmul.f32 %v6505_v11, %v3946_v24  ;;  %v6326_v38 = vld [vmem:[#allocation19 + $0x18] sm:$0xff] }
 0x9ce   :  { %v6507_v0 = vpop.eup %6506  ;;  %4206 = vmatpush.bf16.msra.mxu1 %v6326_v38  ;;  %v4057_v23 = vld [vmem:[#allocation10] sm:$0xff]  ;;  %4350 = vmatpush.bf16.msra.mxu3 %v6334_v26 }
 0x9cf   :  { %v7709_v47 = vadd.f32 %v3957_v44, %v3956_v54  ;;  %v3954_v21 = vmul.f32 0.5, %v6507_v0 }
 0x9d1   :  { %6508 = vtanh.f32 %v7709_v47  ;;  %v3955_v45 = vadd.f32 0.5, %v3954_v21 }
 0x9d2   :  { %4207 = vmatpush.bf16.msra.mxu1 %v6325_v22  ;;  %4351 = vmatpush.bf16.msra.mxu3 %v6333_v55 }
 0x9d6   :  { %4208 = vmatpush.bf16.msra.mxu1 %v6324_v4  ;;  %4352 = vmatpush.bf16.msra.mxu3 %v6332_v42 }
 0x9d7   :  { %v6509_v46 = vpop.eup %6508 }
 0x9d8   :  { %v3960_v58 = vmul.f32 %v6509_v46, %v3955_v45 }
 0x9da   :  { %v3965_v50 = vpack.c.bf16 %v3960_v58, %v3960_v58  ;;  %4209 = vmatpush.bf16.msra.mxu1 %v6323_v52 }
 0x9dc   :  { %3974 = vmatmul.bf16.vlgmr.msrb.gmra.mxu0 %v3965_v50  ;;  %3987 = vmatmul.bf16.vlgmr.msrb.gmra.mxu1 %v3965_v50 }
 0x9dd   :  { %4000 = vmatmul.bf16.vlgmr.msrb.gmra.mxu2 %v3965_v50  ;;  %4013 = vmatmul.bf16.vlgmr.msrb.gmra.mxu3 %v3965_v50 }
 0x9ec   :  { %4114 = vmatmul.bf16.vlgmr.msra.gmra.mxu0 %v4040_v27 }
 0xa59   :  { %v3975_v53 = vpop.f32.mrf.mxu0  ;;  %v3988_v49 = vpop.f32.mrf.mxu1 }
 0xa5a   :  { %v4018_v29 = vadd.f32 %v3975_v53, %v3180_v25  ;;  %v4019_v9 = vadd.f32 %v3988_v49, %v3181_v61  ;;  %v4297_v25 = vld [vmem:[#allocation22] sm:$0xff] }
 0xa5c   :  { %v4022_v3 = vmul.f32 0.5, %v4018_v29  ;;  %v4026_v30 = vmul.f32 0.5, %v4019_v9 }
 0xa5e   :  { %6510 = vtanh.f32 %v4022_v3 }
 0xa5f   :  { %6512 = vtanh.f32 %v4026_v30 }
 0xa60   :  { %v4001_v34 = vpop.f32.mrf.mxu2  ;;  %v4014_v37 = vpop.f32.mrf.mxu3 }
 0xa61   :  { %v4020_v33 = vadd.f32 %v4001_v34, %v3182_v14  ;;  %v4021_v36 = vadd.f32 %v4014_v37, %v3183_v17  ;;  %v3977_v63 = vpop.f32.mrf.mxu0  ;;  %v3990_v39 = vpop.f32.mrf.mxu1 }
 0xa63   :  { %6514 = vtanh.f32 %v4020_v33  ;;  %v4031_v2 = vmul.f32 0.5, %v4021_v36 }
 0xa64   :  { %v6511_v51 = vpop.eup %6510 }
 0xa65   :  { %v6513_v41 = vpop.eup %6512  ;;  %v4024_v57 = vmul.f32 0.5, %v6511_v51  ;;  %6516 = vtanh.f32 %v4031_v2 }
 0xa66   :  { %v4028_v7 = vmul.f32 0.5, %v6513_v41 }
 0xa67   :  { %v4025_v24 = vadd.f32 0.5, %v4024_v57 }
 0xa68   :  { %v4029_v1 = vadd.f32 0.5, %v4028_v7  ;;  %v4003_v11 = vpop.f32.mrf.mxu2  ;;  %v4016_v20 = vpop.f32.mrf.mxu3 }
 0xa69   :  { %v6515_v54 = vpop.eup %6514  ;;  %v4115_v44 = vpop.f32.mrf.mxu0 }
 0xa6a   :  { %v4035_v28 = vmul.f32 %v4029_v1, %v7709_v47  ;;  %v4036_v0 = vmul.f32 %v6515_v54, %v4025_v24  ;;  %v4116_v21 = vadd.f32 %v4115_v44, %v4057_v23  ;;  %v6331_v47 = vld [vmem:[#allocation21] sm:$0xff] }
 0xa6b   :  { %v6517_v45 = vpop.eup %6516  ;;  %4353 = vmatpush.bf16.msra.mxu3 %v6331_v47 }
 0xa6c   :  { %v4037_v46 = vadd.f32 %v4036_v0, %v4035_v28  ;;  %v4119_v58 = vmax.f32 %v4116_v21, 0.0  ;;  %v4033_v27 = vmul.f32 0.5, %v6517_v45 }
 0xa6e   :  { %6518 = vtanh.f32 %v4037_v46  ;;  %v4120_v50 = vpack.c.bf16 %v4119_v58, %v4119_v58  ;;  %v4034_v31 = vadd.f32 0.5, %v4033_v27 }
 0xa70   :  { %4271 = vmatmul.bf16.vlgmr.msra.gmra.mxu2 %v4120_v50 }
 0xa71   :  { %v4117_v48 = vpop.f32.mrf.mxu0 }
 0xa74   :  { %v6519_v35 = vpop.eup %6518 }
 0xa75   :  { %v4039_v19 = vmul.f32 %v6519_v35, %v4034_v31 }
 0xa77   :  { %v4137_v6 = vpack.c.bf16 %v4039_v19, %v4039_v19 }
 0xa79   :  { %4210 = vmatmul.bf16.vlgmr.msra.gmra.mxu1 %v4137_v6 }
 0xaf3   :  { %v4272_v5 = vpop.f32.mrf.mxu2 }
 0xaf6   :  { %v4211_v38 = vpop.f32.mrf.mxu1 }
 0xaf7   :  { %v4273_v22 = vadd.f32 %v4272_v5, %v4211_v38 }
 0xaf9   :  { %v4277_v18 = vadd.f32 %v4276_v43, %v4273_v22 }
 0xafb   :  { %v4278_v4 = vmax.f32 %v4277_v18, 0.0  ;;  %v4274_v52 = vpop.f32.mrf.mxu2 }
 0xafd   :  { %v4280_v60 = vpack.c.bf16 %v4278_v4, %v4278_v4  ;;  %4279 = vst [vmem:[#allocation25] sm:$0xff] %v4278_v4 }
 0xafe   :  { %v4213_v62 = vpop.f32.mrf.mxu1  ;;  %4381 = dma.vmem_to_hbm [thread:$0]  %s4377_s1, 128, %s4379_s18, [#allocation26]  }
 0xaff   :  { %4354 = vmatmul.bf16.vlgmr.msra.gmra.mxu3 %v4280_v60 }
 0xb82   :  { %v4355_v40 = vpop.f32.mrf.mxu3 }
 0xb83   :  { %v4356_v32 = vadd.f32 %v4355_v40, %v4297_v25 }
 0xb85   :  { %4359 = vst [vmem:[#allocation24] sm:$0xff] %v4356_v32 }
 0xb86   :  { %4370 = dma.vmem_to_hbm [thread:$0]  %s4366_s10, 128, %s4368_s21, [#allocation6]  }
 0xb8a   :  { %v4357_v61 = vpop.f32.mrf.mxu3 }
 0xb8b   :  { %6882 = dma.done.wait [#allocation6], 128  }
 0xb8c   :  { %6883 = vsyncadd [#allocation6], 4294967168 }
 0xb8d   :  { %6884 = dma.done.wait [#allocation26], 128  }
 0xb8e   :  { %6885 = vsyncadd [#allocation26], 4294967168 }
 0xb8f   :  { %4390 = vsyncpa [#allocation5], 1 }
 0xb90   :  { %4391 = vsyncpa [#allocation8], 1 }
 0xb91   :  { %4392 = vsyncpa [#allocation11], 1 }
 0xb92   :  { %4393 = vsyncpa [#allocation14], 1 }
 0xb93   :  { %4394 = vsyncpa [#allocation17], 1 }
 0xb94   :  { %4395 = vsyncpa [#allocation20], 1 }
 0xb95   :  { %4396 = vsyncpa [#allocation23], 1 }
 0xb96   :  { %4397 = vsyncpa [#allocation6], 1 }
 0xb97   :  { %4398 = vsyncpa [#allocation26], 1 }

</bundles_post_ra>
